<compile_context>
chip_gen: v7x
topology: tpu7x:2x2x1
jax: 0.10.0
libtpu: 0.0.40
codegen_flags: <defaults>
</compile_context>

<pallas_src>
import functools

import numpy as np
import jax
import jax.numpy as jnp
from jax.experimental import pallas as pl
from jax.experimental.pallas import tpu as pltpu


# ------------------- trace-time structural constants (numpy) ------------------- #

@functools.lru_cache(maxsize=None)
def _gather_taps_np(h, w):
    """One-hot gather operators for a 3x3 / stride-2 / pad-1 convolution.

    Returns G with shape (9, h*w, oh*ow) where G[t, q, p] = 1 iff flattened
    input position q feeds flattened output position p for tap t = kh*3 + kw
    (missing entries encode the implicit zero padding).  patch_t = F @ G[t]
    is then a plain 2D matmul in channel-major layout.
    """
    oh, ow = h // 2, w // 2
    g = np.zeros((9, h * w, oh * ow), np.float32)
    for kh in range(3):
        for kw in range(3):
            t = kh * 3 + kw
            for ph in range(oh):
                ih = 2 * ph + kh - 1
                if ih < 0 or ih >= h:
                    continue
                for pw in range(ow):
                    iw = 2 * pw + kw - 1
                    if iw < 0 or iw >= w:
                        continue
                    g[t, ih * w + iw, ph * ow + pw] = 1.0
    return g


# ------------------------------ fused Pallas kernel ----------------------------- #

def _yolo_fused_kernel(x_ref,
                       g1_ref, g2_ref, g3_ref,
                       w1_ref, b1_ref, w2_ref, b2_ref, w3_ref, b3_ref,
                       h1w_ref, h1b_ref, h2w_ref, h2b_ref, h3w_ref, h3b_ref,
                       pred_ref, r1_ref, r2_ref, r3_ref,
                       p1_scr, p2_scr, p3_scr):
    """Single invocation: the entire forward for the whole batch stays on-core.

    Feature layout is (B*C, H*W): batch-major rows of flattened NCHW, so the
    wrapper only needs contiguous reshapes.  Conv/head weights are
    block-diagonal over batch so one matmul serves every batch element.
    """

    def conv3x3_s2_relu(f, g_ref, patch_ref, w_ref, b_ref):
        # f        : (B*Cin, HW)        f32 features
        # g_ref    : (9, HW, OHOW)      bf16 0/1 gather taps (exact)
        # patch_ref: (9*B*Cin, OHOW)    f32 VMEM scratch (im2col patch)
        # w_ref    : (B*Cout, 9*B*Cin)  f32 tap-major, batch-block-diagonal
        # b_ref    : (B*Cout, 1)        f32 bias column
        fb = f.astype(jnp.bfloat16)                     # bf16 MXU gather inputs
        rows = f.shape[0]
        for t in range(9):                              # static unroll over taps
            patch_ref[t * rows:(t + 1) * rows, :] = jnp.dot(
                fb, g_ref[t], preferred_element_type=jnp.float32)
        acc = jnp.dot(w_ref[...], patch_ref[...],
                      preferred_element_type=jnp.float32)
        return jnp.maximum(acc + b_ref[...], 0.0)       # bias + ReLU in f32

    def head(f, hw_ref, hb_ref):                        # 1x1 conv == channel matmul
        return jnp.dot(hw_ref[...], f,
                       preferred_element_type=jnp.float32) + hb_ref[...]

    def sigmoid(v):                                     # exp + approx recip -> EUP
        return pl.reciprocal(1.0 + jnp.exp(-v), approx=True)

    f0 = x_ref[...]                                     # (B*Cin, H*W)
    f1 = conv3x3_s2_relu(f0, g1_ref, p1_scr, w1_ref, b1_ref)   # (B*c1, a1)
    f2 = conv3x3_s2_relu(f1, g2_ref, p2_scr, w2_ref, b2_ref)   # (B*c2, a2)
    f3 = conv3x3_s2_relu(f2, g3_ref, p3_scr, w3_ref, b3_ref)   # (B*c3, a3)

    q1 = head(f1, h1w_ref, h1b_ref)                     # (B*no, a1) raw head
    q2 = head(f2, h2w_ref, h2b_ref)                     # (B*no, a2) raw head
    q3 = head(f3, h3w_ref, h3b_ref)                     # (B*no, a3) raw head

    # raw per-scale maps: already flattened (B, no, Hi*Wi) layout
    r1_ref[...] = q1
    r2_ref[...] = q2
    r3_ref[...] = q3

    # decoded detections: sigmoid, anchors concatenated along lanes
    a1, a2, a3 = r1_ref.shape[1], r2_ref.shape[1], r3_ref.shape[1]
    pred_ref[:, 0:a1] = sigmoid(q1)
    pred_ref[:, a1:a1 + a2] = sigmoid(q2)
    pred_ref[:, a1 + a2:a1 + a2 + a3] = sigmoid(q3)


# --------------------------------- wrapper ------------------------------------- #

def yolo_wrapper_forward(params, x_nchw):
    """Mirrors YOLOWrapper.forward: (decoded_pred, p1, p2, p3).

    pred : (B, no, total_anchors), sigmoid-ed.
    p_i  : raw per-scale head outputs in NCHW (B, no, Hi, Wi).
    """
    B, cin, H, W = x_nchw.shape
    c1 = params["w1"].shape[-1]
    c2 = params["w2"].shape[-1]
    c3 = params["w3"].shape[-1]
    no = params["h1_w"].shape[-1]
    h1, w1 = H // 2, W // 2
    h2, w2 = H // 4, W // 4
    h3, w3 = H // 8, W // 8
    a1, a2, a3 = h1 * w1, h2 * w2, h3 * w3
    A = a1 + a2 + a3

    # (B*C, H*W) == flattened NCHW: pure reshape, no transpose.
    x2 = x_nchw.reshape(B * cin, H * W)

    # structural 0/1 gather constants (exact in bf16 -> half the HBM bytes)
    g1 = jnp.asarray(_gather_taps_np(H, W), jnp.bfloat16)
    g2 = jnp.asarray(_gather_taps_np(h1, w1), jnp.bfloat16)
    g3 = jnp.asarray(_gather_taps_np(h2, w2), jnp.bfloat16)

    eye = jnp.eye(B, dtype=jnp.float32)

    def conv_w(w):
        # (3,3,ci,co) -> (B*co, 9*B*ci): tap-major column blocks, each block
        # block-diagonal over batch (so one matmul handles the whole batch).
        _, _, ci, co = w.shape
        wt = jnp.transpose(w.reshape(9, ci, co), (0, 2, 1))          # (9, co, ci)
        wb = jnp.einsum("tij,ab->taibj", wt, eye).reshape(9, B * co, B * ci)
        return jnp.transpose(wb, (1, 0, 2)).reshape(B * co, 9 * B * ci)

    def head_w(hw):
        # (c, no) -> (B*no, B*c), block-diagonal over batch.
        c, n = hw.shape
        return jnp.einsum("ij,ab->aibj", hw.T, eye).reshape(B * n, B * c)

    def col(b):     # bias as a batch-tiled column -> broadcasts over lanes
        return jnp.tile(b, B).reshape(-1, 1)

    args = (
        x2,
        g1, g2, g3,
        conv_w(params["w1"]), col(params["b1"]),
        conv_w(params["w2"]), col(params["b2"]),
        conv_w(params["w3"]), col(params["b3"]),
        head_w(params["h1_w"]), col(params["h1_b"]),
        head_w(params["h2_w"]), col(params["h2_b"]),
        head_w(params["h3_w"]), col(params["h3_b"]),
    )

    vmem = pl.BlockSpec(memory_space=pltpu.MemorySpace.VMEM)
    out_shape = (
        jax.ShapeDtypeStruct((B * no, A), jnp.float32),
        jax.ShapeDtypeStruct((B * no, a1), jnp.float32),
        jax.ShapeDtypeStruct((B * no, a2), jnp.float32),
        jax.ShapeDtypeStruct((B * no, a3), jnp.float32),
    )

    pred, r1, r2, r3 = pl.pallas_call(
        _yolo_fused_kernel,
        out_shape=out_shape,
        in_specs=[vmem] * len(args),
        out_specs=(vmem, vmem, vmem, vmem),
        scratch_shapes=[
            pltpu.VMEM((9 * B * cin, a1), jnp.float32),   # im2col patch, conv1
            pltpu.VMEM((9 * B * c1, a2), jnp.float32),    # im2col patch, conv2
            pltpu.VMEM((9 * B * c2, a3), jnp.float32),    # im2col patch, conv3
        ],
    )(*args)

    # pure contiguous reshapes back to the module's output layouts
    pred = pred.reshape(B, no, A)
    p1 = r1.reshape(B, no, h1, w1)
    p2 = r2.reshape(B, no, h2, w2)
    p3 = r3.reshape(B, no, h3, w3)
    return pred, p1, p2, p3


# ------------------------------ synthetic model -------------------------------- #

def init_params(key, cin=4, widths=(8, 16, 32), no=8):
    """Deterministic synthetic YOLO-ish params (no checkpoint load)."""
    # TODO(synk): the original wraps an arbitrary external YOLO model; a small
    # 3-stage backbone + per-scale heads stands in for it here.
    ks = jax.random.split(key, 6)
    c1, c2, c3 = widths
    return {
        "w1": jax.random.normal(ks[0], (3, 3, cin, c1), jnp.float32) * 0.1,
        "b1": jnp.full((c1,), 0.01, jnp.float32),
        "w2": jax.random.normal(ks[1], (3, 3, c1, c2), jnp.float32) * 0.1,
        "b2": jnp.full((c2,), 0.01, jnp.float32),
        "w3": jax.random.normal(ks[2], (3, 3, c2, c3), jnp.float32) * 0.1,
        "b3": jnp.full((c3,), 0.01, jnp.float32),
        "h1_w": jax.random.normal(ks[3], (c1, no), jnp.float32) * 0.1,
        "h1_b": jnp.zeros((no,), jnp.float32),
        "h2_w": jax.random.normal(ks[4], (c2, no), jnp.float32) * 0.1,
        "h2_b": jnp.zeros((no,), jnp.float32),
        "h3_w": jax.random.normal(ks[5], (c3, no), jnp.float32) * 0.1,
        "h3_b": jnp.zeros((no,), jnp.float32),
    }


def _reference_forward(params, x_nchw):
    """Pure-JAX reference (same math) for a correctness sanity check."""
    def conv(x, w, b):
        y = jax.lax.conv_general_dilated(
            x, w, window_strides=(2, 2), padding=((1, 1), (1, 1)),
            dimension_numbers=("NCHW", "HWIO", "NCHW"))
        return jnp.maximum(y + b.reshape(1, -1, 1, 1), 0.0)

    def head(f, w, b):
        return jnp.einsum("bchw,cn->bnhw", f, w) + b.reshape(1, -1, 1, 1)

    f1 = conv(x_nchw, params["w1"], params["b1"])
    f2 = conv(f1, params["w2"], params["b2"])
    f3 = conv(f2, params["w3"], params["b3"])
    p1 = head(f1, params["h1_w"], params["h1_b"])
    p2 = head(f2, params["h2_w"], params["h2_b"])
    p3 = head(f3, params["h3_w"], params["h3_b"])
    B, no = p1.shape[0], p1.shape[1]
    pred = jnp.concatenate([p.reshape(B, no, -1) for p in (p1, p2, p3)], axis=-1)
    return jax.nn.sigmoid(pred), p1, p2, p3


# ----------------------------------- main --------------------------------------- #

if __name__ == "__main__":
    key = jax.random.PRNGKey(0)
    k_param, k_x = jax.random.split(key)

    params = init_params(k_param)
    x = jax.random.normal(k_x, (2, 4, 16, 16), jnp.float32)  # NCHW input

    fwd = jax.jit(yolo_wrapper_forward)
    out = jax.block_until_ready(fwd(params, x))

    pred, p1, p2, p3 = out
    assert pred.shape == (2, 8, 84)       # 8*8 + 4*4 + 2*2 = 84 anchors
    assert p1.shape == (2, 8, 8, 8)
    assert p2.shape == (2, 8, 4, 4)
    assert p3.shape == (2, 8, 2, 2)

    # numerical sanity vs. pure-JAX reference (loose: bf16 gather + approx recip)
    ref = jax.block_until_ready(jax.jit(_reference_forward)(params, x))
    for got, want in zip(out, ref):
        assert got.shape == want.shape
        assert bool(jnp.allclose(got, want, rtol=5e-2, atol=5e-2))

    print("KERNEL_OK")
</pallas_src>

<mosaic_0001>
module attributes {stable_mosaic.version = 11 : i64} {
  func.func @_yolo_fused_kernel(%arg0: memref<8x256xf32, #tpu.memory_space<vmem>>, %arg1: memref<9x256x64xbf16, #tpu.memory_space<vmem>>, %arg2: memref<9x64x16xbf16, #tpu.memory_space<vmem>>, %arg3: memref<9x16x4xbf16, #tpu.memory_space<vmem>>, %arg4: memref<16x72xf32, #tpu.memory_space<vmem>>, %arg5: memref<16x1xf32, #tpu.memory_space<vmem>>, %arg6: memref<32x144xf32, #tpu.memory_space<vmem>>, %arg7: memref<32x1xf32, #tpu.memory_space<vmem>>, %arg8: memref<64x288xf32, #tpu.memory_space<vmem>>, %arg9: memref<64x1xf32, #tpu.memory_space<vmem>>, %arg10: memref<16x16xf32, #tpu.memory_space<vmem>>, %arg11: memref<16x1xf32, #tpu.memory_space<vmem>>, %arg12: memref<16x32xf32, #tpu.memory_space<vmem>>, %arg13: memref<16x1xf32, #tpu.memory_space<vmem>>, %arg14: memref<16x64xf32, #tpu.memory_space<vmem>>, %arg15: memref<16x1xf32, #tpu.memory_space<vmem>>, %arg16: memref<16x84xf32, #tpu.memory_space<vmem>>, %arg17: memref<16x64xf32, #tpu.memory_space<vmem>>, %arg18: memref<16x16xf32, #tpu.memory_space<vmem>>, %arg19: memref<16x4xf32, #tpu.memory_space<vmem>>, %arg20: memref<72x64xf32, #tpu.memory_space<vmem>>, %arg21: memref<144x16xf32, #tpu.memory_space<vmem>>, %arg22: memref<288x4xf32, #tpu.memory_space<vmem>>) attributes {dimension_semantics = [], scalar_prefetch = 0 : i64, scratch_operands = 3 : i64, tpu.core_type = #tpu.core_type<tc>} {
    %c0 = arith.constant 0 : index
    %c0_0 = arith.constant 0 : index
    %0 = vector.load %arg0[%c0, %c0_0] : memref<8x256xf32, #tpu.memory_space<vmem>>, vector<8x256xf32>
    %1 = arith.truncf %0 : vector<8x256xf32> to vector<8x256xbf16>
    %c0_1 = arith.constant 0 : index
    %c0_2 = arith.constant 0 : index
    %c0_3 = arith.constant 0 : index
    %2 = vector.load %arg1[%c0_1, %c0_2, %c0_3] : memref<9x256x64xbf16, #tpu.memory_space<vmem>>, vector<1x256x64xbf16>
    %3 = vector.shape_cast %2 : vector<1x256x64xbf16> to vector<256x64xbf16>
    %cst = arith.constant dense<0.000000e+00> : vector<8x64xf32>
    %4 = tpu.matmul %1, %3, %cst {dimension_numbers = #tpu.dot_dimension_numbers<[1], [0], [0], [1], [0, 0, 1, 1], [], []>} : vector<8x256xbf16>, vector<256x64xbf16>, vector<8x64xf32> -> vector<8x64xf32>
    %c0_4 = arith.constant 0 : index
    %c0_5 = arith.constant 0 : index
    %5 = vector.load %arg20[%c0_4, %c0_5] : memref<72x64xf32, #tpu.memory_space<vmem>>, vector<8x64xf32>
    tpu.vector_store %arg20[%c0_4, %c0_5], %4 {strides = array<i32>} : memref<72x64xf32, #tpu.memory_space<vmem>>, vector<8x64xf32>,
    %c1 = arith.constant 1 : index
    %c0_6 = arith.constant 0 : index
    %c0_7 = arith.constant 0 : index
    %6 = vector.load %arg1[%c1, %c0_6, %c0_7] : memref<9x256x64xbf16, #tpu.memory_space<vmem>>, vector<1x256x64xbf16>
    %7 = vector.shape_cast %6 : vector<1x256x64xbf16> to vector<256x64xbf16>
    %cst_8 = arith.constant dense<0.000000e+00> : vector<8x64xf32>
    %8 = tpu.matmul %1, %7, %cst_8 {dimension_numbers = #tpu.dot_dimension_numbers<[1], [0], [0], [1], [0, 0, 1, 1], [], []>} : vector<8x256xbf16>, vector<256x64xbf16>, vector<8x64xf32> -> vector<8x64xf32>
    %c8 = arith.constant 8 : index
    %c0_9 = arith.constant 0 : index
    %9 = vector.load %arg20[%c8, %c0_9] : memref<72x64xf32, #tpu.memory_space<vmem>>, vector<8x64xf32>
    tpu.vector_store %arg20[%c8, %c0_9], %8 {strides = array<i32>} : memref<72x64xf32, #tpu.memory_space<vmem>>, vector<8x64xf32>,
    %c2 = arith.constant 2 : index
    %c0_10 = arith.constant 0 : index
    %c0_11 = arith.constant 0 : index
    %10 = vector.load %arg1[%c2, %c0_10, %c0_11] : memref<9x256x64xbf16, #tpu.memory_space<vmem>>, vector<1x256x64xbf16>
    %11 = vector.shape_cast %10 : vector<1x256x64xbf16> to vector<256x64xbf16>
    %cst_12 = arith.constant dense<0.000000e+00> : vector<8x64xf32>
    %12 = tpu.matmul %1, %11, %cst_12 {dimension_numbers = #tpu.dot_dimension_numbers<[1], [0], [0], [1], [0, 0, 1, 1], [], []>} : vector<8x256xbf16>, vector<256x64xbf16>, vector<8x64xf32> -> vector<8x64xf32>
    %c16 = arith.constant 16 : index
    %c0_13 = arith.constant 0 : index
    %13 = vector.load %arg20[%c16, %c0_13] : memref<72x64xf32, #tpu.memory_space<vmem>>, vector<8x64xf32>
    tpu.vector_store %arg20[%c16, %c0_13], %12 {strides = array<i32>} : memref<72x64xf32, #tpu.memory_space<vmem>>, vector<8x64xf32>,
    %c3 = arith.constant 3 : index
    %c0_14 = arith.constant 0 : index
    %c0_15 = arith.constant 0 : index
    %14 = vector.load %arg1[%c3, %c0_14, %c0_15] : memref<9x256x64xbf16, #tpu.memory_space<vmem>>, vector<1x256x64xbf16>
    %15 = vector.shape_cast %14 : vector<1x256x64xbf16> to vector<256x64xbf16>
    %cst_16 = arith.constant dense<0.000000e+00> : vector<8x64xf32>
    %16 = tpu.matmul %1, %15, %cst_16 {dimension_numbers = #tpu.dot_dimension_numbers<[1], [0], [0], [1], [0, 0, 1, 1], [], []>} : vector<8x256xbf16>, vector<256x64xbf16>, vector<8x64xf32> -> vector<8x64xf32>
    %c24 = arith.constant 24 : index
    %c0_17 = arith.constant 0 : index
    %17 = vector.load %arg20[%c24, %c0_17] : memref<72x64xf32, #tpu.memory_space<vmem>>, vector<8x64xf32>
    tpu.vector_store %arg20[%c24, %c0_17], %16 {strides = array<i32>} : memref<72x64xf32, #tpu.memory_space<vmem>>, vector<8x64xf32>,
    %c4 = arith.constant 4 : index
    %c0_18 = arith.constant 0 : index
    %c0_19 = arith.constant 0 : index
    %18 = vector.load %arg1[%c4, %c0_18, %c0_19] : memref<9x256x64xbf16, #tpu.memory_space<vmem>>, vector<1x256x64xbf16>
    %19 = vector.shape_cast %18 : vector<1x256x64xbf16> to vector<256x64xbf16>
    %cst_20 = arith.constant dense<0.000000e+00> : vector<8x64xf32>
    %20 = tpu.matmul %1, %19, %cst_20 {dimension_numbers = #tpu.dot_dimension_numbers<[1], [0], [0], [1], [0, 0, 1, 1], [], []>} : vector<8x256xbf16>, vector<256x64xbf16>, vector<8x64xf32> -> vector<8x64xf32>
    %c32 = arith.constant 32 : index
    %c0_21 = arith.constant 0 : index
    %21 = vector.load %arg20[%c32, %c0_21] : memref<72x64xf32, #tpu.memory_space<vmem>>, vector<8x64xf32>
    tpu.vector_store %arg20[%c32, %c0_21], %20 {strides = array<i32>} : memref<72x64xf32, #tpu.memory_space<vmem>>, vector<8x64xf32>,
    %c5 = arith.constant 5 : index
    %c0_22 = arith.constant 0 : index
    %c0_23 = arith.constant 0 : index
    %22 = vector.load %arg1[%c5, %c0_22, %c0_23] : memref<9x256x64xbf16, #tpu.memory_space<vmem>>, vector<1x256x64xbf16>
    %23 = vector.shape_cast %22 : vector<1x256x64xbf16> to vector<256x64xbf16>
    %cst_24 = arith.constant dense<0.000000e+00> : vector<8x64xf32>
    %24 = tpu.matmul %1, %23, %cst_24 {dimension_numbers = #tpu.dot_dimension_numbers<[1], [0], [0], [1], [0, 0, 1, 1], [], []>} : vector<8x256xbf16>, vector<256x64xbf16>, vector<8x64xf32> -> vector<8x64xf32>
    %c40 = arith.constant 40 : index
    %c0_25 = arith.constant 0 : index
    %25 = vector.load %arg20[%c40, %c0_25] : memref<72x64xf32, #tpu.memory_space<vmem>>, vector<8x64xf32>
    tpu.vector_store %arg20[%c40, %c0_25], %24 {strides = array<i32>} : memref<72x64xf32, #tpu.memory_space<vmem>>, vector<8x64xf32>,
    %c6 = arith.constant 6 : index
    %c0_26 = arith.constant 0 : index
    %c0_27 = arith.constant 0 : index
    %26 = vector.load %arg1[%c6, %c0_26, %c0_27] : memref<9x256x64xbf16, #tpu.memory_space<vmem>>, vector<1x256x64xbf16>
    %27 = vector.shape_cast %26 : vector<1x256x64xbf16> to vector<256x64xbf16>
    %cst_28 = arith.constant dense<0.000000e+00> : vector<8x64xf32>
    %28 = tpu.matmul %1, %27, %cst_28 {dimension_numbers = #tpu.dot_dimension_numbers<[1], [0], [0], [1], [0, 0, 1, 1], [], []>} : vector<8x256xbf16>, vector<256x64xbf16>, vector<8x64xf32> -> vector<8x64xf32>
    %c48 = arith.constant 48 : index
    %c0_29 = arith.constant 0 : index
    %29 = vector.load %arg20[%c48, %c0_29] : memref<72x64xf32, #tpu.memory_space<vmem>>, vector<8x64xf32>
    tpu.vector_store %arg20[%c48, %c0_29], %28 {strides = array<i32>} : memref<72x64xf32, #tpu.memory_space<vmem>>, vector<8x64xf32>,
    %c7 = arith.constant 7 : index
    %c0_30 = arith.constant 0 : index
    %c0_31 = arith.constant 0 : index
    %30 = vector.load %arg1[%c7, %c0_30, %c0_31] : memref<9x256x64xbf16, #tpu.memory_space<vmem>>, vector<1x256x64xbf16>
    %31 = vector.shape_cast %30 : vector<1x256x64xbf16> to vector<256x64xbf16>
    %cst_32 = arith.constant dense<0.000000e+00> : vector<8x64xf32>
    %32 = tpu.matmul %1, %31, %cst_32 {dimension_numbers = #tpu.dot_dimension_numbers<[1], [0], [0], [1], [0, 0, 1, 1], [], []>} : vector<8x256xbf16>, vector<256x64xbf16>, vector<8x64xf32> -> vector<8x64xf32>
    %c56 = arith.constant 56 : index
    %c0_33 = arith.constant 0 : index
    %33 = vector.load %arg20[%c56, %c0_33] : memref<72x64xf32, #tpu.memory_space<vmem>>, vector<8x64xf32>
    tpu.vector_store %arg20[%c56, %c0_33], %32 {strides = array<i32>} : memref<72x64xf32, #tpu.memory_space<vmem>>, vector<8x64xf32>,
    %c8_34 = arith.constant 8 : index
    %c0_35 = arith.constant 0 : index
    %c0_36 = arith.constant 0 : index
    %34 = vector.load %arg1[%c8_34, %c0_35, %c0_36] : memref<9x256x64xbf16, #tpu.memory_space<vmem>>, vector<1x256x64xbf16>
    %35 = vector.shape_cast %34 : vector<1x256x64xbf16> to vector<256x64xbf16>
    %cst_37 = arith.constant dense<0.000000e+00> : vector<8x64xf32>
    %36 = tpu.matmul %1, %35, %cst_37 {dimension_numbers = #tpu.dot_dimension_numbers<[1], [0], [0], [1], [0, 0, 1, 1], [], []>} : vector<8x256xbf16>, vector<256x64xbf16>, vector<8x64xf32> -> vector<8x64xf32>
    %c64 = arith.constant 64 : index
    %c0_38 = arith.constant 0 : index
    %37 = vector.load %arg20[%c64, %c0_38] : memref<72x64xf32, #tpu.memory_space<vmem>>, vector<8x64xf32>
    tpu.vector_store %arg20[%c64, %c0_38], %36 {strides = array<i32>} : memref<72x64xf32, #tpu.memory_space<vmem>>, vector<8x64xf32>,
    %c0_39 = arith.constant 0 : index
    %c0_40 = arith.constant 0 : index
    %38 = vector.load %arg4[%c0_39, %c0_40] : memref<16x72xf32, #tpu.memory_space<vmem>>, vector<16x72xf32>
    %c0_41 = arith.constant 0 : index
    %c0_42 = arith.constant 0 : index
    %39 = vector.load %arg20[%c0_41, %c0_42] : memref<72x64xf32, #tpu.memory_space<vmem>>, vector<72x64xf32>
    %cst_43 = arith.constant dense<0.000000e+00> : vector<16x64xf32>
    %40 = tpu.matmul %38, %39, %cst_43 {dimension_numbers = #tpu.dot_dimension_numbers<[1], [0], [0], [1], [0, 0, 1, 1], [], []>} : vector<16x72xf32>, vector<72x64xf32>, vector<16x64xf32> -> vector<16x64xf32>
    %c0_44 = arith.constant 0 : index
    %c0_45 = arith.constant 0 : index
    %41 = vector.load %arg5[%c0_44, %c0_45] : memref<16x1xf32, #tpu.memory_space<vmem>>, vector<16x1xf32>
    %42 = vector.broadcast %41 : vector<16x1xf32> to vector<16x64xf32>
    %43 = arith.addf %40, %42 : vector<16x64xf32>
    %cst_46 = arith.constant 0.000000e+00 : f32
    %44 = vector.broadcast %cst_46 : f32 to vector<16x64xf32>
    %45 = arith.maximumf %43, %44 : vector<16x64xf32>
    %46 = arith.truncf %45 : vector<16x64xf32> to vector<16x64xbf16>
    %c0_47 = arith.constant 0 : index
    %c0_48 = arith.constant 0 : index
    %c0_49 = arith.constant 0 : index
    %47 = vector.load %arg2[%c0_47, %c0_48, %c0_49] : memref<9x64x16xbf16, #tpu.memory_space<vmem>>, vector<1x64x16xbf16>
    %48 = vector.shape_cast %47 : vector<1x64x16xbf16> to vector<64x16xbf16>
    %cst_50 = arith.constant dense<0.000000e+00> : vector<16x16xf32>
    %49 = tpu.matmul %46, %48, %cst_50 {dimension_numbers = #tpu.dot_dimension_numbers<[1], [0], [0], [1], [0, 0, 1, 1], [], []>} : vector<16x64xbf16>, vector<64x16xbf16>, vector<16x16xf32> -> vector<16x16xf32>
    %c0_51 = arith.constant 0 : index
    %c0_52 = arith.constant 0 : index
    %50 = vector.load %arg21[%c0_51, %c0_52] : memref<144x16xf32, #tpu.memory_space<vmem>>, vector<16x16xf32>
    tpu.vector_store %arg21[%c0_51, %c0_52], %49 {strides = array<i32>} : memref<144x16xf32, #tpu.memory_space<vmem>>, vector<16x16xf32>,
    %c1_53 = arith.constant 1 : index
    %c0_54 = arith.constant 0 : index
    %c0_55 = arith.constant 0 : index
    %51 = vector.load %arg2[%c1_53, %c0_54, %c0_55] : memref<9x64x16xbf16, #tpu.memory_space<vmem>>, vector<1x64x16xbf16>
    %52 = vector.shape_cast %51 : vector<1x64x16xbf16> to vector<64x16xbf16>
    %cst_56 = arith.constant dense<0.000000e+00> : vector<16x16xf32>
    %53 = tpu.matmul %46, %52, %cst_56 {dimension_numbers = #tpu.dot_dimension_numbers<[1], [0], [0], [1], [0, 0, 1, 1], [], []>} : vector<16x64xbf16>, vector<64x16xbf16>, vector<16x16xf32> -> vector<16x16xf32>
    %c16_57 = arith.constant 16 : index
    %c0_58 = arith.constant 0 : index
    %54 = vector.load %arg21[%c16_57, %c0_58] : memref<144x16xf32, #tpu.memory_space<vmem>>, vector<16x16xf32>
    tpu.vector_store %arg21[%c16_57, %c0_58], %53 {strides = array<i32>} : memref<144x16xf32, #tpu.memory_space<vmem>>, vector<16x16xf32>,
    %c2_59 = arith.constant 2 : index
    %c0_60 = arith.constant 0 : index
    %c0_61 = arith.constant 0 : index
    %55 = vector.load %arg2[%c2_59, %c0_60, %c0_61] : memref<9x64x16xbf16, #tpu.memory_space<vmem>>, vector<1x64x16xbf16>
    %56 = vector.shape_cast %55 : vector<1x64x16xbf16> to vector<64x16xbf16>
    %cst_62 = arith.constant dense<0.000000e+00> : vector<16x16xf32>
    %57 = tpu.matmul %46, %56, %cst_62 {dimension_numbers = #tpu.dot_dimension_numbers<[1], [0], [0], [1], [0, 0, 1, 1], [], []>} : vector<16x64xbf16>, vector<64x16xbf16>, vector<16x16xf32> -> vector<16x16xf32>
    %c32_63 = arith.constant 32 : index
    %c0_64 = arith.constant 0 : index
    %58 = vector.load %arg21[%c32_63, %c0_64] : memref<144x16xf32, #tpu.memory_space<vmem>>, vector<16x16xf32>
    tpu.vector_store %arg21[%c32_63, %c0_64], %57 {strides = array<i32>} : memref<144x16xf32, #tpu.memory_space<vmem>>, vector<16x16xf32>,
    %c3_65 = arith.constant 3 : index
    %c0_66 = arith.constant 0 : index
    %c0_67 = arith.constant 0 : index
    %59 = vector.load %arg2[%c3_65, %c0_66, %c0_67] : memref<9x64x16xbf16, #tpu.memory_space<vmem>>, vector<1x64x16xbf16>
    %60 = vector.shape_cast %59 : vector<1x64x16xbf16> to vector<64x16xbf16>
    %cst_68 = arith.constant dense<0.000000e+00> : vector<16x16xf32>
    %61 = tpu.matmul %46, %60, %cst_68 {dimension_numbers = #tpu.dot_dimension_numbers<[1], [0], [0], [1], [0, 0, 1, 1], [], []>} : vector<16x64xbf16>, vector<64x16xbf16>, vector<16x16xf32> -> vector<16x16xf32>
    %c48_69 = arith.constant 48 : index
    %c0_70 = arith.constant 0 : index
    %62 = vector.load %arg21[%c48_69, %c0_70] : memref<144x16xf32, #tpu.memory_space<vmem>>, vector<16x16xf32>
    tpu.vector_store %arg21[%c48_69, %c0_70], %61 {strides = array<i32>} : memref<144x16xf32, #tpu.memory_space<vmem>>, vector<16x16xf32>,
    %c4_71 = arith.constant 4 : index
    %c0_72 = arith.constant 0 : index
    %c0_73 = arith.constant 0 : index
    %63 = vector.load %arg2[%c4_71, %c0_72, %c0_73] : memref<9x64x16xbf16, #tpu.memory_space<vmem>>, vector<1x64x16xbf16>
    %64 = vector.shape_cast %63 : vector<1x64x16xbf16> to vector<64x16xbf16>
    %cst_74 = arith.constant dense<0.000000e+00> : vector<16x16xf32>
    %65 = tpu.matmul %46, %64, %cst_74 {dimension_numbers = #tpu.dot_dimension_numbers<[1], [0], [0], [1], [0, 0, 1, 1], [], []>} : vector<16x64xbf16>, vector<64x16xbf16>, vector<16x16xf32> -> vector<16x16xf32>
    %c64_75 = arith.constant 64 : index
    %c0_76 = arith.constant 0 : index
    %66 = vector.load %arg21[%c64_75, %c0_76] : memref<144x16xf32, #tpu.memory_space<vmem>>, vector<16x16xf32>
    tpu.vector_store %arg21[%c64_75, %c0_76], %65 {strides = array<i32>} : memref<144x16xf32, #tpu.memory_space<vmem>>, vector<16x16xf32>,
    %c5_77 = arith.constant 5 : index
    %c0_78 = arith.constant 0 : index
    %c0_79 = arith.constant 0 : index
    %67 = vector.load %arg2[%c5_77, %c0_78, %c0_79] : memref<9x64x16xbf16, #tpu.memory_space<vmem>>, vector<1x64x16xbf16>
    %68 = vector.shape_cast %67 : vector<1x64x16xbf16> to vector<64x16xbf16>
    %cst_80 = arith.constant dense<0.000000e+00> : vector<16x16xf32>
    %69 = tpu.matmul %46, %68, %cst_80 {dimension_numbers = #tpu.dot_dimension_numbers<[1], [0], [0], [1], [0, 0, 1, 1], [], []>} : vector<16x64xbf16>, vector<64x16xbf16>, vector<16x16xf32> -> vector<16x16xf32>
    %c80 = arith.constant 80 : index
    %c0_81 = arith.constant 0 : index
    %70 = vector.load %arg21[%c80, %c0_81] : memref<144x16xf32, #tpu.memory_space<vmem>>, vector<16x16xf32>
    tpu.vector_store %arg21[%c80, %c0_81], %69 {strides = array<i32>} : memref<144x16xf32, #tpu.memory_space<vmem>>, vector<16x16xf32>,
    %c6_82 = arith.constant 6 : index
    %c0_83 = arith.constant 0 : index
    %c0_84 = arith.constant 0 : index
    %71 = vector.load %arg2[%c6_82, %c0_83, %c0_84] : memref<9x64x16xbf16, #tpu.memory_space<vmem>>, vector<1x64x16xbf16>
    %72 = vector.shape_cast %71 : vector<1x64x16xbf16> to vector<64x16xbf16>
    %cst_85 = arith.constant dense<0.000000e+00> : vector<16x16xf32>
    %73 = tpu.matmul %46, %72, %cst_85 {dimension_numbers = #tpu.dot_dimension_numbers<[1], [0], [0], [1], [0, 0, 1, 1], [], []>} : vector<16x64xbf16>, vector<64x16xbf16>, vector<16x16xf32> -> vector<16x16xf32>
    %c96 = arith.constant 96 : index
    %c0_86 = arith.constant 0 : index
    %74 = vector.load %arg21[%c96, %c0_86] : memref<144x16xf32, #tpu.memory_space<vmem>>, vector<16x16xf32>
    tpu.vector_store %arg21[%c96, %c0_86], %73 {strides = array<i32>} : memref<144x16xf32, #tpu.memory_space<vmem>>, vector<16x16xf32>,
    %c7_87 = arith.constant 7 : index
    %c0_88 = arith.constant 0 : index
    %c0_89 = arith.constant 0 : index
    %75 = vector.load %arg2[%c7_87, %c0_88, %c0_89] : memref<9x64x16xbf16, #tpu.memory_space<vmem>>, vector<1x64x16xbf16>
    %76 = vector.shape_cast %75 : vector<1x64x16xbf16> to vector<64x16xbf16>
    %cst_90 = arith.constant dense<0.000000e+00> : vector<16x16xf32>
    %77 = tpu.matmul %46, %76, %cst_90 {dimension_numbers = #tpu.dot_dimension_numbers<[1], [0], [0], [1], [0, 0, 1, 1], [], []>} : vector<16x64xbf16>, vector<64x16xbf16>, vector<16x16xf32> -> vector<16x16xf32>
    %c112 = arith.constant 112 : index
    %c0_91 = arith.constant 0 : index
    %78 = vector.load %arg21[%c112, %c0_91] : memref<144x16xf32, #tpu.memory_space<vmem>>, vector<16x16xf32>
    tpu.vector_store %arg21[%c112, %c0_91], %77 {strides = array<i32>} : memref<144x16xf32, #tpu.memory_space<vmem>>, vector<16x16xf32>,
    %c8_92 = arith.constant 8 : index
    %c0_93 = arith.constant 0 : index
    %c0_94 = arith.constant 0 : index
    %79 = vector.load %arg2[%c8_92, %c0_93, %c0_94] : memref<9x64x16xbf16, #tpu.memory_space<vmem>>, vector<1x64x16xbf16>
    %80 = vector.shape_cast %79 : vector<1x64x16xbf16> to vector<64x16xbf16>
    %cst_95 = arith.constant dense<0.000000e+00> : vector<16x16xf32>
    %81 = tpu.matmul %46, %80, %cst_95 {dimension_numbers = #tpu.dot_dimension_numbers<[1], [0], [0], [1], [0, 0, 1, 1], [], []>} : vector<16x64xbf16>, vector<64x16xbf16>, vector<16x16xf32> -> vector<16x16xf32>
    %c128 = arith.constant 128 : index
    %c0_96 = arith.constant 0 : index
    %82 = vector.load %arg21[%c128, %c0_96] : memref<144x16xf32, #tpu.memory_space<vmem>>, vector<16x16xf32>
    tpu.vector_store %arg21[%c128, %c0_96], %81 {strides = array<i32>} : memref<144x16xf32, #tpu.memory_space<vmem>>, vector<16x16xf32>,
    %c0_97 = arith.constant 0 : index
    %c0_98 = arith.constant 0 : index
    %83 = vector.load %arg6[%c0_97, %c0_98] : memref<32x144xf32, #tpu.memory_space<vmem>>, vector<32x144xf32>
    %c0_99 = arith.constant 0 : index
    %c0_100 = arith.constant 0 : index
    %84 = vector.load %arg21[%c0_99, %c0_100] : memref<144x16xf32, #tpu.memory_space<vmem>>, vector<144x16xf32>
    %cst_101 = arith.constant dense<0.000000e+00> : vector<32x16xf32>
    %85 = tpu.matmul %83, %84, %cst_101 {dimension_numbers = #tpu.dot_dimension_numbers<[1], [0], [0], [1], [0, 0, 1, 1], [], []>} : vector<32x144xf32>, vector<144x16xf32>, vector<32x16xf32> -> vector<32x16xf32>
    %c0_102 = arith.constant 0 : index
    %c0_103 = arith.constant 0 : index
    %86 = vector.load %arg7[%c0_102, %c0_103] : memref<32x1xf32, #tpu.memory_space<vmem>>, vector<32x1xf32>
    %87 = vector.broadcast %86 : vector<32x1xf32> to vector<32x16xf32>
    %88 = arith.addf %85, %87 : vector<32x16xf32>
    %cst_104 = arith.constant 0.000000e+00 : f32
    %89 = vector.broadcast %cst_104 : f32 to vector<32x16xf32>
    %90 = arith.maximumf %88, %89 : vector<32x16xf32>
    %91 = arith.truncf %90 : vector<32x16xf32> to vector<32x16xbf16>
    %c0_105 = arith.constant 0 : index
    %c0_106 = arith.constant 0 : index
    %c0_107 = arith.constant 0 : index
    %92 = vector.load %arg3[%c0_105, %c0_106, %c0_107] : memref<9x16x4xbf16, #tpu.memory_space<vmem>>, vector<1x16x4xbf16>
    %93 = vector.shape_cast %92 : vector<1x16x4xbf16> to vector<16x4xbf16>
    %cst_108 = arith.constant dense<0.000000e+00> : vector<32x4xf32>
    %94 = tpu.matmul %91, %93, %cst_108 {dimension_numbers = #tpu.dot_dimension_numbers<[1], [0], [0], [1], [0, 0, 1, 1], [], []>} : vector<32x16xbf16>, vector<16x4xbf16>, vector<32x4xf32> -> vector<32x4xf32>
    %c0_109 = arith.constant 0 : index
    %c0_110 = arith.constant 0 : index
    %95 = vector.load %arg22[%c0_109, %c0_110] : memref<288x4xf32, #tpu.memory_space<vmem>>, vector<32x4xf32>
    tpu.vector_store %arg22[%c0_109, %c0_110], %94 {strides = array<i32>} : memref<288x4xf32, #tpu.memory_space<vmem>>, vector<32x4xf32>,
    %c1_111 = arith.constant 1 : index
    %c0_112 = arith.constant 0 : index
    %c0_113 = arith.constant 0 : index
    %96 = vector.load %arg3[%c1_111, %c0_112, %c0_113] : memref<9x16x4xbf16, #tpu.memory_space<vmem>>, vector<1x16x4xbf16>
    %97 = vector.shape_cast %96 : vector<1x16x4xbf16> to vector<16x4xbf16>
    %cst_114 = arith.constant dense<0.000000e+00> : vector<32x4xf32>
    %98 = tpu.matmul %91, %97, %cst_114 {dimension_numbers = #tpu.dot_dimension_numbers<[1], [0], [0], [1], [0, 0, 1, 1], [], []>} : vector<32x16xbf16>, vector<16x4xbf16>, vector<32x4xf32> -> vector<32x4xf32>
    %c32_115 = arith.constant 32 : index
    %c0_116 = arith.constant 0 : index
    %99 = vector.load %arg22[%c32_115, %c0_116] : memref<288x4xf32, #tpu.memory_space<vmem>>, vector<32x4xf32>
    tpu.vector_store %arg22[%c32_115, %c0_116], %98 {strides = array<i32>} : memref<288x4xf32, #tpu.memory_space<vmem>>, vector<32x4xf32>,
    %c2_117 = arith.constant 2 : index
    %c0_118 = arith.constant 0 : index
    %c0_119 = arith.constant 0 : index
    %100 = vector.load %arg3[%c2_117, %c0_118, %c0_119] : memref<9x16x4xbf16, #tpu.memory_space<vmem>>, vector<1x16x4xbf16>
    %101 = vector.shape_cast %100 : vector<1x16x4xbf16> to vector<16x4xbf16>
    %cst_120 = arith.constant dense<0.000000e+00> : vector<32x4xf32>
    %102 = tpu.matmul %91, %101, %cst_120 {dimension_numbers = #tpu.dot_dimension_numbers<[1], [0], [0], [1], [0, 0, 1, 1], [], []>} : vector<32x16xbf16>, vector<16x4xbf16>, vector<32x4xf32> -> vector<32x4xf32>
    %c64_121 = arith.constant 64 : index
    %c0_122 = arith.constant 0 : index
    %103 = vector.load %arg22[%c64_121, %c0_122] : memref<288x4xf32, #tpu.memory_space<vmem>>, vector<32x4xf32>
    tpu.vector_store %arg22[%c64_121, %c0_122], %102 {strides = array<i32>} : memref<288x4xf32, #tpu.memory_space<vmem>>, vector<32x4xf32>,
    %c3_123 = arith.constant 3 : index
    %c0_124 = arith.constant 0 : index
    %c0_125 = arith.constant 0 : index
    %104 = vector.load %arg3[%c3_123, %c0_124, %c0_125] : memref<9x16x4xbf16, #tpu.memory_space<vmem>>, vector<1x16x4xbf16>
    %105 = vector.shape_cast %104 : vector<1x16x4xbf16> to vector<16x4xbf16>
    %cst_126 = arith.constant dense<0.000000e+00> : vector<32x4xf32>
    %106 = tpu.matmul %91, %105, %cst_126 {dimension_numbers = #tpu.dot_dimension_numbers<[1], [0], [0], [1], [0, 0, 1, 1], [], []>} : vector<32x16xbf16>, vector<16x4xbf16>, vector<32x4xf32> -> vector<32x4xf32>
    %c96_127 = arith.constant 96 : index
    %c0_128 = arith.constant 0 : index
    %107 = vector.load %arg22[%c96_127, %c0_128] : memref<288x4xf32, #tpu.memory_space<vmem>>, vector<32x4xf32>
    tpu.vector_store %arg22[%c96_127, %c0_128], %106 {strides = array<i32>} : memref<288x4xf32, #tpu.memory_space<vmem>>, vector<32x4xf32>,
    %c4_129 = arith.constant 4 : index
    %c0_130 = arith.constant 0 : index
    %c0_131 = arith.constant 0 : index
    %108 = vector.load %arg3[%c4_129, %c0_130, %c0_131] : memref<9x16x4xbf16, #tpu.memory_space<vmem>>, vector<1x16x4xbf16>
    %109 = vector.shape_cast %108 : vector<1x16x4xbf16> to vector<16x4xbf16>
    %cst_132 = arith.constant dense<0.000000e+00> : vector<32x4xf32>
    %110 = tpu.matmul %91, %109, %cst_132 {dimension_numbers = #tpu.dot_dimension_numbers<[1], [0], [0], [1], [0, 0, 1, 1], [], []>} : vector<32x16xbf16>, vector<16x4xbf16>, vector<32x4xf32> -> vector<32x4xf32>
    %c128_133 = arith.constant 128 : index
    %c0_134 = arith.constant 0 : index
    %111 = vector.load %arg22[%c128_133, %c0_134] : memref<288x4xf32, #tpu.memory_space<vmem>>, vector<32x4xf32>
    tpu.vector_store %arg22[%c128_133, %c0_134], %110 {strides = array<i32>} : memref<288x4xf32, #tpu.memory_space<vmem>>, vector<32x4xf32>,
    %c5_135 = arith.constant 5 : index
    %c0_136 = arith.constant 0 : index
    %c0_137 = arith.constant 0 : index
    %112 = vector.load %arg3[%c5_135, %c0_136, %c0_137] : memref<9x16x4xbf16, #tpu.memory_space<vmem>>, vector<1x16x4xbf16>
    %113 = vector.shape_cast %112 : vector<1x16x4xbf16> to vector<16x4xbf16>
    %cst_138 = arith.constant dense<0.000000e+00> : vector<32x4xf32>
    %114 = tpu.matmul %91, %113, %cst_138 {dimension_numbers = #tpu.dot_dimension_numbers<[1], [0], [0], [1], [0, 0, 1, 1], [], []>} : vector<32x16xbf16>, vector<16x4xbf16>, vector<32x4xf32> -> vector<32x4xf32>
    %c160 = arith.constant 160 : index
    %c0_139 = arith.constant 0 : index
    %115 = vector.load %arg22[%c160, %c0_139] : memref<288x4xf32, #tpu.memory_space<vmem>>, vector<32x4xf32>
    tpu.vector_store %arg22[%c160, %c0_139], %114 {strides = array<i32>} : memref<288x4xf32, #tpu.memory_space<vmem>>, vector<32x4xf32>,
    %c6_140 = arith.constant 6 : index
    %c0_141 = arith.constant 0 : index
    %c0_142 = arith.constant 0 : index
    %116 = vector.load %arg3[%c6_140, %c0_141, %c0_142] : memref<9x16x4xbf16, #tpu.memory_space<vmem>>, vector<1x16x4xbf16>
    %117 = vector.shape_cast %116 : vector<1x16x4xbf16> to vector<16x4xbf16>
    %cst_143 = arith.constant dense<0.000000e+00> : vector<32x4xf32>
    %118 = tpu.matmul %91, %117, %cst_143 {dimension_numbers = #tpu.dot_dimension_numbers<[1], [0], [0], [1], [0, 0, 1, 1], [], []>} : vector<32x16xbf16>, vector<16x4xbf16>, vector<32x4xf32> -> vector<32x4xf32>
    %c192 = arith.constant 192 : index
    %c0_144 = arith.constant 0 : index
    %119 = vector.load %arg22[%c192, %c0_144] : memref<288x4xf32, #tpu.memory_space<vmem>>, vector<32x4xf32>
    tpu.vector_store %arg22[%c192, %c0_144], %118 {strides = array<i32>} : memref<288x4xf32, #tpu.memory_space<vmem>>, vector<32x4xf32>,
    %c7_145 = arith.constant 7 : index
    %c0_146 = arith.constant 0 : index
    %c0_147 = arith.constant 0 : index
    %120 = vector.load %arg3[%c7_145, %c0_146, %c0_147] : memref<9x16x4xbf16, #tpu.memory_space<vmem>>, vector<1x16x4xbf16>
    %121 = vector.shape_cast %120 : vector<1x16x4xbf16> to vector<16x4xbf16>
    %cst_148 = arith.constant dense<0.000000e+00> : vector<32x4xf32>
    %122 = tpu.matmul %91, %121, %cst_148 {dimension_numbers = #tpu.dot_dimension_numbers<[1], [0], [0], [1], [0, 0, 1, 1], [], []>} : vector<32x16xbf16>, vector<16x4xbf16>, vector<32x4xf32> -> vector<32x4xf32>
    %c224 = arith.constant 224 : index
    %c0_149 = arith.constant 0 : index
    %123 = vector.load %arg22[%c224, %c0_149] : memref<288x4xf32, #tpu.memory_space<vmem>>, vector<32x4xf32>
    tpu.vector_store %arg22[%c224, %c0_149], %122 {strides = array<i32>} : memref<288x4xf32, #tpu.memory_space<vmem>>, vector<32x4xf32>,
    %c8_150 = arith.constant 8 : index
    %c0_151 = arith.constant 0 : index
    %c0_152 = arith.constant 0 : index
    %124 = vector.load %arg3[%c8_150, %c0_151, %c0_152] : memref<9x16x4xbf16, #tpu.memory_space<vmem>>, vector<1x16x4xbf16>
    %125 = vector.shape_cast %124 : vector<1x16x4xbf16> to vector<16x4xbf16>
    %cst_153 = arith.constant dense<0.000000e+00> : vector<32x4xf32>
    %126 = tpu.matmul %91, %125, %cst_153 {dimension_numbers = #tpu.dot_dimension_numbers<[1], [0], [0], [1], [0, 0, 1, 1], [], []>} : vector<32x16xbf16>, vector<16x4xbf16>, vector<32x4xf32> -> vector<32x4xf32>
    %c256 = arith.constant 256 : index
    %c0_154 = arith.constant 0 : index
    %127 = vector.load %arg22[%c256, %c0_154] : memref<288x4xf32, #tpu.memory_space<vmem>>, vector<32x4xf32>
    tpu.vector_store %arg22[%c256, %c0_154], %126 {strides = array<i32>} : memref<288x4xf32, #tpu.memory_space<vmem>>, vector<32x4xf32>,
    %c0_155 = arith.constant 0 : index
    %c0_156 = arith.constant 0 : index
    %128 = vector.load %arg8[%c0_155, %c0_156] : memref<64x288xf32, #tpu.memory_space<vmem>>, vector<64x288xf32>
    %c0_157 = arith.constant 0 : index
    %c0_158 = arith.constant 0 : index
    %129 = vector.load %arg22[%c0_157, %c0_158] : memref<288x4xf32, #tpu.memory_space<vmem>>, vector<288x4xf32>
    %cst_159 = arith.constant dense<0.000000e+00> : vector<64x4xf32>
    %130 = tpu.matmul %128, %129, %cst_159 {dimension_numbers = #tpu.dot_dimension_numbers<[1], [0], [0], [1], [0, 0, 1, 1], [], []>} : vector<64x288xf32>, vector<288x4xf32>, vector<64x4xf32> -> vector<64x4xf32>
    %c0_160 = arith.constant 0 : index
    %c0_161 = arith.constant 0 : index
    %131 = vector.load %arg9[%c0_160, %c0_161] : memref<64x1xf32, #tpu.memory_space<vmem>>, vector<64x1xf32>
    %132 = vector.broadcast %131 : vector<64x1xf32> to vector<64x4xf32>
    %133 = arith.addf %130, %132 : vector<64x4xf32>
    %cst_162 = arith.constant 0.000000e+00 : f32
    %134 = vector.broadcast %cst_162 : f32 to vector<64x4xf32>
    %135 = arith.maximumf %133, %134 : vector<64x4xf32>
    %c0_163 = arith.constant 0 : index
    %c0_164 = arith.constant 0 : index
    %136 = vector.load %arg10[%c0_163, %c0_164] : memref<16x16xf32, #tpu.memory_space<vmem>>, vector<16x16xf32>
    %cst_165 = arith.constant dense<0.000000e+00> : vector<16x64xf32>
    %137 = tpu.matmul %136, %45, %cst_165 {dimension_numbers = #tpu.dot_dimension_numbers<[1], [0], [0], [1], [0, 0, 1, 1], [], []>} : vector<16x16xf32>, vector<16x64xf32>, vector<16x64xf32> -> vector<16x64xf32>
    %c0_166 = arith.constant 0 : index
    %c0_167 = arith.constant 0 : index
    %138 = vector.load %arg11[%c0_166, %c0_167] : memref<16x1xf32, #tpu.memory_space<vmem>>, vector<16x1xf32>
    %139 = vector.broadcast %138 : vector<16x1xf32> to vector<16x64xf32>
    %140 = arith.addf %137, %139 : vector<16x64xf32>
    %c0_168 = arith.constant 0 : index
    %c0_169 = arith.constant 0 : index
    %141 = vector.load %arg12[%c0_168, %c0_169] : memref<16x32xf32, #tpu.memory_space<vmem>>, vector<16x32xf32>
    %cst_170 = arith.constant dense<0.000000e+00> : vector<16x16xf32>
    %142 = tpu.matmul %141, %90, %cst_170 {dimension_numbers = #tpu.dot_dimension_numbers<[1], [0], [0], [1], [0, 0, 1, 1], [], []>} : vector<16x32xf32>, vector<32x16xf32>, vector<16x16xf32> -> vector<16x16xf32>
    %c0_171 = arith.constant 0 : index
    %c0_172 = arith.constant 0 : index
    %143 = vector.load %arg13[%c0_171, %c0_172] : memref<16x1xf32, #tpu.memory_space<vmem>>, vector<16x1xf32>
    %144 = vector.broadcast %143 : vector<16x1xf32> to vector<16x16xf32>
    %145 = arith.addf %142, %144 : vector<16x16xf32>
    %c0_173 = arith.constant 0 : index
    %c0_174 = arith.constant 0 : index
    %146 = vector.load %arg14[%c0_173, %c0_174] : memref<16x64xf32, #tpu.memory_space<vmem>>, vector<16x64xf32>
    %cst_175 = arith.constant dense<0.000000e+00> : vector<16x4xf32>
    %147 = tpu.matmul %146, %135, %cst_175 {dimension_numbers = #tpu.dot_dimension_numbers<[1], [0], [0], [1], [0, 0, 1, 1], [], []>} : vector<16x64xf32>, vector<64x4xf32>, vector<16x4xf32> -> vector<16x4xf32>
    %c0_176 = arith.constant 0 : index
    %c0_177 = arith.constant 0 : index
    %148 = vector.load %arg15[%c0_176, %c0_177] : memref<16x1xf32, #tpu.memory_space<vmem>>, vector<16x1xf32>
    %149 = vector.broadcast %148 : vector<16x1xf32> to vector<16x4xf32>
    %150 = arith.addf %147, %149 : vector<16x4xf32>
    %c0_178 = arith.constant 0 : index
    %c0_179 = arith.constant 0 : index
    %151 = vector.load %arg17[%c0_178, %c0_179] : memref<16x64xf32, #tpu.memory_space<vmem>>, vector<16x64xf32>
    tpu.vector_store %arg17[%c0_178, %c0_179], %140 {strides = array<i32>} : memref<16x64xf32, #tpu.memory_space<vmem>>, vector<16x64xf32>,
    %c0_180 = arith.constant 0 : index
    %c0_181 = arith.constant 0 : index
    %152 = vector.load %arg18[%c0_180, %c0_181] : memref<16x16xf32, #tpu.memory_space<vmem>>, vector<16x16xf32>
    tpu.vector_store %arg18[%c0_180, %c0_181], %145 {strides = array<i32>} : memref<16x16xf32, #tpu.memory_space<vmem>>, vector<16x16xf32>,
    %c0_182 = arith.constant 0 : index
    %c0_183 = arith.constant 0 : index
    %153 = vector.load %arg19[%c0_182, %c0_183] : memref<16x4xf32, #tpu.memory_space<vmem>>, vector<16x4xf32>
    tpu.vector_store %arg19[%c0_182, %c0_183], %150 {strides = array<i32>} : memref<16x4xf32, #tpu.memory_space<vmem>>, vector<16x4xf32>,
    %cst_184 = arith.constant 0.000000e+00 : f32
    %154 = vector.broadcast %cst_184 : f32 to vector<16x64xf32>
    %155 = arith.subf %154, %140 : vector<16x64xf32>
    %156 = math.exp %155 : vector<16x64xf32>
    %cst_185 = arith.constant 1.000000e+00 : f32
    %157 = vector.broadcast %cst_185 : f32 to vector<16x64xf32>
    %158 = arith.addf %157, %156 : vector<16x64xf32>
    %159 = tpu.reciprocal %158 {approx = true} : vector<16x64xf32> -> vector<16x64xf32>
    %c0_186 = arith.constant 0 : index
    %c0_187 = arith.constant 0 : index
    %160 = vector.load %arg16[%c0_186, %c0_187] : memref<16x84xf32, #tpu.memory_space<vmem>>, vector<16x64xf32>
    tpu.vector_store %arg16[%c0_186, %c0_187], %159 {strides = array<i32>} : memref<16x84xf32, #tpu.memory_space<vmem>>, vector<16x64xf32>,
    %cst_188 = arith.constant 0.000000e+00 : f32
    %161 = vector.broadcast %cst_188 : f32 to vector<16x16xf32>
    %162 = arith.subf %161, %145 : vector<16x16xf32>
    %163 = math.exp %162 : vector<16x16xf32>
    %cst_189 = arith.constant 1.000000e+00 : f32
    %164 = vector.broadcast %cst_189 : f32 to vector<16x16xf32>
    %165 = arith.addf %164, %163 : vector<16x16xf32>
    %166 = tpu.reciprocal %165 {approx = true} : vector<16x16xf32> -> vector<16x16xf32>
    %c0_190 = arith.constant 0 : index
    %c64_191 = arith.constant 64 : index
    %167 = vector.load %arg16[%c0_190, %c64_191] : memref<16x84xf32, #tpu.memory_space<vmem>>, vector<16x16xf32>
    tpu.vector_store %arg16[%c0_190, %c64_191], %166 {strides = array<i32>} : memref<16x84xf32, #tpu.memory_space<vmem>>, vector<16x16xf32>,
    %cst_192 = arith.constant 0.000000e+00 : f32
    %168 = vector.broadcast %cst_192 : f32 to vector<16x4xf32>
    %169 = arith.subf %168, %150 : vector<16x4xf32>
    %170 = math.exp %169 : vector<16x4xf32>
    %cst_193 = arith.constant 1.000000e+00 : f32
    %171 = vector.broadcast %cst_193 : f32 to vector<16x4xf32>
    %172 = arith.addf %171, %170 : vector<16x4xf32>
    %173 = tpu.reciprocal %172 {approx = true} : vector<16x4xf32> -> vector<16x4xf32>
    %c0_194 = arith.constant 0 : index
    %c80_195 = arith.constant 80 : index
    %174 = vector.load %arg16[%c0_194, %c80_195] : memref<16x84xf32, #tpu.memory_space<vmem>>, vector<16x4xf32>
    tpu.vector_store %arg16[%c0_194, %c80_195], %173 {strides = array<i32>} : memref<16x84xf32, #tpu.memory_space<vmem>>, vector<16x4xf32>,
    return
  }
}

</mosaic_0001>

<bundles_post_ra>
// kernel: tile.43
= control target key start
LH: loop header
LB: loop body
LE: loop exit
PB: predicated region body
PF: predicated region fallthrough
CT: control target
= control target key end

     0   :  { %s22_s0 = inlined_call_operand.vmem [shape: f32[32], index: 0, kind: input, shape index: {}]   ;;  %s23_s1 = inlined_call_operand.vmem [shape: f32[2,32], index: 1, kind: output, shape index: {}]  }
   0x1   :  { %v4_v0 = vld [vmem:[%s22_s0] ss:$0 sm:$0xff] }
   0x2   :  { %5 = vst [vmem:[%s23_s1] sm:$0x3] %v4_v0 }

// kernel: tile.2
= control target key start
LH: loop header
LB: loop body
LE: loop exit
PB: predicated region body
PF: predicated region fallthrough
CT: control target
= control target key end

     0   :  { %s354_s8 = smov 125   ;;  %s355_s9 = smov 126   ;;  %vm7_vm0 = vcmask 7168   ;;  %s653_s0 = inlined_call_operand.vmem [shape: f32[2,32], index: 0, kind: input, shape index: {}]   ;;  %s654_s1 = inlined_call_operand.vmem [shape: f32[64,1], index: 1, kind: output, shape index: {}]  }
   0x1   :  { %v4_v0 = vld [vmem:[%s653_s0] sm:$0x3]  ;;  %s353_s0 = smov 127   ;;  %s356_s10 = smov 124  }
   0x2   :  { %5 = vst [vmem:[#allocation0] sm:$0x3] %v4_v0  ;;  %s357_s11 = smov 123   ;;  %s358_s12 = smov 122  }
   0x3   :  { %s359_s13 = smov 121   ;;  %s360_s14 = smov 120  }
   0x4   :  { %s361_s15 = smov 119   ;;  %s362_s16 = smov 118  }
   0x5   :  { %s363_s17 = smov 117   ;;  %s364_s18 = smov 116  }
   0x6   :  { %s365_s19 = smov 115   ;;  %s366_s20 = smov 114  }
   0x7   :  { %s367_s21 = smov 113   ;;  %s368_s22 = smov 112  }
   0x8   :  { %s369_s23 = smov 111   ;;  %s370_s24 = smov 110  }
   0x9   :  { %v11_v1 = vld [vmem:[#allocation0] sm:$0x3]   ;;  %s371_s25 = smov 109   ;;  %s372_s26 = smov 108  }
   0xa   :  { %v27_v2 = vld [vmem:[#allocation0] sm:$0x3]   ;;  %12 = vrot.lane.b32.xlu0 %v11_v1, %s353_s0  ;;  %s373_s27 = smov 107   ;;  %s374_s28 = smov 106  }
   0xb   :  { %28 = vrot.lane.b32.xlu1 %v27_v2, %s354_s8  ;;  %v19_v3 = vld [vmem:[#allocation0] sm:$0x3]   ;;  %s375_s29 = smov 105   ;;  %s376_s30 = smov 104  }
   0xc   :  { %v35_v4 = vld [vmem:[#allocation0] sm:$0x3]   ;;  %s377_s6 = smov 103   ;;  %s378_s7 = smov 102  }
   0xd   :  { %v43_v5 = vld [vmem:[#allocation0] sm:$0x3]   ;;  %s379_s0 = smov 101   ;;  %s380_s8 = smov 100  }
   0xe   :  { %20 = vrot.lane.b32.xlu0 %v19_v3, %s355_s9  ;;  %v51_v6 = vld [vmem:[#allocation0] sm:$0x3]   ;;  %s381_s9 = smov 99  }
   0xf   :  { %36 = vrot.lane.b32.xlu1 %v35_v4, %s356_s10  ;;  %v59_v7 = vld [vmem:[#allocation0] sm:$0x3]   ;;  %s382_s10 = smov 98  }
  0x10   :  { %v67_v8 = vld [vmem:[#allocation0] sm:$0x3]  }
  0x11   :  { %v75_v9 = vld [vmem:[#allocation0] sm:$0x3]  }
  0x12   :  { %44 = vrot.lane.b32.xlu0 %v43_v5, %s357_s11  ;;  %v83_v10 = vld [vmem:[#allocation0] sm:$0x3]   ;;  %s383_s11 = smov 97  }
  0x13   :  { %52 = vrot.lane.b32.xlu1 %v51_v6, %s358_s12  ;;  %v91_v11 = vld [vmem:[#allocation0] sm:$0x3]  }
  0x14   :  { %v99_v12 = vld [vmem:[#allocation0] sm:$0x3]  }
  0x15   :  { %v107_v13 = vld [vmem:[#allocation0] sm:$0x3]  }
  0x16   :  { %60 = vrot.lane.b32.xlu0 %v59_v7, %s359_s13  ;;  %v115_v14 = vld [vmem:[#allocation0] sm:$0x3]  }
  0x17   :  { %68 = vrot.lane.b32.xlu1 %v67_v8, %s360_s14  ;;  %v123_v15 = vld [vmem:[#allocation0] sm:$0x3]  }
  0x18   :  { %v131_v16 = vld [vmem:[#allocation0] sm:$0x3]  }
  0x19   :  { %v139_v17 = vld [vmem:[#allocation0] sm:$0x3]  }
  0x1a   :  { %76 = vrot.lane.b32.xlu0 %v75_v9, %s361_s15  ;;  %v147_v18 = vld [vmem:[#allocation0] sm:$0x3]  }
  0x1b   :  { %84 = vrot.lane.b32.xlu1 %v83_v10, %s362_s16  ;;  %v155_v19 = vld [vmem:[#allocation0] sm:$0x3]  }
  0x1c   :  { %v163_v20 = vld [vmem:[#allocation0] sm:$0x3]  }
  0x1d   :  { %v171_v21 = vld [vmem:[#allocation0] sm:$0x3]  }
  0x1e   :  { %92 = vrot.lane.b32.xlu0 %v91_v11, %s363_s17  ;;  %v179_v22 = vld [vmem:[#allocation0] sm:$0x3]  }
  0x1f   :  { %100 = vrot.lane.b32.xlu1 %v99_v12, %s364_s18  ;;  %v187_v23 = vld [vmem:[#allocation0] sm:$0x3]  }
  0x20   :  { %v195_v24 = vld [vmem:[#allocation0] sm:$0x3]  }
  0x21   :  { %v203_v25 = vld [vmem:[#allocation0] sm:$0x3]  }
  0x22   :  { %108 = vrot.lane.b32.xlu0 %v107_v13, %s365_s19  ;;  %v211_v26 = vld [vmem:[#allocation0] sm:$0x3]  }
  0x23   :  { %116 = vrot.lane.b32.xlu1 %v115_v14, %s366_s20  ;;  %v6_v27 = vld [vmem:[#allocation0] sm:$0x3]  }
  0x24   :  { %8 = vst.msk [vmem:[%s654_s1] sm:$0x1] %vm7_vm0, %v6_v27   ;;  %259 = vst.msk [vmem:[%s654_s1 + $0x1f] sm:$0x2] %vm7_vm0, %v6_v27   ;;  %v219_v28 = vld [vmem:[#allocation0] sm:$0x3]  }
  0x25   :  { %v227_v29 = vld [vmem:[#allocation0] sm:$0x3]  }
  0x26   :  { %124 = vrot.lane.b32.xlu0 %v123_v15, %s367_s21  ;;  %v235_v30 = vld [vmem:[#allocation0] sm:$0x3]  }
  0x27   :  { %132 = vrot.lane.b32.xlu1 %v131_v16, %s368_s22  ;;  %v243_v31 = vld [vmem:[#allocation0] sm:$0x3]  }
  0x28   :  { %v251_v32 = vld [vmem:[#allocation0] sm:$0x3]  }
  0x2a   :  { %140 = vrot.lane.b32.xlu0 %v139_v17, %s369_s23 }
  0x2b   :  { %148 = vrot.lane.b32.xlu1 %v147_v18, %s370_s24 }
  0x2e   :  { %156 = vrot.lane.b32.xlu0 %v155_v19, %s371_s25 }
  0x2f   :  { %164 = vrot.lane.b32.xlu1 %v163_v20, %s372_s26 }
  0x32   :  { %172 = vrot.lane.b32.xlu0 %v171_v21, %s373_s27 }
  0x33   :  { %180 = vrot.lane.b32.xlu1 %v179_v22, %s374_s28 }
  0x36   :  { %188 = vrot.lane.b32.xlu0 %v187_v23, %s375_s29 }
  0x37   :  { %196 = vrot.lane.b32.xlu1 %v195_v24, %s376_s30 }
  0x3a   :  { %204 = vrot.lane.b32.xlu0 %v203_v25, %s377_s6 }
  0x3b   :  { %212 = vrot.lane.b32.xlu1 %v211_v26, %s378_s7 }
  0x3e   :  { %220 = vrot.lane.b32.xlu0 %v219_v28, %s379_s0 }
  0x3f   :  { %228 = vrot.lane.b32.xlu1 %v227_v29, %s380_s8 }
  0x42   :  { %236 = vrot.lane.b32.xlu0 %v235_v30, %s381_s9 }
  0x43   :  { %244 = vrot.lane.b32.xlu1 %v243_v31, %s382_s10 }
  0x46   :  { %252 = vrot.lane.b32.xlu0 %v251_v32, %s383_s11 }
  0x7c   :  { %v13_v33 = vpop.permute.xlu0 %12  }
  0x7d   :  { %v29_v34 = vpop.permute.xlu1 %28   ;;  %260 = vst.msk [vmem:[%s654_s1 + $0x1] sm:$0x1] %vm7_vm0, %v13_v33   ;;  %261 = vst.msk [vmem:[%s654_s1 + $0x20] sm:$0x2] %vm7_vm0, %v13_v33  }
  0x7e   :  { %264 = vst.msk [vmem:[%s654_s1 + $0x3] sm:$0x1] %vm7_vm0, %v29_v34   ;;  %265 = vst.msk [vmem:[%s654_s1 + $0x22] sm:$0x2] %vm7_vm0, %v29_v34  }
  0x80   :  { %v21_v35 = vpop.permute.xlu0 %20  }
  0x81   :  { %v37_v36 = vpop.permute.xlu1 %36   ;;  %262 = vst.msk [vmem:[%s654_s1 + $0x2] sm:$0x1] %vm7_vm0, %v21_v35   ;;  %263 = vst.msk [vmem:[%s654_s1 + $0x21] sm:$0x2] %vm7_vm0, %v21_v35  }
  0x82   :  { %266 = vst.msk [vmem:[%s654_s1 + $0x4] sm:$0x1] %vm7_vm0, %v37_v36   ;;  %267 = vst.msk [vmem:[%s654_s1 + $0x23] sm:$0x2] %vm7_vm0, %v37_v36  }
  0x84   :  { %v45_v37 = vpop.permute.xlu0 %44  }
  0x85   :  { %v53_v38 = vpop.permute.xlu1 %52   ;;  %268 = vst.msk [vmem:[%s654_s1 + $0x5] sm:$0x1] %vm7_vm0, %v45_v37   ;;  %269 = vst.msk [vmem:[%s654_s1 + $0x24] sm:$0x2] %vm7_vm0, %v45_v37  }
  0x86   :  { %270 = vst.msk [vmem:[%s654_s1 + $0x6] sm:$0x1] %vm7_vm0, %v53_v38   ;;  %271 = vst.msk [vmem:[%s654_s1 + $0x25] sm:$0x2] %vm7_vm0, %v53_v38  }
  0x88   :  { %v61_v39 = vpop.permute.xlu0 %60  }
  0x89   :  { %v69_v40 = vpop.permute.xlu1 %68   ;;  %272 = vst.msk [vmem:[%s654_s1 + $0x7] sm:$0x1] %vm7_vm0, %v61_v39   ;;  %273 = vst.msk [vmem:[%s654_s1 + $0x26] sm:$0x2] %vm7_vm0, %v61_v39  }
  0x8a   :  { %274 = vst.msk [vmem:[%s654_s1 + $0x8] sm:$0x1] %vm7_vm0, %v69_v40   ;;  %275 = vst.msk [vmem:[%s654_s1 + $0x27] sm:$0x2] %vm7_vm0, %v69_v40  }
  0x8c   :  { %v77_v41 = vpop.permute.xlu0 %76  }
  0x8d   :  { %v85_v42 = vpop.permute.xlu1 %84   ;;  %276 = vst.msk [vmem:[%s654_s1 + $0x9] sm:$0x1] %vm7_vm0, %v77_v41   ;;  %277 = vst.msk [vmem:[%s654_s1 + $0x28] sm:$0x2] %vm7_vm0, %v77_v41  }
  0x8e   :  { %278 = vst.msk [vmem:[%s654_s1 + $0xa] sm:$0x1] %vm7_vm0, %v85_v42   ;;  %279 = vst.msk [vmem:[%s654_s1 + $0x29] sm:$0x2] %vm7_vm0, %v85_v42  }
  0x90   :  { %v93_v43 = vpop.permute.xlu0 %92  }
  0x91   :  { %v101_v44 = vpop.permute.xlu1 %100   ;;  %280 = vst.msk [vmem:[%s654_s1 + $0xb] sm:$0x1] %vm7_vm0, %v93_v43   ;;  %281 = vst.msk [vmem:[%s654_s1 + $0x2a] sm:$0x2] %vm7_vm0, %v93_v43  }
  0x92   :  { %282 = vst.msk [vmem:[%s654_s1 + $0xc] sm:$0x1] %vm7_vm0, %v101_v44   ;;  %283 = vst.msk [vmem:[%s654_s1 + $0x2b] sm:$0x2] %vm7_vm0, %v101_v44  }
  0x94   :  { %v109_v45 = vpop.permute.xlu0 %108  }
  0x95   :  { %v117_v46 = vpop.permute.xlu1 %116   ;;  %284 = vst.msk [vmem:[%s654_s1 + $0xd] sm:$0x1] %vm7_vm0, %v109_v45   ;;  %285 = vst.msk [vmem:[%s654_s1 + $0x2c] sm:$0x2] %vm7_vm0, %v109_v45  }
  0x96   :  { %286 = vst.msk [vmem:[%s654_s1 + $0xe] sm:$0x1] %vm7_vm0, %v117_v46   ;;  %287 = vst.msk [vmem:[%s654_s1 + $0x2d] sm:$0x2] %vm7_vm0, %v117_v46  }
  0x98   :  { %v125_v47 = vpop.permute.xlu0 %124  }
  0x99   :  { %v133_v48 = vpop.permute.xlu1 %132   ;;  %288 = vst.msk [vmem:[%s654_s1 + $0xf] sm:$0x1] %vm7_vm0, %v125_v47   ;;  %289 = vst.msk [vmem:[%s654_s1 + $0x2e] sm:$0x2] %vm7_vm0, %v125_v47  }
  0x9a   :  { %290 = vst.msk [vmem:[%s654_s1 + $0x10] sm:$0x1] %vm7_vm0, %v133_v48   ;;  %291 = vst.msk [vmem:[%s654_s1 + $0x2f] sm:$0x2] %vm7_vm0, %v133_v48  }
  0x9c   :  { %v141_v49 = vpop.permute.xlu0 %140  }
  0x9d   :  { %v149_v50 = vpop.permute.xlu1 %148   ;;  %292 = vst.msk [vmem:[%s654_s1 + $0x11] sm:$0x1] %vm7_vm0, %v141_v49   ;;  %293 = vst.msk [vmem:[%s654_s1 + $0x30] sm:$0x2] %vm7_vm0, %v141_v49  }
  0x9e   :  { %294 = vst.msk [vmem:[%s654_s1 + $0x12] sm:$0x1] %vm7_vm0, %v149_v50   ;;  %295 = vst.msk [vmem:[%s654_s1 + $0x31] sm:$0x2] %vm7_vm0, %v149_v50  }
  0xa0   :  { %v157_v51 = vpop.permute.xlu0 %156  }
  0xa1   :  { %v165_v52 = vpop.permute.xlu1 %164   ;;  %296 = vst.msk [vmem:[%s654_s1 + $0x13] sm:$0x1] %vm7_vm0, %v157_v51   ;;  %297 = vst.msk [vmem:[%s654_s1 + $0x32] sm:$0x2] %vm7_vm0, %v157_v51  }
  0xa2   :  { %298 = vst.msk [vmem:[%s654_s1 + $0x14] sm:$0x1] %vm7_vm0, %v165_v52   ;;  %299 = vst.msk [vmem:[%s654_s1 + $0x33] sm:$0x2] %vm7_vm0, %v165_v52  }
  0xa4   :  { %v173_v53 = vpop.permute.xlu0 %172  }
  0xa5   :  { %v181_v54 = vpop.permute.xlu1 %180   ;;  %300 = vst.msk [vmem:[%s654_s1 + $0x15] sm:$0x1] %vm7_vm0, %v173_v53   ;;  %301 = vst.msk [vmem:[%s654_s1 + $0x34] sm:$0x2] %vm7_vm0, %v173_v53  }
  0xa6   :  { %302 = vst.msk [vmem:[%s654_s1 + $0x16] sm:$0x1] %vm7_vm0, %v181_v54   ;;  %303 = vst.msk [vmem:[%s654_s1 + $0x35] sm:$0x2] %vm7_vm0, %v181_v54  }
  0xa8   :  { %v189_v55 = vpop.permute.xlu0 %188  }
  0xa9   :  { %v197_v56 = vpop.permute.xlu1 %196   ;;  %304 = vst.msk [vmem:[%s654_s1 + $0x17] sm:$0x1] %vm7_vm0, %v189_v55   ;;  %305 = vst.msk [vmem:[%s654_s1 + $0x36] sm:$0x2] %vm7_vm0, %v189_v55  }
  0xaa   :  { %306 = vst.msk [vmem:[%s654_s1 + $0x18] sm:$0x1] %vm7_vm0, %v197_v56   ;;  %307 = vst.msk [vmem:[%s654_s1 + $0x37] sm:$0x2] %vm7_vm0, %v197_v56  }
  0xac   :  { %v205_v57 = vpop.permute.xlu0 %204  }
  0xad   :  { %v213_v58 = vpop.permute.xlu1 %212   ;;  %308 = vst.msk [vmem:[%s654_s1 + $0x19] sm:$0x1] %vm7_vm0, %v205_v57   ;;  %309 = vst.msk [vmem:[%s654_s1 + $0x38] sm:$0x2] %vm7_vm0, %v205_v57  }
  0xae   :  { %310 = vst.msk [vmem:[%s654_s1 + $0x1a] sm:$0x1] %vm7_vm0, %v213_v58   ;;  %311 = vst.msk [vmem:[%s654_s1 + $0x39] sm:$0x2] %vm7_vm0, %v213_v58  }
  0xb0   :  { %v221_v59 = vpop.permute.xlu0 %220  }
  0xb1   :  { %v229_v60 = vpop.permute.xlu1 %228   ;;  %312 = vst.msk [vmem:[%s654_s1 + $0x1b] sm:$0x1] %vm7_vm0, %v221_v59   ;;  %313 = vst.msk [vmem:[%s654_s1 + $0x3a] sm:$0x2] %vm7_vm0, %v221_v59  }
  0xb2   :  { %314 = vst.msk [vmem:[%s654_s1 + $0x1c] sm:$0x1] %vm7_vm0, %v229_v60   ;;  %315 = vst.msk [vmem:[%s654_s1 + $0x3b] sm:$0x2] %vm7_vm0, %v229_v60  }
  0xb4   :  { %v237_v61 = vpop.permute.xlu0 %236  }
  0xb5   :  { %v245_v62 = vpop.permute.xlu1 %244   ;;  %316 = vst.msk [vmem:[%s654_s1 + $0x1d] sm:$0x1] %vm7_vm0, %v237_v61   ;;  %317 = vst.msk [vmem:[%s654_s1 + $0x3c] sm:$0x2] %vm7_vm0, %v237_v61  }
  0xb6   :  { %318 = vst.msk [vmem:[%s654_s1 + $0x1e] sm:$0x1] %vm7_vm0, %v245_v62   ;;  %319 = vst.msk [vmem:[%s654_s1 + $0x3d] sm:$0x2] %vm7_vm0, %v245_v62  }
  0xb8   :  { %v253_v63 = vpop.permute.xlu0 %252  }
  0xb9   :  { %320 = vst.msk [vmem:[%s654_s1 + $0x1f] sm:$0x1] %vm7_vm0, %v253_v63   ;;  %321 = vst.msk [vmem:[%s654_s1 + $0x3e] sm:$0x2] %vm7_vm0, %v253_v63  }

// kernel: tile.38
= control target key start
LH: loop header
LB: loop body
LE: loop exit
PB: predicated region body
PF: predicated region fallthrough
CT: control target
= control target key end

     0   :  { %s22_s0 = inlined_call_operand.vmem [shape: f32[16], index: 0, kind: input, shape index: {}]   ;;  %s23_s1 = inlined_call_operand.vmem [shape: f32[2,16], index: 1, kind: output, shape index: {}]  }
   0x1   :  { %v4_v0 = vld [vmem:[%s22_s0] ss:$0 sm:$0xff] }
   0x2   :  { %5 = vst [vmem:[%s23_s1] sm:$0x3] %v4_v0 }

// kernel: tile.1
= control target key start
LH: loop header
LB: loop body
LE: loop exit
PB: predicated region body
PF: predicated region fallthrough
CT: control target
= control target key end

     0   :  { %s130_s8 = smov 125   ;;  %s131_s9 = smov 126   ;;  %vm7_vm0 = vcmask 7168   ;;  %s221_s0 = inlined_call_operand.vmem [shape: f32[2,16], index: 0, kind: input, shape index: {}]   ;;  %s222_s1 = inlined_call_operand.vmem [shape: f32[32,1], index: 1, kind: output, shape index: {}]  }
   0x1   :  { %v4_v0 = vld [vmem:[%s221_s0] sm:$0x3]  ;;  %s129_s0 = smov 127   ;;  %s132_s10 = smov 124  }
   0x2   :  { %5 = vst [vmem:[#allocation0] sm:$0x3] %v4_v0  ;;  %s133_s11 = smov 123   ;;  %s134_s12 = smov 122  }
   0x3   :  { %s135_s13 = smov 121   ;;  %s136_s14 = smov 120  }
   0x4   :  { %s137_s17 = smov 119   ;;  %s138_s18 = smov 118  }
   0x5   :  { %s139_s19 = smov 117   ;;  %s140_s20 = smov 116  }
   0x6   :  { %s141_s21 = smov 115   ;;  %s142_s22 = smov 114  }
   0x7   :  { %s143_s23 = smov 113  }
   0x9   :  { %v9_v1 = vld [vmem:[#allocation0] sm:$0x3]  }
   0xa   :  { %v21_v2 = vld [vmem:[#allocation0] sm:$0x3]   ;;  %10 = vrot.lane.b32.xlu0 %v9_v1, %s129_s0 }
   0xb   :  { %22 = vrot.lane.b32.xlu1 %v21_v2, %s130_s8  ;;  %v15_v3 = vld [vmem:[#allocation0] sm:$0x3]  }
   0xc   :  { %v27_v4 = vld [vmem:[#allocation0] sm:$0x3]  }
   0xd   :  { %v33_v5 = vld [vmem:[#allocation0] sm:$0x3]  }
   0xe   :  { %16 = vrot.lane.b32.xlu0 %v15_v3, %s131_s9  ;;  %v39_v6 = vld [vmem:[#allocation0] sm:$0x3]  }
   0xf   :  { %28 = vrot.lane.b32.xlu1 %v27_v4, %s132_s10  ;;  %v45_v7 = vld [vmem:[#allocation0] sm:$0x3]  }
  0x10   :  { %v51_v8 = vld [vmem:[#allocation0] sm:$0x3]  }
  0x11   :  { %v57_v9 = vld [vmem:[#allocation0] sm:$0x3]  }
  0x12   :  { %34 = vrot.lane.b32.xlu0 %v33_v5, %s133_s11  ;;  %v63_v10 = vld [vmem:[#allocation0] sm:$0x3]  }
  0x13   :  { %40 = vrot.lane.b32.xlu1 %v39_v6, %s134_s12  ;;  %v6_v11 = vld [vmem:[#allocation0] sm:$0x3]  }
  0x14   :  { %8 = vst.msk [vmem:[%s222_s1] ss:$16 sm:$0x3] %vm7_vm0, %v6_v11   ;;  %v69_v12 = vld [vmem:[#allocation0] sm:$0x3]  }
  0x15   :  { %v75_v13 = vld [vmem:[#allocation0] sm:$0x3]  }
  0x16   :  { %46 = vrot.lane.b32.xlu0 %v45_v7, %s135_s13  ;;  %v81_v14 = vld [vmem:[#allocation0] sm:$0x3]  }
  0x17   :  { %52 = vrot.lane.b32.xlu1 %v51_v8, %s136_s14  ;;  %v87_v15 = vld [vmem:[#allocation0] sm:$0x3]  }
  0x18   :  { %v93_v16 = vld [vmem:[#allocation0] sm:$0x3]  }
  0x1a   :  { %58 = vrot.lane.b32.xlu0 %v57_v9, %s137_s17 }
  0x1b   :  { %64 = vrot.lane.b32.xlu1 %v63_v10, %s138_s18 }
  0x1e   :  { %70 = vrot.lane.b32.xlu0 %v69_v12, %s139_s19 }
  0x1f   :  { %76 = vrot.lane.b32.xlu1 %v75_v13, %s140_s20 }
  0x22   :  { %82 = vrot.lane.b32.xlu0 %v81_v14, %s141_s21 }
  0x23   :  { %88 = vrot.lane.b32.xlu1 %v87_v15, %s142_s22 }
  0x26   :  { %94 = vrot.lane.b32.xlu0 %v93_v16, %s143_s23 }
  0x7c   :  { %v11_v17 = vpop.permute.xlu0 %10  }
  0x7d   :  { %v23_v18 = vpop.permute.xlu1 %22   ;;  %99 = vst.msk [vmem:[%s222_s1 + $0x1] ss:$16 sm:$0x3] %vm7_vm0, %v11_v17  }
  0x7e   :  { %101 = vst.msk [vmem:[%s222_s1 + $0x3] ss:$16 sm:$0x3] %vm7_vm0, %v23_v18  }
  0x80   :  { %v17_v19 = vpop.permute.xlu0 %16  }
  0x81   :  { %v29_v20 = vpop.permute.xlu1 %28   ;;  %100 = vst.msk [vmem:[%s222_s1 + $0x2] ss:$16 sm:$0x3] %vm7_vm0, %v17_v19  }
  0x82   :  { %102 = vst.msk [vmem:[%s222_s1 + $0x4] ss:$16 sm:$0x3] %vm7_vm0, %v29_v20  }
  0x84   :  { %v35_v21 = vpop.permute.xlu0 %34  }
  0x85   :  { %v41_v22 = vpop.permute.xlu1 %40   ;;  %103 = vst.msk [vmem:[%s222_s1 + $0x5] ss:$16 sm:$0x3] %vm7_vm0, %v35_v21  }
  0x86   :  { %104 = vst.msk [vmem:[%s222_s1 + $0x6] ss:$16 sm:$0x3] %vm7_vm0, %v41_v22  }
  0x88   :  { %v47_v23 = vpop.permute.xlu0 %46  }
  0x89   :  { %v53_v24 = vpop.permute.xlu1 %52   ;;  %105 = vst.msk [vmem:[%s222_s1 + $0x7] ss:$16 sm:$0x3] %vm7_vm0, %v47_v23  }
  0x8a   :  { %106 = vst.msk [vmem:[%s222_s1 + $0x8] ss:$16 sm:$0x3] %vm7_vm0, %v53_v24  }
  0x8c   :  { %v59_v25 = vpop.permute.xlu0 %58  }
  0x8d   :  { %v65_v26 = vpop.permute.xlu1 %64   ;;  %107 = vst.msk [vmem:[%s222_s1 + $0x9] ss:$16 sm:$0x3] %vm7_vm0, %v59_v25  }
  0x8e   :  { %108 = vst.msk [vmem:[%s222_s1 + $0xa] ss:$16 sm:$0x3] %vm7_vm0, %v65_v26  }
  0x90   :  { %v71_v27 = vpop.permute.xlu0 %70  }
  0x91   :  { %v77_v28 = vpop.permute.xlu1 %76   ;;  %109 = vst.msk [vmem:[%s222_s1 + $0xb] ss:$16 sm:$0x3] %vm7_vm0, %v71_v27  }
  0x92   :  { %110 = vst.msk [vmem:[%s222_s1 + $0xc] ss:$16 sm:$0x3] %vm7_vm0, %v77_v28  }
  0x94   :  { %v83_v29 = vpop.permute.xlu0 %82  }
  0x95   :  { %v89_v30 = vpop.permute.xlu1 %88   ;;  %111 = vst.msk [vmem:[%s222_s1 + $0xd] ss:$16 sm:$0x3] %vm7_vm0, %v83_v29  }
  0x96   :  { %112 = vst.msk [vmem:[%s222_s1 + $0xe] ss:$16 sm:$0x3] %vm7_vm0, %v89_v30  }
  0x98   :  { %v95_v31 = vpop.permute.xlu0 %94  }
  0x99   :  { %113 = vst.msk [vmem:[%s222_s1 + $0xf] ss:$16 sm:$0x3] %vm7_vm0, %v95_v31  }

// kernel: tile.33
= control target key start
LH: loop header
LB: loop body
LE: loop exit
PB: predicated region body
PF: predicated region fallthrough
CT: control target
= control target key end

     0   :  { %s22_s0 = inlined_call_operand.vmem [shape: f32[8], index: 0, kind: input, shape index: {}]   ;;  %s23_s1 = inlined_call_operand.vmem [shape: f32[2,8], index: 1, kind: output, shape index: {}]  }
   0x1   :  { %v4_v0 = vld [vmem:[%s22_s0] ss:$0 sm:$0xff] }
   0x2   :  { %5 = vst [vmem:[%s23_s1] sm:$0x3] %v4_v0 }

// kernel: tile.0
= control target key start
LH: loop header
LB: loop body
LE: loop exit
PB: predicated region body
PF: predicated region fallthrough
CT: control target
= control target key end

     0   :  { %s66_s8 = smov 125   ;;  %vm7_vm0 = vcmask 7168   ;;  %s67_s11 = smov 126   ;;  %s117_s0 = inlined_call_operand.vmem [shape: f32[2,8], index: 0, kind: input, shape index: {}]   ;;  %s118_s1 = inlined_call_operand.vmem [shape: f32[16,1], index: 1, kind: output, shape index: {}]  }
   0x1   :  { %v4_v0 = vld [vmem:[%s117_s0] sm:$0x3]  ;;  %s65_s0 = smov 127   ;;  %s68_s12 = smov 124  }
   0x2   :  { %5 = vst [vmem:[#allocation0] sm:$0x3] %v4_v0  ;;  %s69_s13 = smov 123   ;;  %s70_s14 = smov 122  }
   0x3   :  { %s71_s15 = smov 121  }
   0x9   :  { %v9_v1 = vld [vmem:[#allocation0] sm:$0x3]  }
   0xa   :  { %v21_v2 = vld [vmem:[#allocation0] sm:$0x3]   ;;  %10 = vrot.lane.b32.xlu0 %v9_v1, %s65_s0 }
   0xb   :  { %22 = vrot.lane.b32.xlu1 %v21_v2, %s66_s8  ;;  %v15_v3 = vld [vmem:[#allocation0] sm:$0x3]  }
   0xc   :  { %v27_v4 = vld [vmem:[#allocation0] sm:$0x3]  }
   0xd   :  { %v6_v5 = vld [vmem:[#allocation0] sm:$0x3]  }
   0xe   :  { %8 = vst.msk [vmem:[%s118_s1] ss:$8 sm:$0x3] %vm7_vm0, %v6_v5   ;;  %16 = vrot.lane.b32.xlu0 %v15_v3, %s67_s11  ;;  %v33_v6 = vld [vmem:[#allocation0] sm:$0x3]  }
   0xf   :  { %28 = vrot.lane.b32.xlu1 %v27_v4, %s68_s12  ;;  %v39_v7 = vld [vmem:[#allocation0] sm:$0x3]  }
  0x10   :  { %v45_v8 = vld [vmem:[#allocation0] sm:$0x3]  }
  0x12   :  { %34 = vrot.lane.b32.xlu0 %v33_v6, %s69_s13 }
  0x13   :  { %40 = vrot.lane.b32.xlu1 %v39_v7, %s70_s14 }
  0x16   :  { %46 = vrot.lane.b32.xlu0 %v45_v8, %s71_s15 }
  0x7c   :  { %v11_v9 = vpop.permute.xlu0 %10  }
  0x7d   :  { %v23_v10 = vpop.permute.xlu1 %22   ;;  %51 = vst.msk [vmem:[%s118_s1 + $0x1] ss:$8 sm:$0x3] %vm7_vm0, %v11_v9  }
  0x7e   :  { %53 = vst.msk [vmem:[%s118_s1 + $0x3] ss:$8 sm:$0x3] %vm7_vm0, %v23_v10  }
  0x80   :  { %v17_v11 = vpop.permute.xlu0 %16  }
  0x81   :  { %v29_v12 = vpop.permute.xlu1 %28   ;;  %52 = vst.msk [vmem:[%s118_s1 + $0x2] ss:$8 sm:$0x3] %vm7_vm0, %v17_v11  }
  0x82   :  { %54 = vst.msk [vmem:[%s118_s1 + $0x4] ss:$8 sm:$0x3] %vm7_vm0, %v29_v12  }
  0x84   :  { %v35_v13 = vpop.permute.xlu0 %34  }
  0x85   :  { %v41_v14 = vpop.permute.xlu1 %40   ;;  %55 = vst.msk [vmem:[%s118_s1 + $0x5] ss:$8 sm:$0x3] %vm7_vm0, %v35_v13  }
  0x86   :  { %56 = vst.msk [vmem:[%s118_s1 + $0x6] ss:$8 sm:$0x3] %vm7_vm0, %v41_v14  }
  0x88   :  { %v47_v15 = vpop.permute.xlu0 %46  }
  0x89   :  { %57 = vst.msk [vmem:[%s118_s1 + $0x7] ss:$8 sm:$0x3] %vm7_vm0, %v47_v15  }

// kernel: yolo_wrapper_forward.1
= control target key start
LH: loop header
LB: loop body
LE: loop exit
PB: predicated region body
PF: predicated region fallthrough
CT: control target
= control target key end

     0   :  { %s6527_s0 = inlined_call_operand.vmem [shape: f32[8,256], index: 0, kind: input, shape index: {}]   ;;  %s6528_s1 = inlined_call_operand.vmem [shape: bf16[9,256,64], index: 1, kind: input, shape index: {}]   ;;  %s6529_s2 = inlined_call_operand.vmem [shape: bf16[9,64,16], index: 2, kind: input, shape index: {}]   ;;  %s6530_s3 = inlined_call_operand.vmem [shape: bf16[9,16,4], index: 3, kind: input, shape index: {}]   ;;  %s6531_s4 = inlined_call_operand.vmem [shape: f32[16,72], index: 4, kind: input, shape index: {}]   ;;  %s6532_s5 = inlined_call_operand.vmem [shape: f32[16,1], index: 5, kind: input, shape index: {}]   ;;  %s6533_s6 = inlined_call_operand.vmem [shape: f32[32,144], index: 6, kind: input, shape index: {}]   ;;  %s6534_s7 = inlined_call_operand.vmem [shape: f32[32,1], index: 7, kind: input, shape index: {}]   ;;  %s6535_s8 = inlined_call_operand.vmem [shape: f32[64,288], index: 8, kind: input, shape index: {}]   ;;  %s6536_s9 = inlined_call_operand.vmem [shape: f32[64,1], index: 9, kind: input, shape index: {}]   ;;  %s6537_s10 = inlined_call_operand.vmem [shape: f32[16,16], index: 10, kind: input, shape index: {}]   ;;  %s6538_s11 = inlined_call_operand.vmem [shape: f32[16,1], index: 11, kind: input, shape index: {}]   ;;  %s6539_s12 = inlined_call_operand.vmem [shape: f32[16,32], index: 12, kind: input, shape index: {}]   ;;  %s6540_s13 = inlined_call_operand.vmem [shape: f32[16,1], index: 13, kind: input, shape index: {}]   ;;  %s6541_s14 = inlined_call_operand.vmem [shape: f32[16,64], index: 14, kind: input, shape index: {}]   ;;  %s6542_s15 = inlined_call_operand.vmem [shape: f32[16,1], index: 15, kind: input, shape index: {}]   ;;  %s6543_s16 = inlined_call_operand.hbm [shape: f32[16,84], index: 16, kind: output, shape index: {0}]   ;;  %s6544_s17 = inlined_call_operand.vmem [shape: f32[16,64], index: 17, kind: output, shape index: {1}]   ;;  %s6545_s18 = inlined_call_operand.vmem [shape: f32[16,16], index: 18, kind: output, shape index: {2}]   ;;  %s6546_s19 = inlined_call_operand.vmem [shape: f32[16,4], index: 19, kind: output, shape index: {3}]  }
   0x1   :  { %6551 = sst [smem:[#allocation8_spill]] %s6527_s0 }
   0x2   :  { %6552 = sst [smem:[#allocation9_spill]] %s6528_s1 }
   0x3   :  { %6553 = sst [smem:[#allocation10_spill]] %s6529_s2 }
   0x4   :  { %6554 = sst [smem:[#allocation11_spill]] %s6530_s3 }
   0x5   :  { %s6555_s20 = sld [smem:[#allocation9_spill]]  ;;  %s6556_s26 = sld [smem:[#allocation8_spill]] }
   0xb   :  { %v5132_v0 = vld [vmem:[%s6555_s20 + $0x40] sm:$0xff]   ;;  %v5136_v4 = vld [vmem:[%s6555_s20 + $0x48] sm:$0xff]   ;;  %v5140_v8 = vld [vmem:[%s6555_s20 + $0x50] sm:$0xff]  }
   0xc   :  { %v5133_v1 = vld [vmem:[%s6555_s20 + $0xc0] sm:$0xff]   ;;  %4401 = vmatprep.subr.bf16.mxu0 %v5132_v0  ;;  %v5137_v5 = vld [vmem:[%s6555_s20 + $0xc8] sm:$0xff]   ;;  %v5141_v9 = vld [vmem:[%s6555_s20 + $0xd0] sm:$0xff]  }
   0xd   :  { %v5134_v2 = vld [vmem:[%s6555_s20] sm:$0xff]   ;;  %4423 = vmatprep.subr.bf16.mxu1 %v5133_v1  ;;  %v5138_v6 = vld [vmem:[%s6555_s20 + $0x8] sm:$0xff]   ;;  %v5142_v10 = vld [vmem:[%s6555_s20 + $0x10] sm:$0xff]  }
   0xe   :  { %v5135_v3 = vld [vmem:[%s6555_s20 + $0x80] sm:$0xff]   ;;  %4402 = vmatpush3.bf16.msra.mxu0 %v5134_v2  ;;  %v5139_v7 = vld [vmem:[%s6555_s20 + $0x88] sm:$0xff]   ;;  %v5143_v11 = vld [vmem:[%s6555_s20 + $0x90] sm:$0xff]  }
   0xf   :  { %4424 = vmatpush3.bf16.msra.mxu1 %v5135_v3  ;;  %4403 = vmatprep.subr.bf16.mxu0 %v5136_v4  ;;  %v5144_v12 = vld [vmem:[%s6555_s20 + $0x58] sm:$0xff]   ;;  %v5148_v16 = vld [vmem:[%s6555_s20 + $0x60] sm:$0xff]   ;;  %v5152_v20 = vld [vmem:[%s6555_s20 + $0x68] sm:$0xff]  }
  0x10   :  { %4425 = vmatprep.subr.bf16.mxu1 %v5137_v5  ;;  %v5145_v13 = vld [vmem:[%s6555_s20 + $0xd8] sm:$0xff]   ;;  %v5149_v17 = vld [vmem:[%s6555_s20 + $0xe0] sm:$0xff]   ;;  %v5153_v21 = vld [vmem:[%s6555_s20 + $0xe8] sm:$0xff]  }
  0x11   :  { %v5146_v14 = vld [vmem:[%s6555_s20 + $0x18] sm:$0xff]   ;;  %v5150_v18 = vld [vmem:[%s6555_s20 + $0x20] sm:$0xff]   ;;  %v5154_v22 = vld [vmem:[%s6555_s20 + $0x28] sm:$0xff]  }
  0x12   :  { %4404 = vmatpush3.bf16.msra.mxu0 %v5138_v6  ;;  %v5147_v15 = vld [vmem:[%s6555_s20 + $0x98] sm:$0xff]   ;;  %v5151_v19 = vld [vmem:[%s6555_s20 + $0xa0] sm:$0xff]   ;;  %v5155_v23 = vld [vmem:[%s6555_s20 + $0xa8] sm:$0xff]  }
  0x13   :  { %4426 = vmatpush3.bf16.msra.mxu1 %v5139_v7  ;;  %4405 = vmatprep.subr.bf16.mxu0 %v5140_v8  ;;  %v5156_v24 = vld [vmem:[%s6555_s20 + $0x70] sm:$0xff]   ;;  %v5160_v28 = vld [vmem:[%s6555_s20 + $0x78] sm:$0xff]   ;;  %v60_v32 = vld [vmem:[%s6556_s26 + $0x8] sm:$0xff] }
  0x14   :  { %4427 = vmatprep.subr.bf16.mxu1 %v5141_v9  ;;  %v5157_v25 = vld [vmem:[%s6555_s20 + $0xf0] sm:$0xff]   ;;  %v5161_v29 = vld [vmem:[%s6555_s20 + $0xf8] sm:$0xff]   ;;  %v59_v33 = vld [vmem:[%s6556_s26] sm:$0xff]  ;;  %v5580_v34 = vpack.c.bf16 %v60_v32, %v60_v32 }
  0x15   :  { %v5158_v26 = vld [vmem:[%s6555_s20 + $0x30] sm:$0xff]   ;;  %v5162_v30 = vld [vmem:[%s6555_s20 + $0x38] sm:$0xff]   ;;  %v5582_v35 = vpack.c.bf16 %v59_v33, %v59_v33  ;;  %v5164_v36 = vld [vmem:[%s6555_s20 + $0x140] sm:$0xff]  }
  0x16   :  { %4406 = vmatpush3.bf16.msra.mxu0 %v5142_v10  ;;  %v5159_v27 = vld [vmem:[%s6555_s20 + $0xb0] sm:$0xff]   ;;  %v5163_v31 = vld [vmem:[%s6555_s20 + $0xb8] sm:$0xff]   ;;  %v5165_v37 = vld [vmem:[%s6555_s20 + $0x1c0] sm:$0xff]   ;;  %223 = vmatprep.mubr.bf16.mxu0 %v5580_v34 }
  0x17   :  { %4428 = vmatpush3.bf16.msra.mxu1 %v5143_v11  ;;  %4407 = vmatprep.subr.bf16.mxu0 %v5144_v12  ;;  %v5166_v38 = vld [vmem:[%s6555_s20 + $0x100] sm:$0xff]   ;;  %v5168_v40 = vld [vmem:[%s6555_s20 + $0x148] sm:$0xff]   ;;  %v5172_v44 = vld [vmem:[%s6555_s20 + $0x150] sm:$0xff]  }
  0x18   :  { %4429 = vmatprep.subr.bf16.mxu1 %v5145_v13  ;;  %394 = vmatprep.mubr.bf16.mxu1 %v5580_v34  ;;  %v5167_v39 = vld [vmem:[%s6555_s20 + $0x180] sm:$0xff]   ;;  %v5169_v41 = vld [vmem:[%s6555_s20 + $0x1c8] sm:$0xff]   ;;  %v5173_v45 = vld [vmem:[%s6555_s20 + $0x1d0] sm:$0xff]  }
  0x19   :  { %v5170_v42 = vld [vmem:[%s6555_s20 + $0x108] sm:$0xff]   ;;  %v5174_v46 = vld [vmem:[%s6555_s20 + $0x110] sm:$0xff]   ;;  %v5176_v48 = vld [vmem:[%s6555_s20 + $0x158] sm:$0xff]  }
  0x1a   :  { %4408 = vmatpush3.bf16.msra.mxu0 %v5146_v14  ;;  %v5171_v43 = vld [vmem:[%s6555_s20 + $0x188] sm:$0xff]   ;;  %v5175_v47 = vld [vmem:[%s6555_s20 + $0x190] sm:$0xff]   ;;  %v5177_v49 = vld [vmem:[%s6555_s20 + $0x1d8] sm:$0xff]  }
  0x1b   :  { %4430 = vmatpush3.bf16.msra.mxu1 %v5147_v15  ;;  %4409 = vmatprep.subr.bf16.mxu0 %v5148_v16  ;;  %v5178_v50 = vld [vmem:[%s6555_s20 + $0x118] sm:$0xff]   ;;  %v5180_v52 = vld [vmem:[%s6555_s20 + $0x160] sm:$0xff]   ;;  %v5184_v56 = vld [vmem:[%s6555_s20 + $0x168] sm:$0xff]  }
  0x1c   :  { %4431 = vmatprep.subr.bf16.mxu1 %v5149_v17  ;;  %v5179_v51 = vld [vmem:[%s6555_s20 + $0x198] sm:$0xff]   ;;  %v5181_v53 = vld [vmem:[%s6555_s20 + $0x1e0] sm:$0xff]   ;;  %v5185_v57 = vld [vmem:[%s6555_s20 + $0x1e8] sm:$0xff]  }
  0x1d   :  { %v5182_v54 = vld [vmem:[%s6555_s20 + $0x120] sm:$0xff]   ;;  %v5186_v58 = vld [vmem:[%s6555_s20 + $0x128] sm:$0xff]   ;;  %v5188_v60 = vld [vmem:[%s6555_s20 + $0x170] sm:$0xff]  }
  0x1e   :  { %4410 = vmatpush3.bf16.msra.mxu0 %v5150_v18  ;;  %v5183_v55 = vld [vmem:[%s6555_s20 + $0x1a0] sm:$0xff]   ;;  %v5187_v59 = vld [vmem:[%s6555_s20 + $0x1a8] sm:$0xff]   ;;  %v5189_v61 = vld [vmem:[%s6555_s20 + $0x1f0] sm:$0xff]  }
  0x1f   :  { %4432 = vmatpush3.bf16.msra.mxu1 %v5151_v19  ;;  %4411 = vmatprep.subr.bf16.mxu0 %v5152_v20  ;;  %v5190_v62 = vld [vmem:[%s6555_s20 + $0x130] sm:$0xff]   ;;  %v5192_v0 = vld [vmem:[%s6555_s20 + $0x178] sm:$0xff]   ;;  %v5196_v4 = vld [vmem:[%s6555_s20 + $0x240] sm:$0xff]  }
  0x20   :  { %4433 = vmatprep.subr.bf16.mxu1 %v5153_v21  ;;  %v5191_v63 = vld [vmem:[%s6555_s20 + $0x1b0] sm:$0xff]   ;;  %v5193_v1 = vld [vmem:[%s6555_s20 + $0x1f8] sm:$0xff]   ;;  %v5197_v5 = vld [vmem:[%s6555_s20 + $0x2c0] sm:$0xff]  }
  0x21   :  { %v5194_v2 = vld [vmem:[%s6555_s20 + $0x138] sm:$0xff]   ;;  %v5198_v6 = vld [vmem:[%s6555_s20 + $0x200] sm:$0xff]   ;;  %v5200_v8 = vld [vmem:[%s6555_s20 + $0x248] sm:$0xff]  }
  0x22   :  { %4412 = vmatpush3.bf16.msra.mxu0 %v5154_v22  ;;  %v5195_v3 = vld [vmem:[%s6555_s20 + $0x1b8] sm:$0xff]   ;;  %v5199_v7 = vld [vmem:[%s6555_s20 + $0x280] sm:$0xff]   ;;  %v5201_v9 = vld [vmem:[%s6555_s20 + $0x2c8] sm:$0xff]  }
  0x23   :  { %4434 = vmatpush3.bf16.msra.mxu1 %v5155_v23  ;;  %4413 = vmatprep.subr.bf16.mxu0 %v5156_v24  ;;  %v5202_v10 = vld [vmem:[%s6555_s20 + $0x208] sm:$0xff]   ;;  %v5204_v12 = vld [vmem:[%s6555_s20 + $0x250] sm:$0xff]   ;;  %v5208_v16 = vld [vmem:[%s6555_s20 + $0x258] sm:$0xff]  }
  0x24   :  { %4435 = vmatprep.subr.bf16.mxu1 %v5157_v25  ;;  %v5203_v11 = vld [vmem:[%s6555_s20 + $0x288] sm:$0xff]   ;;  %v5205_v13 = vld [vmem:[%s6555_s20 + $0x2d0] sm:$0xff]   ;;  %v5209_v17 = vld [vmem:[%s6555_s20 + $0x2d8] sm:$0xff]  }
  0x25   :  { %v5206_v14 = vld [vmem:[%s6555_s20 + $0x210] sm:$0xff]   ;;  %v5210_v18 = vld [vmem:[%s6555_s20 + $0x218] sm:$0xff]   ;;  %v5212_v20 = vld [vmem:[%s6555_s20 + $0x260] sm:$0xff]  }
  0x26   :  { %4414 = vmatpush3.bf16.msra.mxu0 %v5158_v26  ;;  %v5207_v15 = vld [vmem:[%s6555_s20 + $0x290] sm:$0xff]   ;;  %v5211_v19 = vld [vmem:[%s6555_s20 + $0x298] sm:$0xff]   ;;  %v5213_v21 = vld [vmem:[%s6555_s20 + $0x2e0] sm:$0xff]  }
  0x27   :  { %4436 = vmatpush3.bf16.msra.mxu1 %v5159_v27  ;;  %4415 = vmatprep.subr.bf16.mxu0 %v5160_v28  ;;  %v5214_v22 = vld [vmem:[%s6555_s20 + $0x220] sm:$0xff]   ;;  %v5216_v24 = vld [vmem:[%s6555_s20 + $0x268] sm:$0xff]   ;;  %v5220_v28 = vld [vmem:[%s6555_s20 + $0x270] sm:$0xff]  }
  0x28   :  { %4437 = vmatprep.subr.bf16.mxu1 %v5161_v29  ;;  %v5215_v23 = vld [vmem:[%s6555_s20 + $0x2a0] sm:$0xff]   ;;  %v5217_v25 = vld [vmem:[%s6555_s20 + $0x2e8] sm:$0xff]   ;;  %v5221_v29 = vld [vmem:[%s6555_s20 + $0x2f0] sm:$0xff]  }
  0x29   :  { %v5218_v26 = vld [vmem:[%s6555_s20 + $0x228] sm:$0xff]   ;;  %v5224_v32 = vld [vmem:[%s6555_s20 + $0x278] sm:$0xff]  }
  0x2a   :  { %4416 = vmatpush3.bf16.msra.mxu0 %v5162_v30  ;;  %v5219_v27 = vld [vmem:[%s6555_s20 + $0x2a8] sm:$0xff]   ;;  %v5222_v30 = vld [vmem:[%s6555_s20 + $0x230] sm:$0xff]   ;;  %v5225_v33 = vld [vmem:[%s6555_s20 + $0x2f8] sm:$0xff]  }
  0x2b   :  { %4438 = vmatpush3.bf16.msra.mxu1 %v5163_v31  ;;  %4445 = vmatprep.subr.bf16.mxu0 %v5164_v36  ;;  %v5223_v31 = vld [vmem:[%s6555_s20 + $0x2b0] sm:$0xff]   ;;  %v5226_v36 = vld [vmem:[%s6555_s20 + $0x238] sm:$0xff]  }
  0x2c   :  { %4467 = vmatprep.subr.bf16.mxu1 %v5165_v37  ;;  %v5227_v37 = vld [vmem:[%s6555_s20 + $0x2b8] sm:$0xff]  }
  0x2d   :  { %224 = vmatmul.mubr.bf16.vlgmr.msra.gmra.mrb[0].mxu0 %v5582_v35 }
  0x2e   :  { %395 = vmatmul.mubr.bf16.vlgmr.msra.gmra.mrb[0].mxu1 %v5582_v35  ;;  %4446 = vmatpush3.bf16.msra.mxu0 %v5166_v38  ;;  %v5228_v38 = vld [vmem:[%s6555_s20 + $0x340] sm:$0xff]  }
  0x2f   :  { %4468 = vmatpush3.bf16.msra.mxu1 %v5167_v39  ;;  %4447 = vmatprep.subr.bf16.mxu0 %v5168_v40  ;;  %v5229_v39 = vld [vmem:[%s6555_s20 + $0x3c0] sm:$0xff]  }
  0x30   :  { %564 = vmatprep.mubr.bf16.mxu0 %v5580_v34  ;;  %4469 = vmatprep.subr.bf16.mxu1 %v5169_v41  ;;  %v5230_v40 = vld [vmem:[%s6555_s20 + $0x300] sm:$0xff]  }
  0x31   :  { %734 = vmatprep.mubr.bf16.mxu1 %v5580_v34  ;;  %v5231_v41 = vld [vmem:[%s6555_s20 + $0x380] sm:$0xff]  }
  0x32   :  { %4448 = vmatpush3.bf16.msra.mxu0 %v5170_v42  ;;  %v5232_v42 = vld [vmem:[%s6555_s20 + $0x348] sm:$0xff]  }
  0x33   :  { %4470 = vmatpush3.bf16.msra.mxu1 %v5171_v43  ;;  %4449 = vmatprep.subr.bf16.mxu0 %v5172_v44  ;;  %v5233_v43 = vld [vmem:[%s6555_s20 + $0x3c8] sm:$0xff]  }
  0x34   :  { %4471 = vmatprep.subr.bf16.mxu1 %v5173_v45  ;;  %v5234_v44 = vld [vmem:[%s6555_s20 + $0x308] sm:$0xff]  }
  0x35   :  { %v5235_v45 = vld [vmem:[%s6555_s20 + $0x388] sm:$0xff]  }
  0x36   :  { %4450 = vmatpush3.bf16.msra.mxu0 %v5174_v46  ;;  %v5236_v46 = vld [vmem:[%s6555_s20 + $0x350] sm:$0xff]  }
  0x37   :  { %4472 = vmatpush3.bf16.msra.mxu1 %v5175_v47  ;;  %4451 = vmatprep.subr.bf16.mxu0 %v5176_v48  ;;  %v5237_v47 = vld [vmem:[%s6555_s20 + $0x3d0] sm:$0xff]  }
  0x38   :  { %4473 = vmatprep.subr.bf16.mxu1 %v5177_v49  ;;  %v5238_v48 = vld [vmem:[%s6555_s20 + $0x310] sm:$0xff]  }
  0x39   :  { %v5239_v49 = vld [vmem:[%s6555_s20 + $0x390] sm:$0xff]  }
  0x3a   :  { %4452 = vmatpush3.bf16.msra.mxu0 %v5178_v50  ;;  %v5240_v50 = vld [vmem:[%s6555_s20 + $0x358] sm:$0xff]  }
  0x3b   :  { %4474 = vmatpush3.bf16.msra.mxu1 %v5179_v51  ;;  %4453 = vmatprep.subr.bf16.mxu0 %v5180_v52  ;;  %v5241_v51 = vld [vmem:[%s6555_s20 + $0x3d8] sm:$0xff]  }
  0x3c   :  { %4475 = vmatprep.subr.bf16.mxu1 %v5181_v53  ;;  %v5242_v52 = vld [vmem:[%s6555_s20 + $0x318] sm:$0xff]  }
  0x3d   :  { %v5243_v53 = vld [vmem:[%s6555_s20 + $0x398] sm:$0xff]  }
  0x3e   :  { %4454 = vmatpush3.bf16.msra.mxu0 %v5182_v54  ;;  %v5244_v54 = vld [vmem:[%s6555_s20 + $0x360] sm:$0xff]  }
  0x3f   :  { %4476 = vmatpush3.bf16.msra.mxu1 %v5183_v55  ;;  %4455 = vmatprep.subr.bf16.mxu0 %v5184_v56  ;;  %v5245_v55 = vld [vmem:[%s6555_s20 + $0x3e0] sm:$0xff]  }
  0x40   :  { %4477 = vmatprep.subr.bf16.mxu1 %v5185_v57  ;;  %v5246_v56 = vld [vmem:[%s6555_s20 + $0x320] sm:$0xff]  }
  0x41   :  { %v5247_v57 = vld [vmem:[%s6555_s20 + $0x3a0] sm:$0xff]  }
  0x42   :  { %4456 = vmatpush3.bf16.msra.mxu0 %v5186_v58  ;;  %v5248_v58 = vld [vmem:[%s6555_s20 + $0x368] sm:$0xff]  }
  0x43   :  { %4478 = vmatpush3.bf16.msra.mxu1 %v5187_v59  ;;  %4457 = vmatprep.subr.bf16.mxu0 %v5188_v60  ;;  %v5249_v59 = vld [vmem:[%s6555_s20 + $0x3e8] sm:$0xff]  }
  0x44   :  { %4479 = vmatprep.subr.bf16.mxu1 %v5189_v61  ;;  %v5250_v60 = vld [vmem:[%s6555_s20 + $0x328] sm:$0xff]  }
  0x45   :  { %v5251_v61 = vld [vmem:[%s6555_s20 + $0x3a8] sm:$0xff]  }
  0x46   :  { %4458 = vmatpush3.bf16.msra.mxu0 %v5190_v62  ;;  %v5252_v62 = vld [vmem:[%s6555_s20 + $0x370] sm:$0xff]  }
  0x47   :  { %4480 = vmatpush3.bf16.msra.mxu1 %v5191_v63  ;;  %4459 = vmatprep.subr.bf16.mxu0 %v5192_v0  ;;  %v5253_v63 = vld [vmem:[%s6555_s20 + $0x3f0] sm:$0xff]  }
  0x48   :  { %4481 = vmatprep.subr.bf16.mxu1 %v5193_v1  ;;  %v5254_v0 = vld [vmem:[%s6555_s20 + $0x330] sm:$0xff]  }
  0x49   :  { %v5255_v1 = vld [vmem:[%s6555_s20 + $0x3b0] sm:$0xff]  }
  0x4a   :  { %4460 = vmatpush3.bf16.msra.mxu0 %v5194_v2  ;;  %v5256_v2 = vld [vmem:[%s6555_s20 + $0x378] sm:$0xff]  }
  0x4b   :  { %4482 = vmatpush3.bf16.msra.mxu1 %v5195_v3  ;;  %4489 = vmatprep.subr.bf16.mxu0 %v5196_v4  ;;  %v5257_v3 = vld [vmem:[%s6555_s20 + $0x3f8] sm:$0xff]  }
  0x4c   :  { %4511 = vmatprep.subr.bf16.mxu1 %v5197_v5  ;;  %v5258_v4 = vld [vmem:[%s6555_s20 + $0x338] sm:$0xff]  }
  0x4d   :  { %565 = vmatmul.mubr.bf16.vlgmr.msra.gmra.mrb[4].mxu0 %v5582_v35  ;;  %v5259_v5 = vld [vmem:[%s6555_s20 + $0x3b8] sm:$0xff]  }
  0x4e   :  { %735 = vmatmul.mubr.bf16.vlgmr.msra.gmra.mrb[4].mxu1 %v5582_v35  ;;  %4490 = vmatpush3.bf16.msra.mxu0 %v5198_v6  ;;  %v5260_v6 = vld [vmem:[%s6555_s20 + $0x440] sm:$0xff]  }
  0x4f   :  { %4512 = vmatpush3.bf16.msra.mxu1 %v5199_v7  ;;  %4491 = vmatprep.subr.bf16.mxu0 %v5200_v8  ;;  %v5261_v7 = vld [vmem:[%s6555_s20 + $0x400] sm:$0xff]   ;;  %v5262_v8 = vld [vmem:[%s6555_s20 + $0x448] sm:$0xff]  }
  0x50   :  { %904 = vmatprep.mubr.bf16.mxu0 %v5580_v34  ;;  %4513 = vmatprep.subr.bf16.mxu1 %v5201_v9  ;;  %v5263_v9 = vld [vmem:[%s6555_s20 + $0x408] sm:$0xff]  }
  0x51   :  { %1074 = vmatprep.mubr.bf16.mxu1 %v5580_v34 }
  0x52   :  { %4492 = vmatpush3.bf16.msra.mxu0 %v5202_v10  ;;  %v5264_v10 = vld [vmem:[%s6555_s20 + $0x450] sm:$0xff]  }
  0x53   :  { %4514 = vmatpush3.bf16.msra.mxu1 %v5203_v11  ;;  %4493 = vmatprep.subr.bf16.mxu0 %v5204_v12  ;;  %v5265_v11 = vld [vmem:[%s6555_s20 + $0x410] sm:$0xff]   ;;  %v5266_v12 = vld [vmem:[%s6555_s20 + $0x458] sm:$0xff]  }
  0x54   :  { %4515 = vmatprep.subr.bf16.mxu1 %v5205_v13  ;;  %v5268_v13 = vld [vmem:[%s6555_s20 + $0x460] sm:$0xff]  }
  0x56   :  { %4494 = vmatpush3.bf16.msra.mxu0 %v5206_v14  ;;  %v5269_v14 = vld [vmem:[%s6555_s20 + $0x420] sm:$0xff]  }
  0x57   :  { %4516 = vmatpush3.bf16.msra.mxu1 %v5207_v15  ;;  %4495 = vmatprep.subr.bf16.mxu0 %v5208_v16  ;;  %v5270_v15 = vld [vmem:[%s6555_s20 + $0x468] sm:$0xff]  }
  0x58   :  { %4517 = vmatprep.subr.bf16.mxu1 %v5209_v17  ;;  %v5271_v16 = vld [vmem:[%s6555_s20 + $0x428] sm:$0xff]   ;;  %v5272_v17 = vld [vmem:[%s6555_s20 + $0x470] sm:$0xff]  }
  0x5a   :  { %4496 = vmatpush3.bf16.msra.mxu0 %v5210_v18  ;;  %v5273_v18 = vld [vmem:[%s6555_s20 + $0x430] sm:$0xff]  }
  0x5b   :  { %4518 = vmatpush3.bf16.msra.mxu1 %v5211_v19  ;;  %4497 = vmatprep.subr.bf16.mxu0 %v5212_v20  ;;  %v5274_v19 = vld [vmem:[%s6555_s20 + $0x478] sm:$0xff]  }
  0x5c   :  { %4519 = vmatprep.subr.bf16.mxu1 %v5213_v21  ;;  %v5275_v20 = vld [vmem:[%s6555_s20 + $0x438] sm:$0xff]  }
  0x5e   :  { %4498 = vmatpush3.bf16.msra.mxu0 %v5214_v22 }
  0x5f   :  { %4520 = vmatpush3.bf16.msra.mxu1 %v5215_v23  ;;  %4499 = vmatprep.subr.bf16.mxu0 %v5216_v24 }
  0x60   :  { %4521 = vmatprep.subr.bf16.mxu1 %v5217_v25 }
  0x62   :  { %4500 = vmatpush3.bf16.msra.mxu0 %v5218_v26 }
  0x63   :  { %4522 = vmatpush3.bf16.msra.mxu1 %v5219_v27  ;;  %4501 = vmatprep.subr.bf16.mxu0 %v5220_v28 }
  0x64   :  { %4523 = vmatprep.subr.bf16.mxu1 %v5221_v29 }
  0x66   :  { %4502 = vmatpush3.bf16.msra.mxu0 %v5222_v30 }
  0x67   :  { %4524 = vmatpush3.bf16.msra.mxu1 %v5223_v31  ;;  %4503 = vmatprep.subr.bf16.mxu0 %v5224_v32 }
  0x68   :  { %4525 = vmatprep.subr.bf16.mxu1 %v5225_v33 }
  0x6a   :  { %4504 = vmatpush3.bf16.msra.mxu0 %v5226_v36 }
  0x6b   :  { %4526 = vmatpush3.bf16.msra.mxu1 %v5227_v37  ;;  %4533 = vmatprep.subr.bf16.mxu0 %v5228_v38 }
  0x6c   :  { %4555 = vmatprep.subr.bf16.mxu1 %v5229_v39 }
  0x6d   :  { %905 = vmatmul.mubr.bf16.vlgmr.msra.gmra.mrb[8].mxu0 %v5582_v35 }
  0x6e   :  { %1075 = vmatmul.mubr.bf16.vlgmr.msra.gmra.mrb[8].mxu1 %v5582_v35  ;;  %4534 = vmatpush3.bf16.msra.mxu0 %v5230_v40 }
  0x6f   :  { %4556 = vmatpush3.bf16.msra.mxu1 %v5231_v41  ;;  %4535 = vmatprep.subr.bf16.mxu0 %v5232_v42 }
  0x70   :  { %1244 = vmatprep.mubr.bf16.mxu0 %v5580_v34  ;;  %4557 = vmatprep.subr.bf16.mxu1 %v5233_v43 }
  0x71   :  { %1414 = vmatprep.mubr.bf16.mxu1 %v5580_v34 }
  0x72   :  { %4536 = vmatpush3.bf16.msra.mxu0 %v5234_v44 }
  0x73   :  { %4558 = vmatpush3.bf16.msra.mxu1 %v5235_v45  ;;  %4537 = vmatprep.subr.bf16.mxu0 %v5236_v46 }
  0x74   :  { %4559 = vmatprep.subr.bf16.mxu1 %v5237_v47 }
  0x76   :  { %4538 = vmatpush3.bf16.msra.mxu0 %v5238_v48 }
  0x77   :  { %4560 = vmatpush3.bf16.msra.mxu1 %v5239_v49  ;;  %4539 = vmatprep.subr.bf16.mxu0 %v5240_v50 }
  0x78   :  { %4561 = vmatprep.subr.bf16.mxu1 %v5241_v51 }
  0x7a   :  { %4540 = vmatpush3.bf16.msra.mxu0 %v5242_v52 }
  0x7b   :  { %4562 = vmatpush3.bf16.msra.mxu1 %v5243_v53  ;;  %4541 = vmatprep.subr.bf16.mxu0 %v5244_v54 }
  0x7c   :  { %4563 = vmatprep.subr.bf16.mxu1 %v5245_v55 }
  0x7e   :  { %4542 = vmatpush3.bf16.msra.mxu0 %v5246_v56 }
  0x7f   :  { %4564 = vmatpush3.bf16.msra.mxu1 %v5247_v57  ;;  %4543 = vmatprep.subr.bf16.mxu0 %v5248_v58 }
  0x80   :  { %4565 = vmatprep.subr.bf16.mxu1 %v5249_v59 }
  0x82   :  { %4544 = vmatpush3.bf16.msra.mxu0 %v5250_v60 }
  0x83   :  { %4566 = vmatpush3.bf16.msra.mxu1 %v5251_v61  ;;  %4545 = vmatprep.subr.bf16.mxu0 %v5252_v62 }
  0x84   :  { %4567 = vmatprep.subr.bf16.mxu1 %v5253_v63 }
  0x86   :  { %4546 = vmatpush3.bf16.msra.mxu0 %v5254_v0 }
  0x87   :  { %4568 = vmatpush3.bf16.msra.mxu1 %v5255_v1  ;;  %4547 = vmatprep.subr.bf16.mxu0 %v5256_v2 }
  0x88   :  { %4569 = vmatprep.subr.bf16.mxu1 %v5257_v3 }
  0x8a   :  { %4548 = vmatpush3.bf16.msra.mxu0 %v5258_v4 }
  0x8b   :  { %4570 = vmatpush3.bf16.msra.mxu1 %v5259_v5  ;;  %4577 = vmatprep.subr.bf16.mxu0 %v5260_v6 }
  0x8d   :  { %1245 = vmatmul.mubr.bf16.vlgmr.msra.gmra.mrb[12].mxu0 %v5582_v35 }
  0x8e   :  { %1415 = vmatmul.mubr.bf16.vlgmr.msra.gmra.mrb[12].mxu1 %v5582_v35  ;;  %4578 = vmatpush3.bf16.msra.mxu0 %v5261_v7 }
  0x8f   :  { %1584 = vmatprep.mubr.bf16.mxu0 %v5580_v34  ;;  %4579 = vmatprep.subr.bf16.mxu0 %v5262_v8  ;;  %v5267_v34 = vld [vmem:[%s6555_s20 + $0x418] sm:$0xff]  }
  0x92   :  { %4580 = vmatpush3.bf16.msra.mxu0 %v5263_v9 }
  0x93   :  { %4581 = vmatprep.subr.bf16.mxu0 %v5264_v10 }
  0x96   :  { %4582 = vmatpush3.bf16.msra.mxu0 %v5265_v11 }
  0x97   :  { %4583 = vmatprep.subr.bf16.mxu0 %v5266_v12 }
  0x9a   :  { %4584 = vmatpush3.bf16.msra.mxu0 %v5267_v34 }
  0x9b   :  { %4585 = vmatprep.subr.bf16.mxu0 %v5268_v13 }
  0x9e   :  { %4586 = vmatpush3.bf16.msra.mxu0 %v5269_v14 }
  0x9f   :  { %4587 = vmatprep.subr.bf16.mxu0 %v5270_v15 }
  0xa2   :  { %4588 = vmatpush3.bf16.msra.mxu0 %v5271_v16 }
  0xa3   :  { %4589 = vmatprep.subr.bf16.mxu0 %v5272_v17 }
  0xa6   :  { %4590 = vmatpush3.bf16.msra.mxu0 %v5273_v18 }
  0xa7   :  { %4591 = vmatprep.subr.bf16.mxu0 %v5274_v19 }
  0xaa   :  { %4592 = vmatpush3.bf16.msra.mxu0 %v5275_v20 }
  0xad   :  { %1585 = vmatmul.mubr.bf16.vlgmr.msra.gmra.mrb[16].mxu0 %v5582_v35 }
  0xae   :  { %25 = vsyncpa [#allocation6], 0  ;;  %vm231_vm0 = vcmask 523264   ;;  %v1593_v35 = vld [vmem:[%s6531_s4] sm:$0xff]  ;;  %vm1616_vm1 = vcmask 588800   ;;  %v5369_v37 = vmov 0  }
  0xaf   :  { %4788 = vmatprep.mubr.msk.f32.mxu1 %vm1616_vm1, %v1593_v35  ;;  %v1604_v36 = vld [vmem:[%s6532_s5] sm:$0xff]  ;;  %5130 = vset.pattern.permute.xlu0 %v5369_v37  ;;  %v1605_v38 = vld [vmem:[%s6532_s5 + $0x8] sm:$0xff]  ;;  %v2416_v39 = vld [vmem:[%s6534_s7 + $0x10] sm:$0xff]  ;;  %v5370_v58 = vmov 0.0   ;;  %s6557_s21 = sld [smem:[#allocation10_spill]]  ;;  %vm5371_vm2 = vmmov 0  }
  0xb0   :  { %5131 = vset.pattern.permute.xlu1 %v5369_v37  ;;  %1608 = vperm.xlu0 %5130, %v1604_v36   ;;  %v3165_v40 = vld [vmem:[%s6536_s9] sm:$0xff]  ;;  %v3167_v41 = vld [vmem:[%s6536_s9 + $0x10] sm:$0xff]  ;;  %vm1777_vm3 = vcmask 130048   ;;  %vm3213_vm4 = vcmask 261120   ;;  %vm2604_vm5 = vcmask 31744   ;;  %vm3777_vm6 = vcmask 654848  }
  0xb1   :  { %v3169_v46 = vld [vmem:[%s6536_s9 + $0x20] sm:$0xff]  ;;  %v3171_v53 = vld [vmem:[%s6536_s9 + $0x30] sm:$0xff]  ;;  %4803 = vmatprep.subr.bf16.mxu0 %v5370_v58  ;;  %4811 = vmatprep.mubr.msk.bf16.mxu0 %vm5371_vm2, %v5370_v58  ;;  %s5374_s2 = smov 80   ;;  %s5375_s23 = smov [#allocation5]   ;;  %vm3798_vm7 = vcmask 687744  }
  0xb2   :  { %v3553_v54 = vld [vmem:[%s6540_s13] sm:$0xff] }
  0xb3   :  { %v3648_v60 = vld [vmem:[%s6542_s15] sm:$0xff] }
  0xb4   :  { %1613 = vperm.xlu0 %5130, %v1605_v38   ;;  %v3458_v62 = vld [vmem:[%s6538_s11] sm:$0xff] }
  0xb5   :  { %v5277_v59 = vld [vmem:[%s6557_s21 + $0x20] sm:$0xff]   ;;  %v5279_v61 = vld [vmem:[%s6557_s21 + $0x28] sm:$0xff]   ;;  %v5281_v35 = vld [vmem:[%s6557_s21 + $0x30] sm:$0xff]  }
  0xb6   :  { %4804 = vmatpush3.bf16.msra.mxu0 %v5277_v59  ;;  %v5282_v36 = vld [vmem:[%s6557_s21 + $0x18] sm:$0xff]   ;;  %v5295_v59 = vld [vmem:[%s6557_s21 + $0xa8] sm:$0xff]  }
  0xb7   :  { %4805 = vmatprep.subr.bf16.mxu0 %v5370_v58  ;;  %v5283_v37 = vld [vmem:[%s6557_s21 + $0x38] sm:$0xff]  }
  0xb8   :  { %2430 = vperm.xlu0 %5130, %v2416_v39  }
  0xba   :  { %4806 = vmatpush3.bf16.msra.mxu0 %v5279_v61  ;;  %v5297_v61 = vld [vmem:[%s6557_s21 + $0xb0] sm:$0xff]  }
  0xbb   :  { %4807 = vmatprep.subr.bf16.mxu0 %v5370_v58 }
  0xbc   :  { %3175 = vperm.xlu0 %5130, %v3165_v40  }
  0xbe   :  { %4808 = vmatpush3.bf16.msra.mxu0 %v5281_v35 }
  0xbf   :  { %4809 = vmatprep.subr.bf16.mxu0 %v5370_v58 }
  0xc0   :  { %3185 = vperm.xlu0 %5130, %v3167_v41  }
  0xc2   :  { %4810 = vmatpush3.bf16.msra.mxu0 %v5283_v37 }
  0xc3   :  { %4827 = vmatprep.subr.bf16.mxu0 %v5370_v58 }
  0xc4   :  { %3195 = vperm.xlu0 %5130, %v3169_v46   ;;  %v5284_v46 = vld [vmem:[%s6557_s21 + $0x40] sm:$0xff]  }
  0xc8   :  { %3205 = vperm.xlu0 %5130, %v3171_v53   ;;  %v5290_v53 = vld [vmem:[%s6557_s21 + $0x58] sm:$0xff]  }
  0xcc   :  { %3557 = vperm.xlu0 %5130, %v3553_v54   ;;  %v5291_v54 = vld [vmem:[%s6557_s21 + $0x78] sm:$0xff]  }
  0xd0   :  { %3652 = vperm.xlu0 %5130, %v3648_v60   ;;  %v5296_v60 = vld [vmem:[%s6557_s21 + $0x90] sm:$0xff]  }
  0xd4   :  { %3462 = vperm.xlu0 %5130, %v3458_v62   ;;  %v5298_v62 = vld [vmem:[%s6557_s21 + $0x98] sm:$0xff]  }
 0x100   :  { %v4417_v21 = vpop.f32.mrb[0].mxu0 }
 0x101   :  { %v4439_v22 = vpop.f32.mrb[0].mxu1  ;;  %v4418_v23 = vpop.f32.mrb[1].mxu0 }
 0x102   :  { %v4440_v24 = vpop.f32.mrb[1].mxu1  ;;  %v4419_v25 = vadd.f32 %v4418_v23, %v4417_v21  ;;  %v4420_v27 = vpop.f32.mrb[2].mxu0 }
 0x103   :  { %v4441_v26 = vadd.f32 %v4440_v24, %v4439_v22  ;;  %v4442_v28 = vpop.f32.mrb[2].mxu1  ;;  %v4421_v29 = vpop.f32.mrb[3].mxu0 }
 0x104   :  { %v4443_v30 = vpop.f32.mrb[3].mxu1  ;;  %232 = vst.msk [vmem:[#allocation2] sm:$0xff] %vm231_vm0, %v4419_v25 }
 0x105   :  { %402 = vst.msk [vmem:[#allocation2 + $0x8] sm:$0xff] %vm231_vm0, %v4441_v26  ;;  %v1594_v30 = vld [vmem:[%s6531_s4 + $0x8] sm:$0xff] }
 0x10b   :  { %v1595_v31 = vld [vmem:[#allocation2] sm:$0xff] }
 0x10c   :  { %v1596_v32 = vld [vmem:[#allocation2 + $0x8] sm:$0xff] }
 0x10d   :  { %v5010_v33 = vpack.c.bf16 %v1596_v32, %v1595_v31  ;;  %v5276_v31 = vld [vmem:[%s6557_s21] sm:$0xff]   ;;  %v5278_v32 = vld [vmem:[%s6557_s21 + $0x8] sm:$0xff]  }
 0x10f   :  { %5011 = vmatprep.subr.bf16.mxu1 %v5010_v33 }
 0x110   :  { %5013 = vmatpush3.bf16.msra.mxu1 %v5010_v33  ;;  %v5280_v33 = vld [vmem:[%s6557_s21 + $0x10] sm:$0xff]  }
 0x120   :  { %v4461_v42 = vpop.f32.mrb[4].mxu0 }
 0x121   :  { %v4483_v43 = vpop.f32.mrb[4].mxu1  ;;  %v4462_v44 = vpop.f32.mrb[5].mxu0 }
 0x122   :  { %v4484_v45 = vpop.f32.mrb[5].mxu1  ;;  %v4463_v47 = vadd.f32 %v4462_v44, %v4461_v42  ;;  %v4464_v49 = vpop.f32.mrb[6].mxu0 }
 0x123   :  { %v4485_v48 = vadd.f32 %v4484_v45, %v4483_v43  ;;  %v4486_v50 = vpop.f32.mrb[6].mxu1  ;;  %v4465_v51 = vpop.f32.mrb[7].mxu0  ;;  %v5286_v49 = vld [vmem:[%s6557_s21 + $0x48] sm:$0xff]  }
 0x124   :  { %v4487_v52 = vpop.f32.mrb[7].mxu1  ;;  %572 = vst.msk [vmem:[#allocation2 + $0x10] sm:$0xff] %vm231_vm0, %v4463_v47  ;;  %v5285_v47 = vld [vmem:[%s6557_s21 + $0x60] sm:$0xff]   ;;  %v5287_v50 = vld [vmem:[%s6557_s21 + $0x68] sm:$0xff]   ;;  %v5288_v51 = vld [vmem:[%s6557_s21 + $0x50] sm:$0xff]  }
 0x125   :  { %742 = vst.msk [vmem:[#allocation2 + $0x18] sm:$0xff] %vm231_vm0, %v4485_v48  ;;  %v5289_v52 = vld [vmem:[%s6557_s21 + $0x70] sm:$0xff]  }
 0x12b   :  { %v1597_v55 = vld [vmem:[#allocation2 + $0x10] sm:$0xff] }
 0x12c   :  { %v1598_v56 = vld [vmem:[#allocation2 + $0x18] sm:$0xff] }
 0x12d   :  { %v5014_v57 = vpack.c.bf16 %v1598_v56, %v1597_v55  ;;  %v5292_v55 = vld [vmem:[%s6557_s21 + $0x80] sm:$0xff]  }
 0x12e   :  { %v5293_v56 = vld [vmem:[%s6557_s21 + $0xa0] sm:$0xff]  }
 0x12f   :  { %5015 = vmatprep.subr.bf16.mxu1 %v5014_v57  ;;  %v1609_v38 = vpop.permute.xlu0 %1608 }
 0x130   :  { %5017 = vmatpush3.bf16.msra.mxu1 %v5014_v57  ;;  %v5294_v57 = vld [vmem:[%s6557_s21 + $0x88] sm:$0xff]  }
 0x133   :  { %v1614_v39 = vpop.permute.xlu0 %1613 }
 0x140   :  { %v4505_v63 = vpop.f32.mrb[8].mxu0 }
 0x141   :  { %v4527_v0 = vpop.f32.mrb[8].mxu1  ;;  %v4506_v1 = vpop.f32.mrb[9].mxu0 }
 0x142   :  { %v4528_v2 = vpop.f32.mrb[9].mxu1  ;;  %v4507_v3 = vadd.f32 %v4506_v1, %v4505_v63  ;;  %v4508_v5 = vpop.f32.mrb[10].mxu0  ;;  %v5299_v63 = vld [vmem:[%s6557_s21 + $0xb8] sm:$0xff]   ;;  %v5301_v1 = vld [vmem:[%s6557_s21 + $0xe0] sm:$0xff]  }
 0x143   :  { %v4529_v4 = vadd.f32 %v4528_v2, %v4527_v0  ;;  %v4530_v6 = vpop.f32.mrb[10].mxu1  ;;  %v4509_v7 = vpop.f32.mrb[11].mxu0  ;;  %v5300_v0 = vld [vmem:[%s6557_s21 + $0xc0] sm:$0xff]   ;;  %v5302_v2 = vld [vmem:[%s6557_s21 + $0xc8] sm:$0xff]   ;;  %v5305_v5 = vld [vmem:[%s6557_s21 + $0xf0] sm:$0xff]  }
 0x144   :  { %v4531_v8 = vpop.f32.mrb[11].mxu1  ;;  %912 = vst.msk [vmem:[#allocation2 + $0x20] sm:$0xff] %vm231_vm0, %v4507_v3  ;;  %v5303_v3 = vld [vmem:[%s6557_s21 + $0xe8] sm:$0xff]   ;;  %v5306_v6 = vld [vmem:[%s6557_s21 + $0xd8] sm:$0xff]  }
 0x145   :  { %1082 = vst.msk [vmem:[#allocation2 + $0x28] sm:$0xff] %vm231_vm0, %v4529_v4  ;;  %v5304_v4 = vld [vmem:[%s6557_s21 + $0xd0] sm:$0xff]   ;;  %v5307_v7 = vld [vmem:[%s6557_s21 + $0xf8] sm:$0xff]   ;;  %v5308_v8 = vld [vmem:[%s6557_s21 + $0x100] sm:$0xff]  }
 0x14b   :  { %v1599_v9 = vld [vmem:[#allocation2 + $0x20] sm:$0xff] }
 0x14c   :  { %v1600_v10 = vld [vmem:[#allocation2 + $0x28] sm:$0xff] }
 0x14d   :  { %v5018_v11 = vpack.c.bf16 %v1600_v10, %v1599_v9  ;;  %v5309_v9 = vld [vmem:[%s6557_s21 + $0x108] sm:$0xff]   ;;  %v5310_v10 = vld [vmem:[%s6557_s21 + $0x110] sm:$0xff]  }
 0x14f   :  { %5019 = vmatprep.subr.bf16.mxu1 %v5018_v11 }
 0x150   :  { %5021 = vmatpush3.bf16.msra.mxu1 %v5018_v11  ;;  %v5311_v11 = vld [vmem:[%s6557_s21 + $0x118] sm:$0xff]  }
 0x160   :  { %v4549_v12 = vpop.f32.mrb[12].mxu0 }
 0x161   :  { %v4571_v34 = vpop.f32.mrb[12].mxu1  ;;  %v4550_v13 = vpop.f32.mrb[13].mxu0 }
 0x162   :  { %v4572_v14 = vpop.f32.mrb[13].mxu1  ;;  %v4551_v15 = vadd.f32 %v4550_v13, %v4549_v12  ;;  %v4552_v17 = vpop.f32.mrb[14].mxu0  ;;  %v5372_v12 = vmov 0.0|0.0   ;;  %v2414_v13 = vld [vmem:[%s6534_s7] sm:$0xff] }
 0x163   :  { %v4573_v16 = vadd.f32 %v4572_v14, %v4571_v34  ;;  %v4574_v18 = vpop.f32.mrb[14].mxu1  ;;  %v4553_v19 = vpop.f32.mrb[15].mxu0  ;;  %v2389_v34 = vld [vmem:[%s6533_s6 + $0x8] sm:$0xff]  ;;  %2420 = vperm.xlu1 %5131, %v2414_v13   ;;  %v2417_v14 = vld [vmem:[%s6534_s7 + $0x18] sm:$0xff] }
 0x164   :  { %v4575_v20 = vpop.f32.mrb[15].mxu1  ;;  %1252 = vst.msk [vmem:[#allocation2 + $0x30] sm:$0xff] %vm231_vm0, %v4551_v15  ;;  %v3166_v15 = vld [vmem:[%s6536_s9 + $0x8] sm:$0xff]  ;;  %v3172_v18 = vld [vmem:[%s6536_s9 + $0x38] sm:$0xff] }
 0x165   :  { %1422 = vst.msk [vmem:[#allocation2 + $0x38] sm:$0xff] %vm231_vm0, %v4573_v16  ;;  %v3168_v16 = vld [vmem:[%s6536_s9 + $0x18] sm:$0xff]  ;;  %v3170_v17 = vld [vmem:[%s6536_s9 + $0x28] sm:$0xff] }
 0x166   :  { %v3554_v19 = vld [vmem:[%s6540_s13 + $0x8] sm:$0xff] }
 0x167   :  { %v3649_v20 = vld [vmem:[%s6542_s15 + $0x8] sm:$0xff] }
 0x16b   :  { %v1601_v21 = vld [vmem:[#allocation2 + $0x30] sm:$0xff] }
 0x16c   :  { %v1602_v22 = vld [vmem:[#allocation2 + $0x38] sm:$0xff] }
 0x16d   :  { %v5022_v23 = vpack.c.bf16 %v1602_v22, %v1601_v21  ;;  %v3459_v21 = vld [vmem:[%s6538_s11 + $0x8] sm:$0xff] }
 0x16f   :  { %5023 = vmatprep.subr.bf16.mxu1 %v5022_v23 }
 0x170   :  { %5025 = vmatpush3.bf16.msra.mxu1 %v5022_v23 }
 0x180   :  { %v4593_v24 = vpop.f32.mrb[16].mxu0 }
 0x181   :  { %v4594_v25 = vpop.f32.mrb[17].mxu0 }
 0x182   :  { %v4595_v26 = vadd.f32 %v4594_v25, %v4593_v24  ;;  %v4596_v27 = vpop.f32.mrb[18].mxu0 }
 0x183   :  { %v4597_v28 = vpop.f32.mrb[19].mxu0 }
 0x184   :  { %1592 = vst.msk [vmem:[#allocation2 + $0x40] sm:$0xff] %vm231_vm0, %v4595_v26 }
 0x18b   :  { %v1603_v29 = vld [vmem:[#allocation2 + $0x40] sm:$0xff] }
 0x18c   :  { %4786 = vmatprep.subr.mxu1 %v1603_v29 }
 0x18d   :  { %4787 = vmatpush3.msra.mxu1 %v1603_v29 }
 0x18e   :  { %4789 = vmatmul.mubr.msk.f32.vlgmr.msra.gmra.mrb[16].mxu1 %vm1616_vm1, %v1594_v30  ;;  %4791 = vmatprep.subr.bf16.mxu1 %v5370_v58 }
 0x18f   :  { %4792 = vmatpush3.bf16.msra.mxu1 %v5276_v31  ;;  %4799 = vmatprep.mubr.msk.bf16.mxu1 %vm5371_vm2, %v5370_v58 }
 0x190   :  { %4793 = vmatprep.subr.bf16.mxu1 %v5370_v58 }
 0x193   :  { %4794 = vmatpush3.bf16.msra.mxu1 %v5278_v32 }
 0x194   :  { %4795 = vmatprep.subr.bf16.mxu1 %v5370_v58 }
 0x197   :  { %4796 = vmatpush3.bf16.msra.mxu1 %v5280_v33 }
 0x198   :  { %4797 = vmatprep.subr.bf16.mxu1 %v5370_v58 }
 0x19b   :  { %4798 = vmatpush3.bf16.msra.mxu1 %v5282_v36 }
 0x19c   :  { %4815 = vmatprep.subr.bf16.mxu1 %v5370_v58 }
 0x261   :  { %v4790_v40 = vpop.f32.mrb[16].mxu1 }
 0x262   :  { %v1695_v41 = vadd.f32 %v4790_v40, %v1614_v39  ;;  %v1689_v42 = vpop.f32.mrb[17].mxu1 }
 0x263   :  { %v1690_v43 = vadd.f32 %v1689_v42, %v1609_v38 }
 0x264   :  { %v1699_v44 = vmax.f32 %v1695_v41, 0.0 }
 0x265   :  { %v1698_v45 = vmax.f32 %v1690_v43, 0.0 }
 0x267   :  { %v6029_v48 = vpack.c.bf16 %v1699_v44, %v1698_v45 }
 0x269   :  { %4800 = vmatmul.mubr.msk.bf16.vlgmr.msra.gmra.mrb[20].mxu1 %vm231_vm0, %v6029_v48  ;;  %4812 = vmatmul.mubr.msk.bf16.vlgmr.msra.gmra.mrb[20].mxu0 %vm231_vm0, %v6029_v48 }
 0x26a   :  { %4816 = vmatpush3.bf16.msra.mxu1 %v5284_v46  ;;  %4828 = vmatpush3.bf16.msra.mxu0 %v5285_v47 }
 0x26b   :  { %4817 = vmatprep.subr.bf16.mxu1 %v5370_v58  ;;  %4829 = vmatprep.subr.bf16.mxu0 %v5370_v58 }
 0x26c   :  { %4823 = vmatprep.mubr.msk.bf16.mxu1 %vm5371_vm2, %v5370_v58  ;;  %4835 = vmatprep.mubr.msk.bf16.mxu0 %vm5371_vm2, %v5370_v58 }
 0x26e   :  { %4818 = vmatpush3.bf16.msra.mxu1 %v5286_v49  ;;  %4830 = vmatpush3.bf16.msra.mxu0 %v5287_v50 }
 0x26f   :  { %4819 = vmatprep.subr.bf16.mxu1 %v5370_v58  ;;  %4831 = vmatprep.subr.bf16.mxu0 %v5370_v58 }
 0x272   :  { %4820 = vmatpush3.bf16.msra.mxu1 %v5288_v51  ;;  %4832 = vmatpush3.bf16.msra.mxu0 %v5289_v52 }
 0x273   :  { %4821 = vmatprep.subr.bf16.mxu1 %v5370_v58  ;;  %4833 = vmatprep.subr.bf16.mxu0 %v5370_v58 }
 0x276   :  { %4822 = vmatpush3.bf16.msra.mxu1 %v5290_v53  ;;  %4834 = vmatpush3.bf16.msra.mxu0 %v5291_v54 }
 0x277   :  { %4839 = vmatprep.subr.bf16.mxu1 %v5370_v58  ;;  %4851 = vmatprep.subr.bf16.mxu0 %v5370_v58 }
 0x279   :  { %4824 = vmatmul.mubr.msk.bf16.vlgmr.msra.gmra.mrb[24].mxu1 %vm231_vm0, %v6029_v48  ;;  %4836 = vmatmul.mubr.msk.bf16.vlgmr.msra.gmra.mrb[24].mxu0 %vm231_vm0, %v6029_v48 }
 0x27a   :  { %4840 = vmatpush3.bf16.msra.mxu1 %v5292_v55  ;;  %4852 = vmatpush3.bf16.msra.mxu0 %v5293_v56 }
 0x27b   :  { %4841 = vmatprep.subr.bf16.mxu1 %v5370_v58  ;;  %4853 = vmatprep.subr.bf16.mxu0 %v5370_v58 }
 0x27c   :  { %4847 = vmatprep.mubr.msk.bf16.mxu1 %vm5371_vm2, %v5370_v58  ;;  %4859 = vmatprep.mubr.msk.bf16.mxu0 %vm5371_vm2, %v5370_v58 }
 0x27e   :  { %4842 = vmatpush3.bf16.msra.mxu1 %v5294_v57  ;;  %4854 = vmatpush3.bf16.msra.mxu0 %v5295_v59 }
 0x27f   :  { %4843 = vmatprep.subr.bf16.mxu1 %v5370_v58  ;;  %4855 = vmatprep.subr.bf16.mxu0 %v5370_v58 }
 0x282   :  { %4844 = vmatpush3.bf16.msra.mxu1 %v5296_v60  ;;  %4856 = vmatpush3.bf16.msra.mxu0 %v5297_v61 }
 0x283   :  { %4845 = vmatprep.subr.bf16.mxu1 %v5370_v58  ;;  %4857 = vmatprep.subr.bf16.mxu0 %v5370_v58 }
 0x286   :  { %4846 = vmatpush3.bf16.msra.mxu1 %v5298_v62  ;;  %4858 = vmatpush3.bf16.msra.mxu0 %v5299_v63 }
 0x287   :  { %4863 = vmatprep.subr.bf16.mxu1 %v5370_v58  ;;  %4875 = vmatprep.subr.bf16.mxu0 %v5370_v58 }
 0x289   :  { %4848 = vmatmul.mubr.msk.bf16.vlgmr.msra.gmra.mrb[28].mxu1 %vm231_vm0, %v6029_v48  ;;  %4860 = vmatmul.mubr.msk.bf16.vlgmr.msra.gmra.mrb[28].mxu0 %vm231_vm0, %v6029_v48 }
 0x28a   :  { %4864 = vmatpush3.bf16.msra.mxu1 %v5300_v0  ;;  %4876 = vmatpush3.bf16.msra.mxu0 %v5301_v1 }
 0x28b   :  { %4865 = vmatprep.subr.bf16.mxu1 %v5370_v58  ;;  %4877 = vmatprep.subr.bf16.mxu0 %v5370_v58 }
 0x28c   :  { %4871 = vmatprep.mubr.msk.bf16.mxu1 %vm5371_vm2, %v5370_v58  ;;  %4883 = vmatprep.mubr.msk.bf16.mxu0 %vm5371_vm2, %v5370_v58 }
 0x28e   :  { %4866 = vmatpush3.bf16.msra.mxu1 %v5302_v2  ;;  %4878 = vmatpush3.bf16.msra.mxu0 %v5303_v3 }
 0x28f   :  { %4867 = vmatprep.subr.bf16.mxu1 %v5370_v58  ;;  %4879 = vmatprep.subr.bf16.mxu0 %v5370_v58 }
 0x292   :  { %4868 = vmatpush3.bf16.msra.mxu1 %v5304_v4  ;;  %4880 = vmatpush3.bf16.msra.mxu0 %v5305_v5 }
 0x293   :  { %4869 = vmatprep.subr.bf16.mxu1 %v5370_v58  ;;  %4881 = vmatprep.subr.bf16.mxu0 %v5370_v58 }
 0x296   :  { %4870 = vmatpush3.bf16.msra.mxu1 %v5306_v6  ;;  %4882 = vmatpush3.bf16.msra.mxu0 %v5307_v7 }
 0x297   :  { %4887 = vmatprep.subr.bf16.mxu1 %v5370_v58  ;;  %5026 = vmatprep.subr.bf16.mxu0 %v5372_v12 }
 0x299   :  { %4872 = vmatmul.mubr.msk.bf16.vlgmr.msra.gmra.mrb[32].mxu1 %vm231_vm0, %v6029_v48  ;;  %4884 = vmatmul.mubr.msk.bf16.vlgmr.msra.gmra.mrb[32].mxu0 %vm231_vm0, %v6029_v48 }
 0x29a   :  { %4888 = vmatpush3.bf16.msra.mxu1 %v5308_v8  ;;  %4895 = vmatprep.mubr.msk.bf16.mxu1 %vm5371_vm2, %v5370_v58 }
 0x29b   :  { %4889 = vmatprep.subr.bf16.mxu1 %v5370_v58  ;;  %4340 = vmatprep.mubr.msk.f32.mxu0 %vm1777_vm3, %v2389_v34 }
 0x29e   :  { %4890 = vmatpush3.bf16.msra.mxu1 %v5309_v9 }
 0x29f   :  { %4891 = vmatprep.subr.bf16.mxu1 %v5370_v58 }
 0x2a2   :  { %4892 = vmatpush3.bf16.msra.mxu1 %v5310_v10 }
 0x2a3   :  { %4893 = vmatprep.subr.bf16.mxu1 %v5370_v58  ;;  %v2415_v58 = vld [vmem:[%s6534_s7 + $0x8] sm:$0xff]  ;;  %s6558_s7 = sld [smem:[#allocation11_spill]] }
 0x2a4   :  { %2425 = vperm.xlu1 %5131, %v2415_v58  }
 0x2a6   :  { %4894 = vmatpush3.bf16.msra.mxu1 %v5311_v11 }
 0x2a8   :  { %2435 = vperm.xlu1 %5131, %v2417_v14  }
 0x2a9   :  { %4896 = vmatmul.mubr.msk.bf16.vlgmr.msra.gmra.mrb[36].mxu1 %vm231_vm0, %v6029_v48 }
 0x2ac   :  { %3180 = vperm.xlu1 %5131, %v3166_v15  }
 0x2b0   :  { %3190 = vperm.xlu1 %5131, %v3168_v16  }
 0x2b4   :  { %3200 = vperm.xlu1 %5131, %v3170_v17  }
 0x2b8   :  { %3210 = vperm.xlu1 %5131, %v3172_v18  }
 0x2bc   :  { %3562 = vperm.xlu1 %5131, %v3554_v19  }
 0x2c0   :  { %3657 = vperm.xlu1 %5131, %v3649_v20  }
 0x2c4   :  { %3467 = vperm.xlu1 %5131, %v3459_v21  }
 0x33c   :  { %v1770_v22 = vpop.f32.mrb[20].mxu1  ;;  %v1847_v23 = vpop.f32.mrb[20].mxu0 }
 0x33d   :  { %1778 = vst.msk [vmem:[#allocation3] sm:$0xff] %vm1777_vm3, %v1770_v22  ;;  %1854 = vst.msk [vmem:[#allocation3 + $0x10] sm:$0xff] %vm1777_vm3, %v1847_v23  ;;  %v4801_v24 = vpop.f32.mrb[21].mxu1  ;;  %v4813_v25 = vpop.f32.mrb[21].mxu0  ;;  %v2388_v23 = vld [vmem:[%s6533_s6] sm:$0xff] }
 0x33e   :  { %v1773_v26 = vpop.f32.mrb[22].mxu1  ;;  %v1850_v27 = vpop.f32.mrb[22].mxu0  ;;  %v2391_v24 = vld [vmem:[%s6533_s6 + $0x18] sm:$0xff]  ;;  %v2393_v25 = vld [vmem:[%s6533_s6 + $0x28] sm:$0xff] }
 0x33f   :  { %1779 = vst.msk [vmem:[#allocation3 + $0x8] sm:$0xff] %vm1777_vm3, %v1773_v26  ;;  %1855 = vst.msk [vmem:[#allocation3 + $0x18] sm:$0xff] %vm1777_vm3, %v1850_v27  ;;  %v4802_v28 = vpop.f32.mrb[23].mxu1  ;;  %v4814_v29 = vpop.f32.mrb[23].mxu0  ;;  %v2392_v26 = vld [vmem:[%s6533_s6 + $0x20] sm:$0xff]  ;;  %v2395_v27 = vld [vmem:[%s6533_s6 + $0x38] sm:$0xff] }
 0x340   :  { %v2394_v28 = vld [vmem:[%s6533_s6 + $0x30] sm:$0xff]  ;;  %v5312_v29 = vld [vmem:[%s6558_s7 + $0x8] sm:$0xff]  }
 0x341   :  { %4905 = vmatprep.subr.bf16.mxu1 %v5312_v29 }
 0x342   :  { %4906 = vmatpush3.bf16.msra.mxu1 %v5312_v29 }
 0x344   :  { %v2396_v30 = vld [vmem:[#allocation3] sm:$0xff]  ;;  %v2398_v35 = vld [vmem:[#allocation3 + $0x10] sm:$0xff] }
 0x346   :  { %v2397_v31 = vld [vmem:[#allocation3 + $0x8] sm:$0xff]  ;;  %v2399_v33 = vld [vmem:[#allocation3 + $0x18] sm:$0xff] }
 0x347   :  { %v5027_v32 = vpack.c.bf16 %v2397_v31, %v2396_v30  ;;  %v5030_v36 = vpack.c.bf16 %v2399_v33, %v2398_v35  ;;  %v5313_v30 = vld [vmem:[%s6558_s7] sm:$0xff]   ;;  %v5314_v31 = vld [vmem:[%s6558_s7 + $0x10] sm:$0xff]   ;;  %v2421_v33 = vpop.permute.xlu1 %2420 }
 0x348   :  { %4911 = vmatprep.subr.bf16.mxu1 %v5314_v31 }
 0x349   :  { %5028 = vmatpush1.bf16.msra.mxu0 %v5027_v32  ;;  %v5315_v32 = vld [vmem:[%s6558_s7 + $0x30] sm:$0xff]  }
 0x34a   :  { %5029 = vmatprep.subr.bf16.mxu0 %v5372_v12 }
 0x34c   :  { %v1923_v37 = vpop.f32.mrb[24].mxu1  ;;  %v1999_v38 = vpop.f32.mrb[24].mxu0 }
 0x34d   :  { %1930 = vst.msk [vmem:[#allocation3 + $0x20] sm:$0xff] %vm1777_vm3, %v1923_v37  ;;  %2006 = vst.msk [vmem:[#allocation3 + $0x30] sm:$0xff] %vm1777_vm3, %v1999_v38  ;;  %v4825_v39 = vpop.f32.mrb[25].mxu1  ;;  %v4837_v40 = vpop.f32.mrb[25].mxu0  ;;  %5031 = vmatpush1.bf16.msra.mxu0 %v5030_v36 }
 0x34e   :  { %v1926_v41 = vpop.f32.mrb[26].mxu1  ;;  %v2002_v42 = vpop.f32.mrb[26].mxu0  ;;  %5032 = vmatprep.subr.bf16.mxu0 %v5372_v12 }
 0x34f   :  { %1931 = vst.msk [vmem:[#allocation3 + $0x28] sm:$0xff] %vm1777_vm3, %v1926_v41  ;;  %2007 = vst.msk [vmem:[#allocation3 + $0x38] sm:$0xff] %vm1777_vm3, %v2002_v42  ;;  %v4826_v43 = vpop.f32.mrb[27].mxu1  ;;  %v4838_v44 = vpop.f32.mrb[27].mxu0 }
 0x350   :  { %v2426_v38 = vpop.permute.xlu1 %2425 }
 0x354   :  { %v2400_v45 = vld [vmem:[#allocation3 + $0x20] sm:$0xff]  ;;  %v2402_v50 = vld [vmem:[#allocation3 + $0x30] sm:$0xff] }
 0x356   :  { %v2401_v46 = vld [vmem:[#allocation3 + $0x28] sm:$0xff]  ;;  %v2403_v49 = vld [vmem:[#allocation3 + $0x38] sm:$0xff] }
 0x357   :  { %v5033_v47 = vpack.c.bf16 %v2401_v46, %v2400_v45  ;;  %v5036_v51 = vpack.c.bf16 %v2403_v49, %v2402_v50  ;;  %v2436_v50 = vpop.permute.xlu1 %2435 }
 0x359   :  { %5034 = vmatpush1.bf16.msra.mxu0 %v5033_v47  ;;  %v2431_v47 = vpop.permute.xlu0 %2430 }
 0x35a   :  { %5035 = vmatprep.subr.bf16.mxu0 %v5372_v12 }
 0x35c   :  { %v2075_v52 = vpop.f32.mrb[28].mxu1  ;;  %v2151_v53 = vpop.f32.mrb[28].mxu0 }
 0x35d   :  { %2082 = vst.msk [vmem:[#allocation3 + $0x40] sm:$0xff] %vm1777_vm3, %v2075_v52  ;;  %2158 = vst.msk [vmem:[#allocation3 + $0x50] sm:$0xff] %vm1777_vm3, %v2151_v53  ;;  %v4849_v54 = vpop.f32.mrb[29].mxu1  ;;  %v4861_v55 = vpop.f32.mrb[29].mxu0  ;;  %5037 = vmatpush1.bf16.msra.mxu0 %v5036_v51 }
 0x35e   :  { %v2078_v56 = vpop.f32.mrb[30].mxu1  ;;  %v2154_v57 = vpop.f32.mrb[30].mxu0  ;;  %5038 = vmatprep.subr.bf16.mxu0 %v5372_v12 }
 0x35f   :  { %2083 = vst.msk [vmem:[#allocation3 + $0x48] sm:$0xff] %vm1777_vm3, %v2078_v56  ;;  %2159 = vst.msk [vmem:[#allocation3 + $0x58] sm:$0xff] %vm1777_vm3, %v2154_v57  ;;  %v4850_v59 = vpop.f32.mrb[31].mxu1  ;;  %v4862_v60 = vpop.f32.mrb[31].mxu0  ;;  %v5316_v57 = vld [vmem:[%s6558_s7 + $0x18] sm:$0xff]  }
 0x360   :  { %v5317_v59 = vld [vmem:[%s6558_s7 + $0x40] sm:$0xff]  }
 0x361   :  { %v5318_v60 = vld [vmem:[%s6558_s7 + $0x20] sm:$0xff]  }
 0x364   :  { %v2404_v61 = vld [vmem:[#allocation3 + $0x40] sm:$0xff]  ;;  %v2406_v1 = vld [vmem:[#allocation3 + $0x50] sm:$0xff] }
 0x366   :  { %v2405_v62 = vld [vmem:[#allocation3 + $0x48] sm:$0xff]  ;;  %v2407_v0 = vld [vmem:[#allocation3 + $0x58] sm:$0xff] }
 0x367   :  { %v5039_v63 = vpack.c.bf16 %v2405_v62, %v2404_v61  ;;  %v5042_v2 = vpack.c.bf16 %v2407_v0, %v2406_v1  ;;  %v5319_v61 = vld [vmem:[%s6558_s7 + $0x28] sm:$0xff]   ;;  %v5320_v62 = vld [vmem:[%s6558_s7 + $0x38] sm:$0xff]  }
 0x368   :  { %v3106_v0 = vld [vmem:[%s6535_s8 + $0x8] sm:$0xff] }
 0x369   :  { %5040 = vmatpush1.bf16.msra.mxu0 %v5039_v63  ;;  %v3107_v63 = vld [vmem:[%s6535_s8 + $0x10] sm:$0xff] }
 0x36a   :  { %5041 = vmatprep.subr.bf16.mxu0 %v5372_v12 }
 0x36c   :  { %v2227_v3 = vpop.f32.mrb[32].mxu1  ;;  %v2303_v4 = vpop.f32.mrb[32].mxu0 }
 0x36d   :  { %2234 = vst.msk [vmem:[#allocation3 + $0x60] sm:$0xff] %vm1777_vm3, %v2227_v3  ;;  %2310 = vst.msk [vmem:[#allocation3 + $0x70] sm:$0xff] %vm1777_vm3, %v2303_v4  ;;  %v4873_v5 = vpop.f32.mrb[33].mxu1  ;;  %v4885_v6 = vpop.f32.mrb[33].mxu0  ;;  %5043 = vmatpush1.bf16.msra.mxu0 %v5042_v2 }
 0x36e   :  { %v2230_v7 = vpop.f32.mrb[34].mxu1  ;;  %v2306_v8 = vpop.f32.mrb[34].mxu0  ;;  %5044 = vmatprep.subr.bf16.mxu0 %v5372_v12 }
 0x36f   :  { %2235 = vst.msk [vmem:[#allocation3 + $0x68] sm:$0xff] %vm1777_vm3, %v2230_v7  ;;  %2311 = vst.msk [vmem:[#allocation3 + $0x78] sm:$0xff] %vm1777_vm3, %v2306_v8  ;;  %v4874_v9 = vpop.f32.mrb[35].mxu1  ;;  %v4886_v10 = vpop.f32.mrb[35].mxu0 }
 0x374   :  { %v2408_v11 = vld [vmem:[#allocation3 + $0x60] sm:$0xff]  ;;  %v2410_v14 = vld [vmem:[#allocation3 + $0x70] sm:$0xff] }
 0x376   :  { %v2409_v34 = vld [vmem:[#allocation3 + $0x68] sm:$0xff]  ;;  %v2411_v58 = vld [vmem:[#allocation3 + $0x78] sm:$0xff] }
 0x377   :  { %v5045_v13 = vpack.c.bf16 %v2409_v34, %v2408_v11  ;;  %v5048_v15 = vpack.c.bf16 %v2411_v58, %v2410_v14 }
 0x379   :  { %5046 = vmatpush1.bf16.msra.mxu0 %v5045_v13 }
 0x37a   :  { %5047 = vmatprep.subr.bf16.mxu0 %v5372_v12 }
 0x37c   :  { %v2379_v16 = vpop.f32.mrb[36].mxu1 }
 0x37d   :  { %2386 = vst.msk [vmem:[#allocation3 + $0x80] sm:$0xff] %vm1777_vm3, %v2379_v16  ;;  %v4897_v17 = vpop.f32.mrb[37].mxu1  ;;  %5049 = vmatpush1.bf16.msra.mxu0 %v5048_v15 }
 0x37e   :  { %v2382_v18 = vpop.f32.mrb[38].mxu1  ;;  %5050 = vmatprep.subr.bf16.mxu0 %v5372_v12  ;;  %v2390_v12 = vld [vmem:[%s6533_s6 + $0x10] sm:$0xff] }
 0x37f   :  { %2387 = vst.msk [vmem:[#allocation3 + $0x88] sm:$0xff] %vm1777_vm3, %v2382_v18  ;;  %v4898_v19 = vpop.f32.mrb[39].mxu1 }
 0x384   :  { %v2412_v20 = vld [vmem:[#allocation3 + $0x80] sm:$0xff] }
 0x386   :  { %v2413_v21 = vld [vmem:[#allocation3 + $0x88] sm:$0xff] }
 0x387   :  { %v5051_v22 = vpack.c.bf16 %v2413_v21, %v2412_v20 }
 0x389   :  { %5052 = vmatpush1.bf16.msra.mxu0 %v5051_v22 }
 0x38a   :  { %4899 = vmatprep.subr.bf16.mxu0 %v5313_v30 }
 0x38c   :  { %2515 = vmatmul.mubr.f32.vlgmr.msra.gmra.mrb[36].mxu0 %v2388_v23 }
 0x38d   :  { %4341 = vmatprep.mubr.msk.f32.mxu0 %vm1777_vm3, %v2391_v24  ;;  %4900 = vmatpush3.bf16.msra.mxu0 %v5313_v30 }
 0x38e   :  { %4935 = vmatprep.subr.bf16.mxu0 %v5315_v32 }
 0x390   :  { %2520 = vmatmul.mubr.f32.gmra.mrb[38].mxu0 %v2390_v12 }
 0x391   :  { %4342 = vmatprep.mubr.msk.f32.mxu0 %vm1777_vm3, %v2393_v25 }
 0x394   :  { %2525 = vmatmul.mubr.f32.gmra.mrb[40].mxu0 %v2392_v26 }
 0x395   :  { %4343 = vmatprep.mubr.msk.f32.mxu0 %vm1777_vm3, %v2395_v27 }
 0x398   :  { %2530 = vmatmul.mubr.f32.gmra.mrb[42].mxu0 %v2394_v28 }
 0x45f   :  { %v2516_v35 = vpop.f32.mrb[36].mxu0 }
 0x460   :  { %v2518_v36 = vpop.f32.mrb[37].mxu0  ;;  %v2517_v37 = vadd.f32 %v2516_v35, %v2421_v33 }
 0x462   :  { %v2535_v42 = vmax.f32 %v2517_v37, 0.0  ;;  %v3110_v37 = vld [vmem:[%s6535_s8 + $0x28] sm:$0xff] }
 0x463   :  { %v2521_v39 = vpop.f32.mrb[38].mxu0 }
 0x464   :  { %v2522_v40 = vadd.f32 %v2521_v39, %v2426_v38  ;;  %v2523_v41 = vpop.f32.mrb[39].mxu0 }
 0x466   :  { %v2536_v43 = vmax.f32 %v2522_v40, 0.0 }
 0x467   :  { %v2526_v44 = vpop.f32.mrb[40].mxu0 }
 0x468   :  { %v6264_v45 = vpack.c.bf16 %v2536_v43, %v2535_v42  ;;  %v2528_v46 = vpop.f32.mrb[41].mxu0  ;;  %v2527_v49 = vadd.f32 %v2526_v44, %v2431_v47 }
 0x46a   :  { %4901 = vmatprep.mubr.msk.bf16.mxu0 %vm1777_vm3, %v6264_v45  ;;  %4907 = vmatprep.mubr.msk.bf16.mxu1 %vm1777_vm3, %v6264_v45  ;;  %v2537_v54 = vmax.f32 %v2527_v49, 0.0 }
 0x46b   :  { %v2531_v51 = vpop.f32.mrb[42].mxu0 }
 0x46c   :  { %v2532_v52 = vadd.f32 %v2531_v51, %v2436_v50  ;;  %v2533_v53 = vpop.f32.mrb[43].mxu0  ;;  %v3113_v50 = vld [vmem:[%s6535_s8 + $0x40] sm:$0xff] }
 0x46e   :  { %v2538_v55 = vmax.f32 %v2532_v52, 0.0  ;;  %v3116_v52 = vld [vmem:[%s6535_s8 + $0x58] sm:$0xff] }
 0x470   :  { %v6270_v56 = vpack.c.bf16 %v2538_v55, %v2537_v54 }
 0x472   :  { %4902 = vmatmul.mubr.msk.bf16.vlgmr.msra.gmra.mrb[44].mxu0 %vm1777_vm3, %v6270_v56  ;;  %4908 = vmatmul.mubr.msk.bf16.vlgmr.msra.gmra.mrb[40].mxu1 %vm1777_vm3, %v6270_v56 }
 0x473   :  { %4912 = vmatpush3.bf16.msra.mxu1 %v5314_v31  ;;  %4913 = vmatprep.mubr.msk.bf16.mxu1 %vm1777_vm3, %v6264_v45 }
 0x474   :  { %4937 = vmatprep.mubr.msk.bf16.mxu0 %vm1777_vm3, %v6264_v45  ;;  %4936 = vmatpush3.bf16.msra.mxu0 %v5315_v32 }
 0x475   :  { %4917 = vmatprep.subr.bf16.mxu1 %v5316_v57  ;;  %4947 = vmatprep.subr.bf16.mxu0 %v5317_v59 }
 0x47a   :  { %4914 = vmatmul.mubr.msk.bf16.vlgmr.msra.gmra.mrb[44].mxu1 %vm1777_vm3, %v6270_v56  ;;  %4938 = vmatmul.mubr.msk.bf16.vlgmr.msra.gmra.mrb[48].mxu0 %vm1777_vm3, %v6270_v56 }
 0x47b   :  { %4918 = vmatpush3.bf16.msra.mxu1 %v5316_v57  ;;  %4919 = vmatprep.mubr.msk.bf16.mxu1 %vm1777_vm3, %v6264_v45 }
 0x47c   :  { %4949 = vmatprep.mubr.msk.bf16.mxu0 %vm1777_vm3, %v6264_v45  ;;  %4948 = vmatpush3.bf16.msra.mxu0 %v5317_v59  ;;  %v3119_v59 = vld [vmem:[%s6535_s8 + $0x70] sm:$0xff] }
 0x47d   :  { %4923 = vmatprep.subr.bf16.mxu1 %v5318_v60 }
 0x482   :  { %4920 = vmatmul.mubr.msk.bf16.vlgmr.msra.gmra.mrb[48].mxu1 %vm1777_vm3, %v6270_v56  ;;  %4950 = vmatmul.mubr.msk.bf16.vlgmr.msra.gmra.mrb[52].mxu0 %vm1777_vm3, %v6270_v56 }
 0x483   :  { %4924 = vmatpush3.bf16.msra.mxu1 %v5318_v60  ;;  %4925 = vmatprep.mubr.msk.bf16.mxu1 %vm1777_vm3, %v6264_v45  ;;  %v3122_v60 = vld [vmem:[%s6535_s8 + $0x88] sm:$0xff] }
 0x484   :  { %4929 = vmatprep.subr.bf16.mxu1 %v5319_v61  ;;  %4961 = vmatprep.mubr.msk.f32.mxu0 %vm3213_vm4, %v3107_v63 }
 0x48a   :  { %4926 = vmatmul.mubr.msk.bf16.vlgmr.msra.gmra.mrb[52].mxu1 %vm1777_vm3, %v6270_v56 }
 0x48b   :  { %4930 = vmatpush3.bf16.msra.mxu1 %v5319_v61  ;;  %4931 = vmatprep.mubr.msk.bf16.mxu1 %vm1777_vm3, %v6264_v45 }
 0x48c   :  { %4941 = vmatprep.subr.bf16.mxu1 %v5320_v62 }
 0x492   :  { %4932 = vmatmul.mubr.msk.bf16.vlgmr.msra.gmra.mrb[56].mxu1 %vm1777_vm3, %v6270_v56 }
 0x493   :  { %4943 = vmatprep.mubr.msk.bf16.mxu1 %vm1777_vm3, %v6264_v45  ;;  %4942 = vmatpush3.bf16.msra.mxu1 %v5320_v62 }
 0x49a   :  { %4944 = vmatmul.mubr.msk.bf16.vlgmr.msra.gmra.mrb[60].mxu1 %vm1777_vm3, %v6270_v56 }
 0x49b   :  { %3302 = vmatprep.mubr.f32.mxu1 %v3106_v0 }
 0x545   :  { %v4903_v1 = vpop.f32.mrb[44].mxu0  ;;  %v4909_v2 = vpop.f32.mrb[40].mxu1 }
 0x546   :  { %2607 = vst.msk [vmem:[#allocation4 + $0x10] sm:$0xff] %vm2604_vm5, %v4903_v1  ;;  %2669 = vst.msk [vmem:[#allocation4 + $0x30] sm:$0xff] %vm2604_vm5, %v4909_v2  ;;  %v2589_v3 = vpop.f32.mrb[45].mxu0  ;;  %v2652_v4 = vpop.f32.mrb[41].mxu1 }
 0x547   :  { %2605 = vst.msk [vmem:[#allocation4] sm:$0xff] %vm2604_vm5, %v2589_v3  ;;  %2667 = vst.msk [vmem:[#allocation4 + $0x20] sm:$0xff] %vm2604_vm5, %v2652_v4  ;;  %v4904_v5 = vpop.f32.mrb[46].mxu0  ;;  %v4910_v6 = vpop.f32.mrb[42].mxu1  ;;  %v3125_v4 = vld [vmem:[%s6535_s8 + $0xa0] sm:$0xff] }
 0x548   :  { %2608 = vst.msk [vmem:[#allocation4 + $0x18] sm:$0xff] %vm2604_vm5, %v4904_v5  ;;  %2670 = vst.msk [vmem:[#allocation4 + $0x38] sm:$0xff] %vm2604_vm5, %v4910_v6  ;;  %v2592_v7 = vpop.f32.mrb[47].mxu0  ;;  %v2655_v8 = vpop.f32.mrb[43].mxu1 }
 0x549   :  { %2606 = vst.msk [vmem:[#allocation4 + $0x8] sm:$0xff] %vm2604_vm5, %v2592_v7  ;;  %2668 = vst.msk [vmem:[#allocation4 + $0x28] sm:$0xff] %vm2604_vm5, %v2655_v8  ;;  %v3128_v8 = vld [vmem:[%s6535_s8 + $0xb8] sm:$0xff] }
 0x54d   :  { %v4915_v9 = vpop.f32.mrb[44].mxu1  ;;  %v4939_v10 = vpop.f32.mrb[48].mxu0  ;;  %v3131_v54 = vld [vmem:[#allocation4 + $0x10] sm:$0xff] }
 0x54e   :  { %2731 = vst.msk [vmem:[#allocation4 + $0x50] sm:$0xff] %vm2604_vm5, %v4915_v9  ;;  %2979 = vst.msk [vmem:[#allocation4 + $0xd0] sm:$0xff] %vm2604_vm5, %v4939_v10  ;;  %v2714_v11 = vpop.f32.mrb[45].mxu1  ;;  %v2962_v34 = vpop.f32.mrb[49].mxu0  ;;  %v3129_v44 = vld [vmem:[#allocation4] sm:$0xff]  ;;  %v3135_v10 = vld [vmem:[#allocation4 + $0x30] sm:$0xff] }
 0x54f   :  { %2729 = vst.msk [vmem:[#allocation4 + $0x40] sm:$0xff] %vm2604_vm5, %v2714_v11  ;;  %2977 = vst.msk [vmem:[#allocation4 + $0xc0] sm:$0xff] %vm2604_vm5, %v2962_v34  ;;  %v4916_v13 = vpop.f32.mrb[46].mxu1  ;;  %v4940_v58 = vpop.f32.mrb[50].mxu0  ;;  %v3132_v51 = vld [vmem:[#allocation4 + $0x18] sm:$0xff]  ;;  %v3133_v3 = vld [vmem:[#allocation4 + $0x20] sm:$0xff] }
 0x550   :  { %2732 = vst.msk [vmem:[#allocation4 + $0x58] sm:$0xff] %vm2604_vm5, %v4916_v13  ;;  %2980 = vst.msk [vmem:[#allocation4 + $0xd8] sm:$0xff] %vm2604_vm5, %v4940_v58  ;;  %v2717_v14 = vpop.f32.mrb[47].mxu1  ;;  %v2965_v15 = vpop.f32.mrb[51].mxu0  ;;  %v3130_v38 = vld [vmem:[#allocation4 + $0x8] sm:$0xff]  ;;  %v5059_v57 = vpack.c.bf16 %v3132_v51, %v3131_v54  ;;  %v3126_v51 = vld [vmem:[%s6535_s8 + $0xa8] sm:$0xff] }
 0x551   :  { %2730 = vst.msk [vmem:[#allocation4 + $0x48] sm:$0xff] %vm2604_vm5, %v2717_v14  ;;  %2978 = vst.msk [vmem:[#allocation4 + $0xc8] sm:$0xff] %vm2604_vm5, %v2965_v15  ;;  %v5055_v46 = vpack.c.bf16 %v3130_v38, %v3129_v44  ;;  %v3134_v61 = vld [vmem:[#allocation4 + $0x28] sm:$0xff]  ;;  %v3552_v15 = vld [vmem:[%s6539_s12 + $0x8] sm:$0xff] }
 0x552   :  { %v5063_v5 = vpack.c.bf16 %v3134_v61, %v3133_v3  ;;  %v3551_v11 = vld [vmem:[%s6539_s12] sm:$0xff]  ;;  %v3108_v38 = vld [vmem:[%s6535_s8 + $0x18] sm:$0xff]  ;;  %s3806_s12 = sshll.u32 %s5375_s23, 4  ;;  %s3807_s12 = int_to_ptr.vmem [resolvable:$true] %s3806_s12 }
 0x553   :  { %v3121_v44 = vld [vmem:[%s6535_s8 + $0x80] sm:$0xff]  ;;  %p5350_p1 = scmp.lt.s32.totalorder %s3807_s12, %s3807_s12 }
 0x554   :  { %v3646_v54 = vld [vmem:[%s6541_s14] sm:$0xff] }
 0x555   :  { %v4921_v16 = vpop.f32.mrb[48].mxu1  ;;  %v4951_v17 = vpop.f32.mrb[52].mxu0 }
 0x556   :  { %2793 = vst.msk [vmem:[#allocation4 + $0x70] sm:$0xff] %vm2604_vm5, %v4921_v16  ;;  %3103 = vst.msk [vmem:[#allocation4 + $0x110] sm:$0xff] %vm2604_vm5, %v4951_v17  ;;  %v2776_v18 = vpop.f32.mrb[49].mxu1  ;;  %v3086_v19 = vpop.f32.mrb[53].mxu0  ;;  %v3153_v13 = vld [vmem:[#allocation4 + $0xc0] sm:$0xff] }
 0x557   :  { %2791 = vst.msk [vmem:[#allocation4 + $0x60] sm:$0xff] %vm2604_vm5, %v2776_v18  ;;  %3101 = vst.msk [vmem:[#allocation4 + $0x100] sm:$0xff] %vm2604_vm5, %v3086_v19  ;;  %v4922_v20 = vpop.f32.mrb[50].mxu1  ;;  %v4952_v21 = vpop.f32.mrb[54].mxu0  ;;  %v3156_v16 = vld [vmem:[#allocation4 + $0xd8] sm:$0xff]  ;;  %v3137_v17 = vld [vmem:[#allocation4 + $0x40] sm:$0xff] }
 0x558   :  { %2794 = vst.msk [vmem:[#allocation4 + $0x78] sm:$0xff] %vm2604_vm5, %v4922_v20  ;;  %3104 = vst.msk [vmem:[#allocation4 + $0x118] sm:$0xff] %vm2604_vm5, %v4952_v21  ;;  %v2779_v22 = vpop.f32.mrb[51].mxu1  ;;  %v3089_v23 = vpop.f32.mrb[55].mxu0  ;;  %v3154_v9 = vld [vmem:[#allocation4 + $0xc8] sm:$0xff]  ;;  %v3155_v19 = vld [vmem:[#allocation4 + $0xd0] sm:$0xff] }
 0x559   :  { %2792 = vst.msk [vmem:[#allocation4 + $0x68] sm:$0xff] %vm2604_vm5, %v2779_v22  ;;  %3102 = vst.msk [vmem:[#allocation4 + $0x108] sm:$0xff] %vm2604_vm5, %v3089_v23  ;;  %v5069_v58 = vpack.c.bf16 %v3154_v9, %v3153_v13  ;;  %v3138_v14 = vld [vmem:[#allocation4 + $0x48] sm:$0xff]  ;;  %v5073_v20 = vpack.c.bf16 %v3156_v16, %v3155_v19  ;;  %v3140_v21 = vld [vmem:[#allocation4 + $0x58] sm:$0xff] }
 0x55a   :  { %v5071_v18 = vpack.c.bf16 %v3138_v14, %v3137_v17  ;;  %v3139_v23 = vld [vmem:[#allocation4 + $0x50] sm:$0xff] }
 0x55d   :  { %v4927_v24 = vpop.f32.mrb[52].mxu1  ;;  %v3163_v31 = vld [vmem:[#allocation4 + $0x110] sm:$0xff] }
 0x55e   :  { %2855 = vst.msk [vmem:[#allocation4 + $0x90] sm:$0xff] %vm2604_vm5, %v4927_v24  ;;  %v2838_v12 = vpop.f32.mrb[53].mxu1  ;;  %v3161_v27 = vld [vmem:[#allocation4 + $0x100] sm:$0xff]  ;;  %v5075_v24 = vpack.c.bf16 %v3140_v21, %v3139_v23 }
 0x55f   :  { %2853 = vst.msk [vmem:[#allocation4 + $0x80] sm:$0xff] %vm2604_vm5, %v2838_v12  ;;  %v4928_v25 = vpop.f32.mrb[54].mxu1  ;;  %v3164_v29 = vld [vmem:[#allocation4 + $0x118] sm:$0xff] }
 0x560   :  { %2856 = vst.msk [vmem:[#allocation4 + $0x98] sm:$0xff] %vm2604_vm5, %v4928_v25  ;;  %v2841_v26 = vpop.f32.mrb[55].mxu1  ;;  %v3162_v28 = vld [vmem:[#allocation4 + $0x108] sm:$0xff]  ;;  %v5089_v32 = vpack.c.bf16 %v3164_v29, %v3163_v31 }
 0x561   :  { %2854 = vst.msk [vmem:[#allocation4 + $0x88] sm:$0xff] %vm2604_vm5, %v2841_v26  ;;  %v5085_v30 = vpack.c.bf16 %v3162_v28, %v3161_v27  ;;  %v3142_v26 = vld [vmem:[#allocation4 + $0x68] sm:$0xff]  ;;  %v3141_v28 = vld [vmem:[#allocation4 + $0x60] sm:$0xff] }
 0x562   :  { %v5079_v29 = vpack.c.bf16 %v3142_v26, %v3141_v28 }
 0x563   :  { %5086 = vmatprep.subr.bf16.mxu0 %v5085_v30 }
 0x564   :  { %5088 = vmatpush3.bf16.msra.mxu0 %v5085_v30 }
 0x565   :  { %v4933_v33 = vpop.f32.mrb[56].mxu1  ;;  %5090 = vmatprep.subr.bf16.mxu0 %v5089_v32  ;;  %v3147_v47 = vld [vmem:[#allocation4 + $0x90] sm:$0xff] }
 0x566   :  { %2917 = vst.msk [vmem:[#allocation4 + $0xb0] sm:$0xff] %vm2604_vm5, %v4933_v33  ;;  %v2900_v35 = vpop.f32.mrb[57].mxu1  ;;  %v3145_v40 = vld [vmem:[#allocation4 + $0x80] sm:$0xff]  ;;  %v3143_v33 = vld [vmem:[#allocation4 + $0x70] sm:$0xff] }
 0x567   :  { %2915 = vst.msk [vmem:[#allocation4 + $0xa0] sm:$0xff] %vm2604_vm5, %v2900_v35  ;;  %v4934_v36 = vpop.f32.mrb[58].mxu1  ;;  %v3148_v42 = vld [vmem:[#allocation4 + $0x98] sm:$0xff] }
 0x568   :  { %2918 = vst.msk [vmem:[#allocation4 + $0xb8] sm:$0xff] %vm2604_vm5, %v4934_v36  ;;  %v2903_v39 = vpop.f32.mrb[59].mxu1  ;;  %5092 = vmatpush3.bf16.msra.mxu0 %v5089_v32  ;;  %v3146_v41 = vld [vmem:[#allocation4 + $0x88] sm:$0xff]  ;;  %v5057_v49 = vpack.c.bf16 %v3148_v42, %v3147_v47  ;;  %v3144_v32 = vld [vmem:[#allocation4 + $0x78] sm:$0xff]  ;;  %v3118_v42 = vld [vmem:[%s6535_s8 + $0x68] sm:$0xff] }
 0x569   :  { %2916 = vst.msk [vmem:[#allocation4 + $0xa8] sm:$0xff] %vm2604_vm5, %v2903_v39  ;;  %5098 = vmatprep.subr.bf16.mxu0 %v6264_v45  ;;  %v5053_v43 = vpack.c.bf16 %v3146_v41, %v3145_v40  ;;  %v5083_v35 = vpack.c.bf16 %v3144_v32, %v3143_v33  ;;  %v3105_v36 = vld [vmem:[%s6535_s8] sm:$0xff]  ;;  %v3112_v39 = vld [vmem:[%s6535_s8 + $0x38] sm:$0xff]  ;;  %v3111_v40 = vld [vmem:[%s6535_s8 + $0x30] sm:$0xff] }
 0x56a   :  { %v3115_v41 = vld [vmem:[%s6535_s8 + $0x50] sm:$0xff]  ;;  %v3124_v47 = vld [vmem:[%s6535_s8 + $0x98] sm:$0xff] }
 0x56b   :  { %5054 = vmatprep.subr.bf16.mxu1 %v5053_v43  ;;  %4962 = vmatmul.mubr.msk.f32.vlgmr.msra.gmra.mrb[56].mxu0 %vm3213_vm4, %v3110_v37  ;;  %v3109_v37 = vld [vmem:[%s6535_s8 + $0x20] sm:$0xff] }
 0x56c   :  { %5056 = vmatpush3.bf16.msra.mxu1 %v5055_v46  ;;  %5100 = vmatpush3.bf16.msra.mxu0 %v6264_v45  ;;  %v3117_v43 = vld [vmem:[%s6535_s8 + $0x60] sm:$0xff]  ;;  %v3120_v46 = vld [vmem:[%s6535_s8 + $0x78] sm:$0xff] }
 0x56d   :  { %v4945_v53 = vpop.f32.mrb[60].mxu1  ;;  %5058 = vmatprep.subr.bf16.mxu1 %v5057_v49  ;;  %5102 = vmatprep.subr.bf16.mxu0 %v6270_v56  ;;  %v3151_v6 = vld [vmem:[#allocation4 + $0xb0] sm:$0xff]  ;;  %v3123_v49 = vld [vmem:[%s6535_s8 + $0x90] sm:$0xff] }
 0x56e   :  { %3041 = vst.msk [vmem:[#allocation4 + $0xf0] sm:$0xff] %vm2604_vm5, %v4945_v53  ;;  %v3024_v55 = vpop.f32.mrb[61].mxu1  ;;  %4964 = vmatprep.mubr.msk.f32.mxu0 %vm3213_vm4, %v3113_v50  ;;  %v3149_v63 = vld [vmem:[#allocation4 + $0xa0] sm:$0xff]  ;;  %v3127_v50 = vld [vmem:[%s6535_s8 + $0xb0] sm:$0xff]  ;;  %v3457_v53 = vld [vmem:[%s6537_s10 + $0x8] sm:$0xff] }
 0x56f   :  { %3039 = vst.msk [vmem:[#allocation4 + $0xe0] sm:$0xff] %vm2604_vm5, %v3024_v55  ;;  %v4946_v45 = vpop.f32.mrb[62].mxu1  ;;  %4965 = vmatmul.mubr.msk.f32.gmra.mrb[58].mxu0 %vm3213_vm4, %v3116_v52  ;;  %v3152_v1 = vld [vmem:[#allocation4 + $0xb8] sm:$0xff]  ;;  %v3456_v52 = vld [vmem:[%s6537_s10] sm:$0xff]  ;;  %v3181_v55 = vpop.permute.xlu1 %3180 }
 0x570   :  { %3042 = vst.msk [vmem:[#allocation4 + $0xf8] sm:$0xff] %vm2604_vm5, %v4946_v45  ;;  %v3027_v62 = vpop.f32.mrb[63].mxu1  ;;  %5060 = vmatpush3.bf16.msra.mxu1 %v5059_v57  ;;  %5104 = vmatpush3.bf16.msra.mxu0 %v6270_v56  ;;  %v3150_v0 = vld [vmem:[#allocation4 + $0xa8] sm:$0xff]  ;;  %v5065_v7 = vpack.c.bf16 %v3152_v1, %v3151_v6  ;;  %v3136_v56 = vld [vmem:[#allocation4 + $0x38] sm:$0xff]  ;;  %v3176_v57 = vpop.permute.xlu0 %3175 }
 0x571   :  { %3040 = vst.msk [vmem:[#allocation4 + $0xe8] sm:$0xff] %vm2604_vm5, %v3027_v62  ;;  %4967 = vmatprep.mubr.msk.f32.mxu0 %vm3213_vm4, %v3119_v59  ;;  %v5061_v2 = vpack.c.bf16 %v3150_v0, %v3149_v63  ;;  %v5067_v34 = vpack.c.bf16 %v3136_v56, %v3135_v10 }
 0x573   :  { %5062 = vmatprep.subr.bf16.mxu1 %v5061_v2  ;;  %4968 = vmatmul.mubr.msk.f32.gmra.mrb[60].mxu0 %vm3213_vm4, %v3122_v60  ;;  %v3191_v59 = vpop.permute.xlu1 %3190 }
 0x574   :  { %5064 = vmatpush3.bf16.msra.mxu1 %v5063_v5  ;;  %4970 = vmatprep.mubr.msk.f32.mxu0 %vm3213_vm4, %v3125_v4  ;;  %v3186_v45 = vpop.permute.xlu0 %3185 }
 0x575   :  { %5066 = vmatprep.subr.bf16.mxu1 %v5065_v7  ;;  %v3159_v30 = vld [vmem:[#allocation4 + $0xf0] sm:$0xff] }
 0x576   :  { %v3157_v12 = vld [vmem:[#allocation4 + $0xe0] sm:$0xff] }
 0x577   :  { %4971 = vmatmul.mubr.msk.f32.gmra.mrb[62].mxu0 %vm3213_vm4, %v3128_v8  ;;  %v3160_v27 = vld [vmem:[#allocation4 + $0xf8] sm:$0xff]  ;;  %v6461_v62 = vpop.permute.xlu1 %3200 }
 0x578   :  { %5068 = vmatpush3.bf16.msra.mxu1 %v5067_v34  ;;  %4988 = vmatprep.mubr.msk.f32.mxu0 %vm3213_vm4, %v3551_v11  ;;  %v3158_v22 = vld [vmem:[#allocation4 + $0xe8] sm:$0xff]  ;;  %v5081_v31 = vpack.c.bf16 %v3160_v27, %v3159_v30  ;;  %v6463_v0 = vpop.permute.xlu0 %3195 }
 0x579   :  { %5070 = vmatprep.subr.bf16.mxu1 %v5069_v58  ;;  %v5077_v25 = vpack.c.bf16 %v3158_v22, %v3157_v12 }
 0x57b   :  { %4989 = vmatmul.mubr.msk.f32.vlgmr.msra.gmra.mrb[64].mxu0 %vm3213_vm4, %v3552_v15  ;;  %v6469_v4 = vpop.permute.xlu1 %3210 }
 0x57c   :  { %5072 = vmatpush3.bf16.msra.mxu1 %v5071_v18  ;;  %5007 = vmatprep.mubr.msk.f32.mxu0 %vm231_vm0, %v3646_v54  ;;  %v6471_v5 = vpop.permute.xlu0 %3205 }
 0x57d   :  { %5074 = vmatprep.subr.bf16.mxu1 %v5073_v20 }
 0x57f   :  { %v3563_v56 = vpop.permute.xlu1 %3562 }
 0x580   :  { %5076 = vmatpush3.bf16.msra.mxu1 %v5075_v24  ;;  %v3558_v9 = vpop.permute.xlu0 %3557 }
 0x581   :  { %5078 = vmatprep.subr.bf16.mxu1 %v5077_v25 }
 0x584   :  { %5080 = vmatpush3.bf16.msra.mxu1 %v5079_v29 }
 0x585   :  { %5082 = vmatprep.subr.bf16.mxu1 %v5081_v31 }
 0x588   :  { %5084 = vmatpush3.bf16.msra.mxu1 %v5083_v35 }
 0x589   :  { %5094 = vmatprep.subr.bf16.mxu1 %v6029_v48 }
 0x58b   :  { %3303 = vmatmul.mubr.f32.vlgmr.msra.gmra.mrb[18].mxu1 %v3105_v36 }
 0x58c   :  { %5096 = vmatpush3.bf16.msra.mxu1 %v6029_v48  ;;  %3307 = vmatprep.mubr.f32.mxu1 %v3109_v37  ;;  %v3114_v48 = vld [vmem:[%s6535_s8 + $0x48] sm:$0xff] }
 0x58f   :  { %3308 = vmatmul.mubr.f32.gmra.mrb[64].mxu1 %v3108_v38 }
 0x590   :  { %3312 = vmatprep.mubr.f32.mxu1 %v3112_v39 }
 0x593   :  { %3313 = vmatmul.mubr.f32.gmra.mrb[66].mxu1 %v3111_v40 }
 0x594   :  { %3317 = vmatprep.mubr.f32.mxu1 %v3115_v41 }
 0x597   :  { %3318 = vmatmul.mubr.f32.gmra.mrb[68].mxu1 %v3114_v48 }
 0x598   :  { %3322 = vmatprep.mubr.f32.mxu1 %v3118_v42 }
 0x59b   :  { %3323 = vmatmul.mubr.f32.gmra.mrb[70].mxu1 %v3117_v43 }
 0x59c   :  { %3327 = vmatprep.mubr.f32.mxu1 %v3121_v44 }
 0x59f   :  { %3328 = vmatmul.mubr.f32.gmra.mrb[72].mxu1 %v3120_v46 }
 0x5a0   :  { %3332 = vmatprep.mubr.f32.mxu1 %v3124_v47 }
 0x5a3   :  { %3333 = vmatmul.mubr.f32.gmra.mrb[74].mxu1 %v3123_v49 }
 0x5a4   :  { %3337 = vmatprep.mubr.f32.mxu1 %v3127_v50 }
 0x5a7   :  { %3338 = vmatmul.mubr.f32.gmra.mrb[76].mxu1 %v3126_v51 }
 0x5a8   :  { %4977 = vmatprep.mubr.msk.f32.mxu1 %vm1777_vm3, %v3456_v52 }
 0x5ab   :  { %4978 = vmatmul.mubr.msk.f32.vlgmr.msra.gmra.mrb[78].mxu1 %vm1777_vm3, %v3457_v53 }
 0x63e   :  { %v4963_v60 = vpop.f32.mrb[56].mxu0 }
 0x63f   :  { %v3409_v61 = vpop.f32.mrb[57].mxu0 }
 0x642   :  { %v4966_v63 = vpop.f32.mrb[58].mxu0 }
 0x643   :  { %v3419_v1 = vpop.f32.mrb[59].mxu0 }
 0x646   :  { %v6465_v2 = vpop.f32.mrb[60].mxu0 }
 0x647   :  { %v6467_v3 = vpop.f32.mrb[61].mxu0 }
 0x64a   :  { %v6473_v6 = vpop.f32.mrb[62].mxu0 }
 0x64b   :  { %v6475_v7 = vpop.f32.mrb[63].mxu0 }
 0x64e   :  { %v4990_v8 = vpop.f32.mrb[64].mxu0 }
 0x64f   :  { %v3643_v10 = vadd.f32 %v4990_v8, %v3563_v56  ;;  %v3637_v11 = vpop.f32.mrb[65].mxu0  ;;  %v3653_v56 = vpop.permute.xlu0 %3652 }
 0x650   :  { %v3638_v34 = vadd.f32 %v3637_v11, %v3558_v9 }
 0x651   :  { %3744 = vst.msk [vmem:[%s6545_s18 + $0x8] sm:$0xff] %vm1777_vm3, %v3643_v10  ;;  %v3760_v13 = vsub.f32 0.0, %v3643_v10 }
 0x652   :  { %3743 = vst.msk [vmem:[%s6545_s18] sm:$0xff] %vm1777_vm3, %v3638_v34  ;;  %v3759_v58 = vsub.f32 0.0, %v3638_v34  ;;  %s5373_s18 = smov 64  }
 0x653   :  { %v3763_v14 = vmul.f32 1.442695, %v3760_v13 }
 0x654   :  { %v3761_v15 = vmul.f32 1.442695, %v3759_v58 }
 0x655   :  { %5321 = vpow2.f32 %v3763_v14 }
 0x656   :  { %5323 = vpow2.f32 %v3761_v15  ;;  %v3463_v15 = vpop.permute.xlu0 %3462 }
 0x65e   :  { %v4714_v16 = vpop.f32.mrb[18].mxu1 }
 0x65f   :  { %v5322_v17 = vpop.eup %5321  ;;  %v4715_v18 = vpop.f32.mrb[19].mxu1 }
 0x660   :  { %v5324_v19 = vpop.eup %5323  ;;  %v3766_v20 = vadd.f32 1.0, %v5322_v17  ;;  %v4716_v21 = vadd.f32 %v4715_v18, %v4714_v16 }
 0x661   :  { %v3765_v22 = vadd.f32 1.0, %v5324_v19 }
 0x662   :  { %5325 = vrcp.f32 %v3766_v20  ;;  %v3305_v23 = vadd.f32 %v4716_v21, %v3176_v57  ;;  %v4717_v24 = vpop.f32.mrb[64].mxu1 }
 0x663   :  { %5327 = vrcp.f32 %v3765_v22  ;;  %v4718_v12 = vpop.f32.mrb[65].mxu1 }
 0x664   :  { %v3410_v25 = vadd.f32 %v3409_v61, %v3305_v23  ;;  %v4719_v26 = vadd.f32 %v4718_v12, %v4717_v24  ;;  %v3658_v61 = vpop.permute.xlu1 %3657 }
 0x666   :  { %v3310_v27 = vadd.f32 %v4719_v26, %v3181_v55  ;;  %v4720_v28 = vpop.f32.mrb[66].mxu1  ;;  %v3448_v32 = vmax.f32 %v3410_v25, 0.0 }
 0x667   :  { %v4721_v29 = vpop.f32.mrb[67].mxu1 }
 0x668   :  { %v3415_v30 = vadd.f32 %v4963_v60, %v3310_v27  ;;  %v4722_v31 = vadd.f32 %v4721_v29, %v4720_v28 }
 0x66a   :  { %v3449_v33 = vmax.f32 %v3415_v30, 0.0  ;;  %v3315_v35 = vadd.f32 %v4722_v31, %v3186_v45  ;;  %v4723_v36 = vpop.f32.mrb[68].mxu1 }
 0x66b   :  { %v4724_v37 = vpop.f32.mrb[69].mxu1 }
 0x66c   :  { %v5326_v38 = vpop.eup %5325  ;;  %v3420_v39 = vadd.f32 %v3419_v1, %v3315_v35  ;;  %v4725_v40 = vadd.f32 %v4724_v37, %v4723_v36  ;;  %v5105_v41 = vpack.c.bf16 %v3449_v33, %v3448_v32 }
 0x66d   :  { %v5328_v48 = vpop.eup %5327  ;;  %3773 = vrot.lane.b32.xlu1 %v5326_v38, %s5373_s18 }
 0x66e   :  { %v3320_v42 = vadd.f32 %v4725_v40, %v3191_v59  ;;  %3771 = vrot.lane.b32.xlu0 %v5328_v48, %s5373_s18  ;;  %v4726_v43 = vpop.f32.mrb[70].mxu1  ;;  %5106 = vmatprep.subr.bf16.mxu0 %v5105_v41  ;;  %v3450_v49 = vmax.f32 %v3420_v39, 0.0 }
 0x66f   :  { %v4727_v44 = vpop.f32.mrb[71].mxu1  ;;  %5108 = vmatpush3.bf16.msra.mxu0 %v5105_v41 }
 0x670   :  { %v3425_v46 = vadd.f32 %v4966_v63, %v3320_v42  ;;  %v4728_v47 = vadd.f32 %v4727_v44, %v4726_v43 }
 0x672   :  { %v3451_v50 = vmax.f32 %v3425_v46, 0.0  ;;  %v3325_v51 = vadd.f32 %v4728_v47, %v6463_v0  ;;  %v4729_v52 = vpop.f32.mrb[72].mxu1 }
 0x673   :  { %v4730_v53 = vpop.f32.mrb[73].mxu1 }
 0x674   :  { %v3430_v54 = vadd.f32 %v6467_v3, %v3325_v51  ;;  %v4731_v55 = vadd.f32 %v4730_v53, %v4729_v52  ;;  %v5109_v57 = vpack.c.bf16 %v3451_v50, %v3450_v49 }
 0x676   :  { %v3330_v45 = vadd.f32 %v4731_v55, %v6461_v62  ;;  %v4732_v59 = vpop.f32.mrb[74].mxu1  ;;  %5110 = vmatprep.subr.bf16.mxu0 %v5109_v57  ;;  %v3452_v8 = vmax.f32 %v3430_v54, 0.0  ;;  %v3468_v62 = vpop.permute.xlu1 %3467 }
 0x677   :  { %v4733_v60 = vpop.f32.mrb[75].mxu1  ;;  %5112 = vmatpush3.bf16.msra.mxu0 %v5109_v57 }
 0x678   :  { %v3435_v63 = vadd.f32 %v6465_v2, %v3330_v45  ;;  %v4734_v1 = vadd.f32 %v4733_v60, %v4732_v59 }
 0x67a   :  { %v3453_v9 = vmax.f32 %v3435_v63, 0.0  ;;  %v3335_v0 = vadd.f32 %v4734_v1, %v6471_v5  ;;  %v4735_v10 = vpop.f32.mrb[76].mxu1 }
 0x67b   :  { %v4736_v11 = vpop.f32.mrb[77].mxu1 }
 0x67c   :  { %v3440_v3 = vadd.f32 %v6475_v7, %v3335_v0  ;;  %v4737_v34 = vadd.f32 %v4736_v11, %v4735_v10  ;;  %v5113_v13 = vpack.c.bf16 %v3453_v9, %v3452_v8 }
 0x67e   :  { %v3340_v58 = vadd.f32 %v4737_v34, %v6469_v4  ;;  %v4979_v14 = vpop.f32.mrb[78].mxu1  ;;  %5114 = vmatprep.subr.bf16.mxu0 %v5113_v13  ;;  %v3454_v7 = vmax.f32 %v3440_v3, 0.0 }
 0x67f   :  { %v3548_v16 = vadd.f32 %v4979_v14, %v3468_v62  ;;  %v3542_v2 = vpop.f32.mrb[79].mxu1  ;;  %5116 = vmatpush3.bf16.msra.mxu0 %v5113_v13 }
 0x680   :  { %v3445_v17 = vadd.f32 %v6473_v6, %v3340_v58  ;;  %v3543_v18 = vadd.f32 %v3542_v2, %v3463_v15  ;;  %v3647_v6 = vld [vmem:[%s6541_s14 + $0x8] sm:$0xff] }
 0x681   :  { %3742 = vst.msk [vmem:[%s6544_s17 + $0x8] sm:$0xff] %vm231_vm0, %v3548_v16  ;;  %v3748_v5 = vsub.f32 0.0, %v3548_v16 }
 0x682   :  { %v3455_v19 = vmax.f32 %v3445_v17, 0.0  ;;  %3741 = vst.msk [vmem:[%s6544_s17] sm:$0xff] %vm231_vm0, %v3543_v18  ;;  %v3747_v4 = vsub.f32 0.0, %v3543_v18 }
 0x683   :  { %v3751_v20 = vmul.f32 1.442695, %v3748_v5 }
 0x684   :  { %v3749_v21 = vmul.f32 1.442695, %v3747_v4  ;;  %v5117_v22 = vpack.c.bf16 %v3455_v19, %v3454_v7 }
 0x685   :  { %5329 = vpow2.f32 %v3751_v20 }
 0x686   :  { %5331 = vpow2.f32 %v3749_v21  ;;  %5118 = vmatprep.subr.bf16.mxu0 %v5117_v22 }
 0x687   :  { %5120 = vmatpush3.bf16.msra.mxu0 %v5117_v22 }
 0x68a   :  { %5008 = vmatmul.mubr.msk.f32.vlgmr.msra.gmra.mrb[66].mxu0 %vm231_vm0, %v3647_v6 }
 0x68f   :  { %v5330_v23 = vpop.eup %5329 }
 0x690   :  { %v5332_v24 = vpop.eup %5331  ;;  %v3754_v12 = vadd.f32 1.0, %v5330_v23 }
 0x691   :  { %v3753_v25 = vadd.f32 1.0, %v5332_v24 }
 0x692   :  { %5333 = vrcp.f32 %v3754_v12 }
 0x693   :  { %5335 = vrcp.f32 %v3753_v25 }
 0x69c   :  { %v5334_v26 = vpop.eup %5333 }
 0x69d   :  { %v5336_v27 = vpop.eup %5335  ;;  %3758 = vst.msk [vmem:[#allocation5 + $0x8] sm:$0xff] %vm231_vm0, %v5334_v26 }
 0x69e   :  { %3757 = vst.msk [vmem:[#allocation5] sm:$0xff] %vm231_vm0, %v5336_v27 }
 0x6df   :  { %v3774_v28 = vpop.permute.xlu1 %3773 }
 0x6e0   :  { %3779 = vst.msk [vmem:[#allocation5 + $0x8] sm:$0xff] %vm3777_vm6, %v3774_v28  ;;  %v3772_v29 = vpop.permute.xlu0 %3771 }
 0x6e1   :  { %3778 = vst.msk [vmem:[#allocation5] sm:$0xff] %vm3777_vm6, %v3772_v29 }
 0x75d   :  { %v5009_v30 = vpop.f32.mrb[66].mxu0 }
 0x75e   :  { %v3738_v31 = vadd.f32 %v5009_v30, %v3658_v61  ;;  %v3732_v32 = vpop.f32.mrb[67].mxu0 }
 0x75f   :  { %v3733_v33 = vadd.f32 %v3732_v32, %v3653_v56 }
 0x760   :  { %3746 = vst.msk [vmem:[%s6546_s19 + $0x8] sm:$0xff] %vm2604_vm5, %v3738_v31  ;;  %v3781_v35 = vsub.f32 0.0, %v3738_v31 }
 0x761   :  { %3745 = vst.msk [vmem:[%s6546_s19] sm:$0xff] %vm2604_vm5, %v3733_v33  ;;  %v3780_v36 = vsub.f32 0.0, %v3733_v33  ;;  %s5345_s19 = scalar_lea.vmem %s3807_s12, 256 }
 0x762   :  { %v3784_v37 = vmul.f32 1.442695, %v3781_v35  ;;  %p5346_p0 = scmp.ne.s32.totalorder %s3807_s12, %s5345_s19  ;;  %p5351_p2 = scmp.lt.s32.totalorder %s5345_s19, %s5345_s19 }
 0x763   :  { %v3782_v38 = vmul.f32 1.442695, %v3780_v36 }
 0x764   :  { %5337 = vpow2.f32 %v3784_v37  ;;  %p5352_p3 = por %p5351_p2, %p5350_p1 }
 0x765   :  { %5339 = vpow2.f32 %v3782_v38 }
 0x766   :  { %p5353_p4 = pnand %p5352_p3, %p5346_p0 }
 0x76e   :  { %v5338_v39 = vpop.eup %5337 }
 0x76f   :  { %v5340_v40 = vpop.eup %5339  ;;  %v3787_v41 = vadd.f32 1.0, %v5338_v39 }
 0x770   :  { %v3786_v48 = vadd.f32 1.0, %v5340_v40 }
 0x771   :  { %5341 = vrcp.f32 %v3787_v41 }
 0x772   :  { %5343 = vrcp.f32 %v3786_v48 }
 0x77b   :  { %v5342_v42 = vpop.eup %5341 }
 0x77c   :  { %v5344_v43 = vpop.eup %5343  ;;  %3794 = vrot.lane.b32.xlu1 %v5342_v42, %s5374_s2 }
 0x77d   :  { %3792 = vrot.lane.b32.xlu0 %v5344_v43, %s5374_s2 }
 0x7ee   :  { %v3795_v44 = vpop.permute.xlu1 %3794 }
 0x7ef   :  { %3800 = vst.msk [vmem:[#allocation5 + $0x8] sm:$0xff] %vm3798_vm7, %v3795_v44  ;;  %v3793_v46 = vpop.permute.xlu0 %3792 }
 0x7f0   :  { %3799 = vst.msk [vmem:[#allocation5] sm:$0xff] %vm3798_vm7, %v3793_v46 }
 0x7f1   :  { %5356 = shalt.err (!%p5353_p4)
}
 0x7f2   :  { %s5357_s3 = scalar_lea.hbm %s6543_s16, 256 }
 0x7f3   :  { %p5358_p5 = scmp.ne.s32.totalorder %s6543_s16, %s5357_s3  ;;  %p5361_p6 = scmp.lt.u32.totalorder %s5357_s3, %s6543_s16 }
 0x7f5   :  { %p5363_p7 = pnand %p5361_p6, %p5358_p5 }
 0x7f7   :  { %5366 = shalt.err (!%p5363_p7)
}
 0x7f8   :  { %s5376_s7 = smov 128   ;;  %s5377_s20 = smov 8  }
 0x7f9   :  { %3812 = dma.vmem_to_hbm [thread:$0]  %s3807_s12, 256, %s6543_s16, [#allocation6], %s5376_s7, %s5376_s7, %s5377_s20  }
 0x7fa   :  { %5367 = dma.done.wait [#allocation6], 256  }
 0x7fb   :  { %5368 = vsyncadd [#allocation6], 4294967040 }
 0x7fc   :  { %3828 = vsyncpa [#allocation6], 1 }

</bundles_post_ra>
